<compile_context>
chip_gen: v5e
topology: v5e:2x2
jax: 0.10.0
libtpu: 0.0.40
codegen_flags: <defaults>
</compile_context>

<pallas_src>
import functools

import jax
import jax.numpy as jnp
import numpy as np
from jax.experimental import pallas as pl
from jax.experimental.pallas import tpu as pltpu

_EPS = 1e-5
_LANE = 128
_SUBLANE = 8


def _round_up(x, m):
    return ((x + m - 1) // m) * m


def _time_chunk(t, cap=128):
    tc = min(t, cap)
    while t % tc:
        tc -= 1
    return tc


def _row_tile(n, cap=512):
    if n <= cap:
        return n
    for t in range(cap, 0, -1):
        if n % t == 0 and t % _SUBLANE == 0:
            return t
    return n


# ------------------- fused CNN stack: Conv1d + BN(eval) + ReLU ---------------- #

def _cnn_stack_kernel(x_ref, w_ref, scale_ref, bias_ref, o_ref,
                      buf_a, buf_b, *, k_taps, t_len, pad):
    # Grid: (batch b [parallel], conv layer l [arbitrary -> sequential]).
    # x_ref:     (1, T, Cp)      one batch element, channel-padded input
    # w_ref:     (1, K, Cp, Cp)  this layer's conv weights, tap-major, lane-padded
    # scale_ref: (1, 1, Cp)      folded BN scale = gamma / sqrt(var + eps)
    # bias_ref:  (1, 1, Cp)      folded (conv_b - mean) * scale + beta
    # o_ref:     (1, T, Cp)      final-layer activations (written only at last l)
    # buf_a/b:   (T + 2*pad, Cp) VMEM ping-pong activation buffers; halo rows
    #                            stay zero, so no per-layer jnp.pad / HBM traffic.
    l = pl.program_id(1)
    even = (l % 2) == 0

    @pl.when(l == 0)
    def _():
        buf_a[...] = jnp.zeros_like(buf_a)
        buf_b[...] = jnp.zeros_like(buf_b)
        buf_a[pl.ds(pad, t_len), :] = x_ref[0]

    # even layers read buf_a / write buf_b, odd layers the reverse.
    x_full = jnp.where(even, buf_a[...], buf_b[...])            # (Tp, Cp)
    acc = jnp.dot(x_full[0:t_len, :], w_ref[0, 0],
                  preferred_element_type=jnp.float32)
    for k in range(1, k_taps):                                  # static unrolled taps
        acc = acc + jnp.dot(x_full[k:k + t_len, :], w_ref[0, k],
                            preferred_element_type=jnp.float32)
    y = jnp.maximum(acc * scale_ref[0] + bias_ref[0], 0.0)      # BN + ReLU (Dropout = id)

    @pl.when(even)
    def _():
        buf_b[pl.ds(pad, t_len), :] = y

    @pl.when(jnp.logical_not(even))
    def _():
        buf_a[pl.ds(pad, t_len), :] = y

    @pl.when(l == pl.num_programs(1) - 1)
    def _():
        o_ref[0] = y


def cnn_stack(x_btc, w_stack, scale_stack, bias_stack):
    # x_btc: (B, T, Cp) f32 ; w_stack: (L, K, Cp, Cp) ; scale/bias: (L, 1, Cp)
    B, T, Cp = x_btc.shape
    L, K = w_stack.shape[0], w_stack.shape[1]
    assert K % 2 == 1, "same-length Conv1d path assumes odd kernel_size"
    pad = K // 2
    Tp = T + 2 * pad
    # TODO(synk): tile T with a K-1 halo for very long sequences (full-T blocks
    # assume VMEM headroom; fine at these sizes on v5e/v6e/v7x).
    kernel = functools.partial(_cnn_stack_kernel, k_taps=K, t_len=T, pad=pad)
    return pl.pallas_call(
        kernel,
        out_shape=jax.ShapeDtypeStruct((B, T, Cp), jnp.float32),
        grid=(B, L),
        in_specs=[
            pl.BlockSpec((1, T, Cp), lambda b, l: (b, 0, 0)),
            pl.BlockSpec((1, K, Cp, Cp), lambda b, l: (l, 0, 0, 0)),
            pl.BlockSpec((1, 1, Cp), lambda b, l: (l, 0, 0)),
            pl.BlockSpec((1, 1, Cp), lambda b, l: (l, 0, 0)),
        ],
        out_specs=pl.BlockSpec((1, T, Cp), lambda b, l: (b, 0, 0)),
        scratch_shapes=[pltpu.VMEM((Tp, Cp), jnp.float32),
                        pltpu.VMEM((Tp, Cp), jnp.float32)],
        compiler_params=pltpu.CompilerParams(
            dimension_semantics=("parallel", "arbitrary")),
    )(x_btc, w_stack, scale_stack, bias_stack)


# ------------------------------ GRU layer kernel ---------------------------- #

def _gru_dir_kernel(x_ref, wih_ref, bih_ref, whh_ref, bhn_ref, o_ref,
                    h_scr, xp_scr, *, tc, bp, hp):
    # Grid: (direction d, time-chunk c).  Chunk order and in-chunk time order
    # are reversed for d == 1 (backward direction); the index_maps already pick
    # the reversed chunk, so outputs land at their original time positions.
    # x_ref:   (1, tc*Bp, Din)   time-major chunk (rows = time-major (t, b))
    # wih_ref: (1, Din, 3Hp)     fused-gate input weights (r|z|n), lane-padded
    # bih_ref: (1, 1, 3Hp)       b_ih (+ b_hh for r,z) folded
    # whh_ref: (1, Hp, 3Hp)      fused-gate hidden weights
    # bhn_ref: (1, 1, Hp)        b_hh for the n gate (scaled by r)
    # o_ref:   (1, tc*Bp, Hp)    this direction's slice of the concat output
    # h_scr:   (Bp, Hp) VMEM     hidden state carried across chunks
    # xp_scr:  (tc*Bp, 3Hp) VMEM hoisted input projection for the chunk
    d = pl.program_id(0)
    c = pl.program_id(1)

    @pl.when(c == 0)
    def _():
        h_scr[...] = jnp.zeros_like(h_scr)

    # Hoisted input projection: one big MXU matmul per chunk (not 3*T tiny ones).
    xp_scr[...] = (jnp.dot(x_ref[0], wih_ref[0],
                           preferred_element_type=jnp.float32) + bih_ref[0])

    whh = whh_ref[0]                                   # (Hp, 3Hp)
    bhn = bhn_ref[0]                                   # (1, Hp)

    def step(i, h):
        # forward walks 0..tc-1; backward walks tc-1..0
        t = (1 - d) * i + d * (tc - 1 - i)
        row = pl.multiple_of(t * bp, bp)
        xg = xp_scr[pl.ds(row, bp), :]                 # (Bp, 3Hp)
        gh = jnp.dot(h, whh, preferred_element_type=jnp.float32)   # (Bp, 3Hp)
        r = jax.nn.sigmoid(xg[:, :hp] + gh[:, :hp])
        z = jax.nn.sigmoid(xg[:, hp:2 * hp] + gh[:, hp:2 * hp])
        n = jnp.tanh(xg[:, 2 * hp:] + r * (gh[:, 2 * hp:] + bhn))
        h_new = (1.0 - z) * n + z * h
        o_ref[0, pl.ds(row, bp), :] = h_new
        return h_new

    h_scr[...] = jax.lax.fori_loop(0, tc, step, h_scr[...])


def gru_layer(x_tbd, wih_s, bih_s, whh_s, bhn_s, *, hp):
    # x_tbd: (T, Bp, Din) ; wih_s: (ndir, Din, 3Hp) ; bih_s: (ndir, 1, 3Hp)
    # whh_s: (ndir, Hp, 3Hp) ; bhn_s: (ndir, 1, Hp)
    # Returns (T, Bp, ndir*Hp): both directions written directly into the
    # concatenated slab (no jnp.concatenate / reversed copies in HBM).
    T, Bp, Din = x_tbd.shape
    ndir = wih_s.shape[0]
    tc = _time_chunk(T)
    nc = T // tc
    rows = tc * Bp
    x_rows = x_tbd.reshape(nc, rows, Din)              # metadata-only reshape

    def chunk_idx(d, c):                               # reverse chunk walk for d=1
        return (1 - d) * c + d * (nc - 1 - c)

    kernel = functools.partial(_gru_dir_kernel, tc=tc, bp=Bp, hp=hp)
    out = pl.pallas_call(
        kernel,
        out_shape=jax.ShapeDtypeStruct((nc, rows, ndir * hp), jnp.float32),
        grid=(ndir, nc),
        in_specs=[
            pl.BlockSpec((1, rows, Din), lambda d, c: (chunk_idx(d, c), 0, 0)),
            pl.BlockSpec((1, Din, 3 * hp), lambda d, c: (d, 0, 0)),
            pl.BlockSpec((1, 1, 3 * hp), lambda d, c: (d, 0, 0)),
            pl.BlockSpec((1, hp, 3 * hp), lambda d, c: (d, 0, 0)),
            pl.BlockSpec((1, 1, hp), lambda d, c: (d, 0, 0)),
        ],
        out_specs=pl.BlockSpec((1, rows, hp),
                               lambda d, c: (chunk_idx(d, c), 0, d)),
        scratch_shapes=[
            pltpu.VMEM((Bp, hp), jnp.float32),         # hidden state carry
            pltpu.VMEM((rows, 3 * hp), jnp.float32),   # hoisted projection
        ],
        compiler_params=pltpu.CompilerParams(
            dimension_semantics=("parallel", "arbitrary")),
    )(x_rows, wih_s, bih_s, whh_s, bhn_s)
    return out.reshape(T, Bp, ndir * hp)


# ------------------------------ linear head --------------------------------- #

def _matmul_bias_kernel(x_ref, w_ref, b_ref, o_ref):
    o_ref[...] = (jnp.dot(x_ref[...], w_ref[...],
                          preferred_element_type=jnp.float32) + b_ref[...])


def matmul_bias(x2d, w, b_row):
    # x2d: (N, Din) ; w: (Din, Dout_pad) ; b_row: (1, Dout_pad)
    N, Din = x2d.shape
    Dout = w.shape[1]
    tr = _row_tile(N)
    return pl.pallas_call(
        _matmul_bias_kernel,
        out_shape=jax.ShapeDtypeStruct((N, Dout), jnp.float32),
        grid=(N // tr,),
        in_specs=[
            pl.BlockSpec((tr, Din), lambda i: (i, 0)),
            pl.BlockSpec((Din, Dout), lambda i: (0, 0)),
            pl.BlockSpec((1, Dout), lambda i: (0, 0)),
        ],
        out_specs=pl.BlockSpec((tr, Dout), lambda i: (i, 0)),
        compiler_params=pltpu.CompilerParams(dimension_semantics=("parallel",)),
    )(x2d, w, b_row)


# --------------------------- parameter preparation -------------------------- #

def _prep_cnn_stack(cnn_params, cp):
    # Stack every conv layer into one lane-padded slab:
    #   w_stack (L, K, Cp, Cp), scale/bias (L, 1, Cp).
    # Padded channels carry zero weights / zero scale / zero bias, so padded
    # lanes of every intermediate activation are exactly 0 after ReLU.
    L = len(cnn_params)
    K = cnn_params[0]["conv_w"].shape[2]
    w_stack = jnp.zeros((L, K, cp, cp), jnp.float32)
    scale_stack = jnp.zeros((L, 1, cp), jnp.float32)
    bias_stack = jnp.zeros((L, 1, cp), jnp.float32)
    for i, layer in enumerate(cnn_params):
        cout, cin, _k = layer["conv_w"].shape
        w = jnp.transpose(layer["conv_w"], (2, 1, 0))      # (K, Cin, Cout)
        w_stack = w_stack.at[i, :, :cin, :cout].set(w)
        scale = layer["bn_gamma"] / jnp.sqrt(layer["bn_var"] + _EPS)
        bias = (layer["conv_b"] - layer["bn_mean"]) * scale + layer["bn_beta"]
        scale_stack = scale_stack.at[i, 0, :cout].set(scale)
        bias_stack = bias_stack.at[i, 0, :cout].set(bias)
    return w_stack, scale_stack, bias_stack


def _prep_gru_dir(p, H, Hp, segments, din_pad):
    # Fused (r|z|n) gate weights, gate g occupies cols [g*Hp, g*Hp+H).
    # b_ih folded into the projection bias; b_hh folded in for r and z
    # (additive), kept separate for n (scaled by r inside the recurrence).
    # `segments` = [(src_col, dst_row, width)] maps real input features into
    # the lane-padded input layout.
    wih = jnp.zeros((din_pad, 3 * Hp), jnp.float32)
    bih = jnp.zeros((3 * Hp,), jnp.float32)
    whh = jnp.zeros((Hp, 3 * Hp), jnp.float32)
    for g in range(3):
        wg = p["w_ih"][g * H:(g + 1) * H, :]           # (H, Din_real)
        for (src, dst, width) in segments:
            wih = wih.at[dst:dst + width, g * Hp:g * Hp + H].set(
                jnp.transpose(wg[:, src:src + width]))
        bg = p["b_ih"][g * H:(g + 1) * H]
        if g < 2:                                      # r, z: fold b_hh too
            bg = bg + p["b_hh"][g * H:(g + 1) * H]
        bih = bih.at[g * Hp:g * Hp + H].set(bg)
        whh = whh.at[:H, g * Hp:g * Hp + H].set(
            jnp.transpose(p["w_hh"][g * H:(g + 1) * H, :]))
    bhn = jnp.zeros((Hp,), jnp.float32).at[:H].set(p["b_hh"][2 * H:3 * H])
    return wih, bih[None, :], whh, bhn[None, :]


# ------------------------------- model glue --------------------------------- #

def init_params(key, *, input_dim, cnn_hidden, cnn_layers, kernel_size,
                gru_hidden, gru_layers, bidirectional, num_classes):
    def nrm(k, shape, s=0.1):
        return s * jax.random.normal(k, shape, jnp.float32)

    params = {"cnn": [], "gru": []}
    in_ch = input_dim
    k = key
    for _ in range(cnn_layers):
        k, k1, k2, k3, k4, k5, k6 = jax.random.split(k, 7)
        params["cnn"].append(dict(
            conv_w=nrm(k1, (cnn_hidden, in_ch, kernel_size)),   # PyTorch (Cout,Cin,K)
            conv_b=nrm(k2, (cnn_hidden,)),
            bn_gamma=1.0 + nrm(k3, (cnn_hidden,)),
            bn_beta=nrm(k4, (cnn_hidden,)),
            bn_mean=nrm(k5, (cnn_hidden,)),
            bn_var=1.0 + 0.1 * jax.random.uniform(k6, (cnn_hidden,), jnp.float32),
        ))
        in_ch = cnn_hidden

    ndir = 2 if bidirectional else 1
    gin = cnn_hidden
    for _ in range(gru_layers):
        dirs = []
        for _d in range(ndir):
            k, k1, k2, k3, k4 = jax.random.split(k, 5)
            dirs.append(dict(
                w_ih=nrm(k1, (3 * gru_hidden, gin)),
                w_hh=nrm(k2, (3 * gru_hidden, gru_hidden)),
                b_ih=nrm(k3, (3 * gru_hidden,)),
                b_hh=nrm(k4, (3 * gru_hidden,)),
            ))
        params["gru"].append(dirs)
        gin = gru_hidden * ndir

    k, k1, k2 = jax.random.split(k, 3)
    params["head_w"] = nrm(k1, (num_classes, gru_hidden * ndir))
    params["head_b"] = nrm(k2, (num_classes,))
    return params


def cnn_gru_forward(params, x_btc):
    # x_btc: (B, T, input_dim) -> logits (B, T, num_classes)
    B, T, input_dim = x_btc.shape
    ndir = len(params["gru"][0])
    H = params["gru"][0][0]["w_hh"].shape[1]
    cnn_hidden = params["cnn"][0]["conv_w"].shape[0]
    num_classes = params["head_w"].shape[0]
    Hp = _round_up(H, _LANE)
    Cls_p = _round_up(num_classes, _LANE)
    Bp = _round_up(B, _SUBLANE)
    Cp = _round_up(max(input_dim, cnn_hidden), _LANE)

    # ---- fused CNN stack: Conv1d + BN(eval) + ReLU; Dropout = identity ----
    w_stack, s_stack, b_stack = _prep_cnn_stack(params["cnn"], Cp)
    x_p = jnp.pad(x_btc.astype(jnp.float32),
                  ((0, 0), (0, 0), (0, Cp - input_dim)))      # channel pad only
    h = cnn_stack(x_p, w_stack, s_stack, b_stack)             # (B, T, Cp)

    # ---- to time-major, pad batch to the f32 sublane granule ----
    h = jnp.transpose(h, (1, 0, 2))                    # (T, B, Cp)
    if Bp != B:
        h = jnp.pad(h, ((0, 0), (0, Bp - B), (0, 0)))  # (T, Bp, Cp)

    # ---- GRU stack ----
    din_pad = Cp
    segments = [(0, 0, cnn_hidden)]                    # real-feature placement
    for layer_dirs in params["gru"]:
        wih_l, bih_l, whh_l, bhn_l = [], [], [], []
        for p in layer_dirs[:ndir]:
            wih, bih, whh, bhn = _prep_gru_dir(p, H, Hp, segments, din_pad)
            wih_l.append(wih); bih_l.append(bih)
            whh_l.append(whh); bhn_l.append(bhn)
        h = gru_layer(h, jnp.stack(wih_l), jnp.stack(bih_l),
                      jnp.stack(whh_l), jnp.stack(bhn_l), hp=Hp)  # (T,Bp,ndir*Hp)
        din_pad = ndir * Hp
        segments = [(g * H, g * Hp, H) for g in range(ndir)]

    # ---- linear head (lane-dense padded output, sliced back afterwards) ----
    wh = jnp.zeros((din_pad, Cls_p), jnp.float32)
    for (src, dst, width) in segments:
        wh = wh.at[dst:dst + width, :num_classes].set(
            jnp.transpose(params["head_w"][:, src:src + width]))
    bh = jnp.zeros((Cls_p,), jnp.float32).at[:num_classes].set(params["head_b"])
    logits = matmul_bias(h.reshape(T * Bp, din_pad), wh, bh[None, :])
    logits = logits.reshape(T, Bp, Cls_p)[:, :B, :num_classes]
    return jnp.transpose(logits, (1, 0, 2))            # (B, T, num_classes)


# ---------------------------- pure-JAX reference ----------------------------- #

def reference_forward(params, x_btc, *, kernel_size, bidirectional):
    B, T, _ = x_btc.shape
    h = x_btc.astype(jnp.float32)
    pad = kernel_size // 2
    for layer in params["cnn"]:
        w = layer["conv_w"]                            # (Cout, Cin, K)
        hp = jnp.pad(h, ((0, 0), (pad, pad), (0, 0)))
        y = jnp.zeros((B, T, w.shape[0]), jnp.float32) + layer["conv_b"]
        for k in range(kernel_size):
            y = y + jnp.einsum('btc,cd->btd', hp[:, k:k + T, :], w[:, :, k].T)
        y = (y - layer["bn_mean"]) * layer["bn_gamma"] / jnp.sqrt(
            layer["bn_var"] + _EPS) + layer["bn_beta"]
        h = jnp.maximum(y, 0.0)

    h = jnp.transpose(h, (1, 0, 2))                    # (T, B, C)

    def gru_dir(x_tbc, p):
        H = p["w_hh"].shape[1]

        def step(hprev, x_t):
            gi = x_t @ p["w_ih"].T + p["b_ih"]
            gh = hprev @ p["w_hh"].T + p["b_hh"]
            r = jax.nn.sigmoid(gi[:, :H] + gh[:, :H])
            z = jax.nn.sigmoid(gi[:, H:2 * H] + gh[:, H:2 * H])
            n = jnp.tanh(gi[:, 2 * H:] + r * gh[:, 2 * H:])
            hn = (1.0 - z) * n + z * hprev
            return hn, hn

        h0 = jnp.zeros((x_tbc.shape[1], H), jnp.float32)
        _, out = jax.lax.scan(step, h0, x_tbc)
        return out

    for dirs in params["gru"]:
        out_f = gru_dir(h, dirs[0])
        if bidirectional:
            out_b = gru_dir(h[::-1], dirs[1])[::-1]
            h = jnp.concatenate([out_f, out_b], axis=-1)
        else:
            h = out_f

    logits = jnp.einsum('tbd,cd->tbc', h, params["head_w"]) + params["head_b"]
    return jnp.transpose(logits, (1, 0, 2))


# ----------------------------------- main ------------------------------------ #

if __name__ == "__main__":
    # Small config consistent with CNN_GRU_Single's constructor shapes.
    B, T = 2, 16
    input_dim, cnn_hidden, cnn_layers, kernel_size = 2, 32, 2, 3
    gru_hidden, gru_layers, bidirectional, num_classes = 32, 2, True, 2

    key = jax.random.PRNGKey(0)
    kx, kp = jax.random.split(key)
    x = jax.random.normal(kx, (B, T, input_dim), jnp.float32)
    params = init_params(
        kp, input_dim=input_dim, cnn_hidden=cnn_hidden, cnn_layers=cnn_layers,
        kernel_size=kernel_size, gru_hidden=gru_hidden, gru_layers=gru_layers,
        bidirectional=bidirectional, num_classes=num_classes)

    fwd = jax.jit(cnn_gru_forward)
    out = jax.block_until_ready(fwd(params, x))
    assert out.shape == (B, T, num_classes)

    ref = reference_forward(params, x, kernel_size=kernel_size,
                            bidirectional=bidirectional)
    np.testing.assert_allclose(np.asarray(out), np.asarray(ref),
                               rtol=2e-4, atol=2e-4)
    print("KERNEL_OK")
</pallas_src>

<mosaic_0001>
module attributes {stable_mosaic.version = 11 : i64} {
  func.func @_cnn_stack_kernel(%arg0: i32, %arg1: i32, %arg2: memref<1x16x128xf32, #tpu.memory_space<vmem>>, %arg3: memref<1x3x128x128xf32, #tpu.memory_space<vmem>>, %arg4: memref<1x1x128xf32, #tpu.memory_space<vmem>>, %arg5: memref<1x1x128xf32, #tpu.memory_space<vmem>>, %arg6: memref<1x16x128xf32, #tpu.memory_space<vmem>>, %arg7: memref<18x128xf32, #tpu.memory_space<vmem>>, %arg8: memref<18x128xf32, #tpu.memory_space<vmem>>) attributes {dimension_semantics = [#tpu.dimension_semantics<parallel>, #tpu.dimension_semantics<arbitrary>], iteration_bounds = array<i64: 2, 2>, scalar_prefetch = 0 : i64, scratch_operands = 2 : i64, tpu.core_type = #tpu.core_type<tc>, window_params = [{transform_indices = @transform_0, window_bounds = array<i64: 1, 16, 128>}, {transform_indices = @transform_1, window_bounds = array<i64: 1, 3, 128, 128>}, {transform_indices = @transform_2, window_bounds = array<i64: 1, 1, 128>}, {transform_indices = @transform_3, window_bounds = array<i64: 1, 1, 128>}, {transform_indices = @transform_4, window_bounds = array<i64: 1, 16, 128>}]} {
    %c2_i32 = arith.constant 2 : i32
    %c0_i32 = arith.constant 0 : i32
    %0 = arith.cmpi eq, %c2_i32, %c0_i32 : i32
    %c1_i32 = arith.constant 1 : i32
    %1 = arith.select %0, %c1_i32, %c2_i32 : i32
    %2 = arith.remsi %arg1, %1 : i32
    %c0_i32_0 = arith.constant 0 : i32
    %3 = arith.cmpi ne, %2, %c0_i32_0 : i32
    %c0_i32_1 = arith.constant 0 : i32
    %4 = arith.cmpi slt, %2, %c0_i32_1 : i32
    %c0_i32_2 = arith.constant 0 : i32
    %5 = arith.cmpi slt, %1, %c0_i32_2 : i32
    %6 = arith.xori %4, %5 : i1
    %7 = arith.andi %6, %3 : i1
    %8 = arith.addi %2, %1 : i32
    %9 = arith.select %7, %8, %2 : i32
    %c0_i32_3 = arith.constant 0 : i32
    %10 = arith.cmpi eq, %9, %c0_i32_3 : i32
    %c0_i32_4 = arith.constant 0 : i32
    %11 = arith.cmpi eq, %arg1, %c0_i32_4 : i32
    %12 = arith.extui %11 : i1 to i32
    %c0_i32_5 = arith.constant 0 : i32
    %13 = arith.cmpi ne, %12, %c0_i32_5 : i32
    scf.if %13 {
      %cst_32 = arith.constant 0.000000e+00 : f32
      %49 = vector.broadcast %cst_32 : f32 to vector<18x128xf32>
      %c0_33 = arith.constant 0 : index
      %c0_34 = arith.constant 0 : index
      %50 = vector.load %arg7[%c0_33, %c0_34] : memref<18x128xf32, #tpu.memory_space<vmem>>, vector<18x128xf32>
      tpu.vector_store %arg7[%c0_33, %c0_34], %49 {strides = array<i32>} : memref<18x128xf32, #tpu.memory_space<vmem>>, vector<18x128xf32>,
      %cst_35 = arith.constant 0.000000e+00 : f32
      %51 = vector.broadcast %cst_35 : f32 to vector<18x128xf32>
      %c0_36 = arith.constant 0 : index
      %c0_37 = arith.constant 0 : index
      %52 = vector.load %arg8[%c0_36, %c0_37] : memref<18x128xf32, #tpu.memory_space<vmem>>, vector<18x128xf32>
      tpu.vector_store %arg8[%c0_36, %c0_37], %51 {strides = array<i32>} : memref<18x128xf32, #tpu.memory_space<vmem>>, vector<18x128xf32>,
      %c0_38 = arith.constant 0 : index
      %c0_39 = arith.constant 0 : index
      %c0_40 = arith.constant 0 : index
      %53 = vector.load %arg2[%c0_38, %c0_39, %c0_40] : memref<1x16x128xf32, #tpu.memory_space<vmem>>, vector<1x16x128xf32>
      %54 = vector.shape_cast %53 : vector<1x16x128xf32> to vector<16x128xf32>
      %c1_41 = arith.constant 1 : index
      %c0_42 = arith.constant 0 : index
      %55 = vector.load %arg7[%c1_41, %c0_42] : memref<18x128xf32, #tpu.memory_space<vmem>>, vector<16x128xf32>
      tpu.vector_store %arg7[%c1_41, %c0_42], %54 {strides = array<i32>} : memref<18x128xf32, #tpu.memory_space<vmem>>, vector<16x128xf32>,
    } else {
    }
    %c0 = arith.constant 0 : index
    %c0_6 = arith.constant 0 : index
    %14 = vector.load %arg7[%c0, %c0_6] : memref<18x128xf32, #tpu.memory_space<vmem>>, vector<18x128xf32>
    %c0_7 = arith.constant 0 : index
    %c0_8 = arith.constant 0 : index
    %15 = vector.load %arg8[%c0_7, %c0_8] : memref<18x128xf32, #tpu.memory_space<vmem>>, vector<18x128xf32>
    %16 = arith.select %10, %14, %15 : vector<18x128xf32>
    %17 = vector.extract_strided_slice %16 {offsets = [0, 0], sizes = [16, 128], strides = [1, 1]} : vector<18x128xf32> to vector<16x128xf32>
    %c0_9 = arith.constant 0 : index
    %c0_10 = arith.constant 0 : index
    %c0_11 = arith.constant 0 : index
    %c0_12 = arith.constant 0 : index
    %18 = vector.load %arg3[%c0_9, %c0_10, %c0_11, %c0_12] : memref<1x3x128x128xf32, #tpu.memory_space<vmem>>, vector<1x1x128x128xf32>
    %19 = vector.shape_cast %18 : vector<1x1x128x128xf32> to vector<128x128xf32>
    %cst = arith.constant dense<0.000000e+00> : vector<16x128xf32>
    %20 = tpu.matmul %17, %19, %cst {dimension_numbers = #tpu.dot_dimension_numbers<[1], [0], [0], [1], [0, 0, 1, 1], [], []>} : vector<16x128xf32>, vector<128x128xf32>, vector<16x128xf32> -> vector<16x128xf32>
    %21 = vector.extract_strided_slice %16 {offsets = [1, 0], sizes = [16, 128], strides = [1, 1]} : vector<18x128xf32> to vector<16x128xf32>
    %c0_13 = arith.constant 0 : index
    %c1 = arith.constant 1 : index
    %c0_14 = arith.constant 0 : index
    %c0_15 = arith.constant 0 : index
    %22 = vector.load %arg3[%c0_13, %c1, %c0_14, %c0_15] : memref<1x3x128x128xf32, #tpu.memory_space<vmem>>, vector<1x1x128x128xf32>
    %23 = vector.shape_cast %22 : vector<1x1x128x128xf32> to vector<128x128xf32>
    %cst_16 = arith.constant dense<0.000000e+00> : vector<16x128xf32>
    %24 = tpu.matmul %21, %23, %cst_16 {dimension_numbers = #tpu.dot_dimension_numbers<[1], [0], [0], [1], [0, 0, 1, 1], [], []>} : vector<16x128xf32>, vector<128x128xf32>, vector<16x128xf32> -> vector<16x128xf32>
    %25 = arith.addf %20, %24 : vector<16x128xf32>
    %26 = vector.extract_strided_slice %16 {offsets = [2, 0], sizes = [16, 128], strides = [1, 1]} : vector<18x128xf32> to vector<16x128xf32>
    %c0_17 = arith.constant 0 : index
    %c2 = arith.constant 2 : index
    %c0_18 = arith.constant 0 : index
    %c0_19 = arith.constant 0 : index
    %27 = vector.load %arg3[%c0_17, %c2, %c0_18, %c0_19] : memref<1x3x128x128xf32, #tpu.memory_space<vmem>>, vector<1x1x128x128xf32>
    %28 = vector.shape_cast %27 : vector<1x1x128x128xf32> to vector<128x128xf32>
    %cst_20 = arith.constant dense<0.000000e+00> : vector<16x128xf32>
    %29 = tpu.matmul %26, %28, %cst_20 {dimension_numbers = #tpu.dot_dimension_numbers<[1], [0], [0], [1], [0, 0, 1, 1], [], []>} : vector<16x128xf32>, vector<128x128xf32>, vector<16x128xf32> -> vector<16x128xf32>
    %30 = arith.addf %25, %29 : vector<16x128xf32>
    %c0_21 = arith.constant 0 : index
    %c0_22 = arith.constant 0 : index
    %c0_23 = arith.constant 0 : index
    %31 = vector.load %arg4[%c0_21, %c0_22, %c0_23] : memref<1x1x128xf32, #tpu.memory_space<vmem>>, vector<1x1x128xf32>
    %32 = vector.shape_cast %31 : vector<1x1x128xf32> to vector<1x128xf32>
    %33 = vector.broadcast %32 : vector<1x128xf32> to vector<16x128xf32>
    %34 = arith.mulf %30, %33 : vector<16x128xf32>
    %c0_24 = arith.constant 0 : index
    %c0_25 = arith.constant 0 : index
    %c0_26 = arith.constant 0 : index
    %35 = vector.load %arg5[%c0_24, %c0_25, %c0_26] : memref<1x1x128xf32, #tpu.memory_space<vmem>>, vector<1x1x128xf32>
    %36 = vector.shape_cast %35 : vector<1x1x128xf32> to vector<1x128xf32>
    %37 = vector.broadcast %36 : vector<1x128xf32> to vector<16x128xf32>
    %38 = arith.addf %34, %37 : vector<16x128xf32>
    %cst_27 = arith.constant 0.000000e+00 : f32
    %39 = vector.broadcast %cst_27 : f32 to vector<16x128xf32>
    %40 = arith.maximumf %38, %39 : vector<16x128xf32>
    %41 = arith.extui %10 : i1 to i32
    %c0_i32_28 = arith.constant 0 : i32
    %42 = arith.cmpi ne, %41, %c0_i32_28 : i32
    scf.if %42 {
      %c1_32 = arith.constant 1 : index
      %c0_33 = arith.constant 0 : index
      %49 = vector.load %arg8[%c1_32, %c0_33] : memref<18x128xf32, #tpu.memory_space<vmem>>, vector<16x128xf32>
      tpu.vector_store %arg8[%c1_32, %c0_33], %40 {strides = array<i32>} : memref<18x128xf32, #tpu.memory_space<vmem>>, vector<16x128xf32>,
    } else {
    }
    %true = arith.constant true
    %43 = arith.xori %10, %true : i1
    %44 = arith.extui %43 : i1 to i32
    %c0_i32_29 = arith.constant 0 : i32
    %45 = arith.cmpi ne, %44, %c0_i32_29 : i32
    scf.if %45 {
      %c1_32 = arith.constant 1 : index
      %c0_33 = arith.constant 0 : index
      %49 = vector.load %arg7[%c1_32, %c0_33] : memref<18x128xf32, #tpu.memory_space<vmem>>, vector<16x128xf32>
      tpu.vector_store %arg7[%c1_32, %c0_33], %40 {strides = array<i32>} : memref<18x128xf32, #tpu.memory_space<vmem>>, vector<16x128xf32>,
    } else {
    }
    %c1_i32_30 = arith.constant 1 : i32
    %46 = arith.cmpi eq, %arg1, %c1_i32_30 : i32
    %47 = arith.extui %46 : i1 to i32
    %c0_i32_31 = arith.constant 0 : i32
    %48 = arith.cmpi ne, %47, %c0_i32_31 : i32
    scf.if %48 {
      %c0_32 = arith.constant 0 : index
      %c0_33 = arith.constant 0 : index
      %c0_34 = arith.constant 0 : index
      %49 = vector.load %arg6[%c0_32, %c0_33, %c0_34] : memref<1x16x128xf32, #tpu.memory_space<vmem>>, vector<1x16x128xf32>
      %50 = vector.shape_cast %49 : vector<1x16x128xf32> to vector<16x128xf32>
      %51 = vector.shape_cast %40 : vector<16x128xf32> to vector<1x16x128xf32>
      tpu.vector_store %arg6[%c0_32, %c0_33, %c0_34], %51 {strides = array<i32>} : memref<1x16x128xf32, #tpu.memory_space<vmem>>, vector<1x16x128xf32>,
    } else {
    }
    return
  }
  func.func @transform_0(%arg0: i32, %arg1: i32) -> (i32, i32, i32) {
    %c0_i32 = arith.constant 0 : i32
    %c0_i32_0 = arith.constant 0 : i32
    %c0_i32_1 = arith.constant 0 : i32
    return %arg0, %c0_i32, %c0_i32_0 : i32, i32, i32
  }
  func.func @transform_1(%arg0: i32, %arg1: i32) -> (i32, i32, i32, i32) {
    %c0_i32 = arith.constant 0 : i32
    %c0_i32_0 = arith.constant 0 : i32
    %c0_i32_1 = arith.constant 0 : i32
    %c0_i32_2 = arith.constant 0 : i32
    return %arg1, %c0_i32, %c0_i32_0, %c0_i32_1 : i32, i32, i32, i32
  }
  func.func @transform_2(%arg0: i32, %arg1: i32) -> (i32, i32, i32) {
    %c0_i32 = arith.constant 0 : i32
    %c0_i32_0 = arith.constant 0 : i32
    %c0_i32_1 = arith.constant 0 : i32
    return %arg1, %c0_i32, %c0_i32_0 : i32, i32, i32
  }
  func.func @transform_3(%arg0: i32, %arg1: i32) -> (i32, i32, i32) {
    %c0_i32 = arith.constant 0 : i32
    %c0_i32_0 = arith.constant 0 : i32
    %c0_i32_1 = arith.constant 0 : i32
    return %arg1, %c0_i32, %c0_i32_0 : i32, i32, i32
  }
  func.func @transform_4(%arg0: i32, %arg1: i32) -> (i32, i32, i32) {
    %c0_i32 = arith.constant 0 : i32
    %c0_i32_0 = arith.constant 0 : i32
    %c0_i32_1 = arith.constant 0 : i32
    return %arg0, %c0_i32, %c0_i32_0 : i32, i32, i32
  }
}

module attributes {stable_mosaic.version = 11 : i64} {
  func.func @_gru_dir_kernel(%arg0: i32, %arg1: i32, %arg2: memref<1x128x128xf32, #tpu.memory_space<vmem>>, %arg3: memref<1x128x384xf32, #tpu.memory_space<vmem>>, %arg4: memref<1x1x384xf32, #tpu.memory_space<vmem>>, %arg5: memref<1x128x384xf32, #tpu.memory_space<vmem>>, %arg6: memref<1x1x128xf32, #tpu.memory_space<vmem>>, %arg7: memref<1x128x128xf32, #tpu.memory_space<vmem>>, %arg8: memref<8x128xf32, #tpu.memory_space<vmem>>, %arg9: memref<128x384xf32, #tpu.memory_space<vmem>>) attributes {dimension_semantics = [#tpu.dimension_semantics<parallel>, #tpu.dimension_semantics<arbitrary>], iteration_bounds = array<i64: 2, 1>, scalar_prefetch = 0 : i64, scratch_operands = 2 : i64, tpu.core_type = #tpu.core_type<tc>, window_params = [{transform_indices = @transform_0, window_bounds = array<i64: 1, 128, 128>}, {transform_indices = @transform_1, window_bounds = array<i64: 1, 128, 384>}, {transform_indices = @transform_2, window_bounds = array<i64: 1, 1, 384>}, {transform_indices = @transform_3, window_bounds = array<i64: 1, 128, 384>}, {transform_indices = @transform_4, window_bounds = array<i64: 1, 1, 128>}, {transform_indices = @transform_5, window_bounds = array<i64: 1, 128, 128>}]} {
    %c0_i32 = arith.constant 0 : i32
    %0 = arith.cmpi eq, %arg1, %c0_i32 : i32
    %1 = arith.extui %0 : i1 to i32
    %c0_i32_0 = arith.constant 0 : i32
    %2 = arith.cmpi ne, %1, %c0_i32_0 : i32
    scf.if %2 {
      %cst_23 = arith.constant 0.000000e+00 : f32
      %21 = vector.broadcast %cst_23 : f32 to vector<8x128xf32>
      %c0_24 = arith.constant 0 : index
      %c0_25 = arith.constant 0 : index
      %22 = vector.load %arg8[%c0_24, %c0_25] : memref<8x128xf32, #tpu.memory_space<vmem>>, vector<8x128xf32>
      tpu.vector_store %arg8[%c0_24, %c0_25], %21 {strides = array<i32>} : memref<8x128xf32, #tpu.memory_space<vmem>>, vector<8x128xf32>,
    } else {
    }
    %c0 = arith.constant 0 : index
    %c0_1 = arith.constant 0 : index
    %c0_2 = arith.constant 0 : index
    %3 = vector.load %arg2[%c0, %c0_1, %c0_2] : memref<1x128x128xf32, #tpu.memory_space<vmem>>, vector<1x128x128xf32>
    %4 = vector.shape_cast %3 : vector<1x128x128xf32> to vector<128x128xf32>
    %c0_3 = arith.constant 0 : index
    %c0_4 = arith.constant 0 : index
    %c0_5 = arith.constant 0 : index
    %5 = vector.load %arg3[%c0_3, %c0_4, %c0_5] : memref<1x128x384xf32, #tpu.memory_space<vmem>>, vector<1x128x384xf32>
    %6 = vector.shape_cast %5 : vector<1x128x384xf32> to vector<128x384xf32>
    %cst = arith.constant dense<0.000000e+00> : vector<128x384xf32>
    %7 = tpu.matmul %4, %6, %cst {dimension_numbers = #tpu.dot_dimension_numbers<[1], [0], [0], [1], [0, 0, 1, 1], [], []>} : vector<128x128xf32>, vector<128x384xf32>, vector<128x384xf32> -> vector<128x384xf32>
    %c0_6 = arith.constant 0 : index
    %c0_7 = arith.constant 0 : index
    %c0_8 = arith.constant 0 : index
    %8 = vector.load %arg4[%c0_6, %c0_7, %c0_8] : memref<1x1x384xf32, #tpu.memory_space<vmem>>, vector<1x1x384xf32>
    %9 = vector.shape_cast %8 : vector<1x1x384xf32> to vector<1x384xf32>
    %10 = vector.broadcast %9 : vector<1x384xf32> to vector<128x384xf32>
    %11 = arith.addf %7, %10 : vector<128x384xf32>
    %c0_9 = arith.constant 0 : index
    %c0_10 = arith.constant 0 : index
    %12 = vector.load %arg9[%c0_9, %c0_10] : memref<128x384xf32, #tpu.memory_space<vmem>>, vector<128x384xf32>
    tpu.vector_store %arg9[%c0_9, %c0_10], %11 {strides = array<i32>} : memref<128x384xf32, #tpu.memory_space<vmem>>, vector<128x384xf32>,
    %c0_11 = arith.constant 0 : index
    %c0_12 = arith.constant 0 : index
    %c0_13 = arith.constant 0 : index
    %13 = vector.load %arg5[%c0_11, %c0_12, %c0_13] : memref<1x128x384xf32, #tpu.memory_space<vmem>>, vector<1x128x384xf32>
    %14 = vector.shape_cast %13 : vector<1x128x384xf32> to vector<128x384xf32>
    %c0_14 = arith.constant 0 : index
    %c0_15 = arith.constant 0 : index
    %c0_16 = arith.constant 0 : index
    %15 = vector.load %arg6[%c0_14, %c0_15, %c0_16] : memref<1x1x128xf32, #tpu.memory_space<vmem>>, vector<1x1x128xf32>
    %16 = vector.shape_cast %15 : vector<1x1x128xf32> to vector<1x128xf32>
    %c0_17 = arith.constant 0 : index
    %c0_18 = arith.constant 0 : index
    %17 = vector.load %arg8[%c0_17, %c0_18] : memref<8x128xf32, #tpu.memory_space<vmem>>, vector<8x128xf32>
    %c0_i32_19 = arith.constant 0 : i32
    %c16_i32 = arith.constant 16 : i32
    %18 = arith.addi %c0_i32_19, %c16_i32 : i32
    %c1_i32 = arith.constant 1 : i32
    %19 = scf.for %arg10 = %c0_i32_19 to %18 step %c1_i32 iter_args(%arg11 = %17) -> (vector<8x128xf32>)  : i32 {
      %c1_i32_23 = arith.constant 1 : i32
      %21 = arith.subi %c1_i32_23, %arg0 : i32
      %22 = arith.muli %21, %arg10 : i32
      %c15_i32 = arith.constant 15 : i32
      %23 = arith.subi %c15_i32, %arg10 : i32
      %24 = arith.muli %arg0, %23 : i32
      %25 = arith.addi %22, %24 : i32
      %c8_i32 = arith.constant 8 : i32
      %26 = arith.muli %25, %c8_i32 : i32
      %27 = tpu.assume_multiple %26, 8 : i32
      %28 = arith.index_cast %27 : i32 to index
      %c0_24 = arith.constant 0 : index
      %29 = vector.load %arg9[%28, %c0_24] : memref<128x384xf32, #tpu.memory_space<vmem>>, vector<8x384xf32>
      %cst_25 = arith.constant dense<0.000000e+00> : vector<8x384xf32>
      %30 = tpu.matmul %arg11, %14, %cst_25 {dimension_numbers = #tpu.dot_dimension_numbers<[1], [0], [0], [1], [0, 0, 1, 1], [], []>} : vector<8x128xf32>, vector<128x384xf32>, vector<8x384xf32> -> vector<8x384xf32>
      %31 = vector.extract_strided_slice %29 {offsets = [0, 0], sizes = [8, 128], strides = [1, 1]} : vector<8x384xf32> to vector<8x128xf32>
      %32 = vector.extract_strided_slice %30 {offsets = [0, 0], sizes = [8, 128], strides = [1, 1]} : vector<8x384xf32> to vector<8x128xf32>
      %33 = arith.addf %31, %32 : vector<8x128xf32>
      %34 = arith.negf %33 : vector<8x128xf32>
      %35 = math.exp %34 : vector<8x128xf32>
      %cst_26 = arith.constant 1.000000e+00 : f32
      %36 = vector.broadcast %cst_26 : f32 to vector<8x128xf32>
      %37 = arith.addf %36, %35 : vector<8x128xf32>
      %38 = arith.divf %36, %37 : vector<8x128xf32>
      %39 = vector.extract_strided_slice %29 {offsets = [0, 128], sizes = [8, 128], strides = [1, 1]} : vector<8x384xf32> to vector<8x128xf32>
      %40 = vector.extract_strided_slice %30 {offsets = [0, 128], sizes = [8, 128], strides = [1, 1]} : vector<8x384xf32> to vector<8x128xf32>
      %41 = arith.addf %39, %40 : vector<8x128xf32>
      %42 = arith.negf %41 : vector<8x128xf32>
      %43 = math.exp %42 : vector<8x128xf32>
      %cst_27 = arith.constant 1.000000e+00 : f32
      %44 = vector.broadcast %cst_27 : f32 to vector<8x128xf32>
      %45 = arith.addf %44, %43 : vector<8x128xf32>
      %46 = arith.divf %44, %45 : vector<8x128xf32>
      %47 = vector.extract_strided_slice %29 {offsets = [0, 256], sizes = [8, 128], strides = [1, 1]} : vector<8x384xf32> to vector<8x128xf32>
      %48 = vector.extract_strided_slice %30 {offsets = [0, 256], sizes = [8, 128], strides = [1, 1]} : vector<8x384xf32> to vector<8x128xf32>
      %49 = vector.broadcast %16 : vector<1x128xf32> to vector<8x128xf32>
      %50 = arith.addf %48, %49 : vector<8x128xf32>
      %51 = arith.mulf %38, %50 : vector<8x128xf32>
      %52 = arith.addf %47, %51 : vector<8x128xf32>
      %53 = math.tanh %52 : vector<8x128xf32>
      %cst_28 = arith.constant 1.000000e+00 : f32
      %54 = vector.broadcast %cst_28 : f32 to vector<8x128xf32>
      %55 = arith.subf %54, %46 : vector<8x128xf32>
      %56 = arith.mulf %55, %53 : vector<8x128xf32>
      %57 = arith.mulf %46, %arg11 : vector<8x128xf32>
      %58 = arith.addf %56, %57 : vector<8x128xf32>
      %c0_29 = arith.constant 0 : index
      %59 = arith.index_cast %27 : i32 to index
      %c0_30 = arith.constant 0 : index
      %60 = vector.load %arg7[%c0_29, %59, %c0_30] : memref<1x128x128xf32, #tpu.memory_space<vmem>>, vector<1x8x128xf32>
      %61 = vector.shape_cast %60 : vector<1x8x128xf32> to vector<8x128xf32>
      %62 = vector.shape_cast %58 : vector<8x128xf32> to vector<1x8x128xf32>
      tpu.vector_store %arg7[%c0_29, %59, %c0_30], %62 {strides = array<i32>} : memref<1x128x128xf32, #tpu.memory_space<vmem>>, vector<1x8x128xf32>,
      scf.yield %58 : vector<8x128xf32>
    }
    %c16_i32_20 = arith.constant 16 : i32
    %c0_21 = arith.constant 0 : index
    %c0_22 = arith.constant 0 : index
    %20 = vector.load %arg8[%c0_21, %c0_22] : memref<8x128xf32, #tpu.memory_space<vmem>>, vector<8x128xf32>
    tpu.vector_store %arg8[%c0_21, %c0_22], %19 {strides = array<i32>} : memref<8x128xf32, #tpu.memory_space<vmem>>, vector<8x128xf32>,
    return
  }
  func.func @transform_0(%arg0: i32, %arg1: i32) -> (i32, i32, i32) {
    %c1_i32 = arith.constant 1 : i32
    %0 = arith.subi %c1_i32, %arg0 : i32
    %1 = arith.muli %0, %arg1 : i32
    %c0_i32 = arith.constant 0 : i32
    %2 = arith.subi %c0_i32, %arg1 : i32
    %3 = arith.muli %arg0, %2 : i32
    %4 = arith.addi %1, %3 : i32
    %c0_i32_0 = arith.constant 0 : i32
    %c0_i32_1 = arith.constant 0 : i32
    %c0_i32_2 = arith.constant 0 : i32
    return %4, %c0_i32_0, %c0_i32_1 : i32, i32, i32
  }
  func.func @transform_1(%arg0: i32, %arg1: i32) -> (i32, i32, i32) {
    %c0_i32 = arith.constant 0 : i32
    %c0_i32_0 = arith.constant 0 : i32
    %c0_i32_1 = arith.constant 0 : i32
    return %arg0, %c0_i32, %c0_i32_0 : i32, i32, i32
  }
  func.func @transform_2(%arg0: i32, %arg1: i32) -> (i32, i32, i32) {
    %c0_i32 = arith.constant 0 : i32
    %c0_i32_0 = arith.constant 0 : i32
    %c0_i32_1 = arith.constant 0 : i32
    return %arg0, %c0_i32, %c0_i32_0 : i32, i32, i32
  }
  func.func @transform_3(%arg0: i32, %arg1: i32) -> (i32, i32, i32) {
    %c0_i32 = arith.constant 0 : i32
    %c0_i32_0 = arith.constant 0 : i32
    %c0_i32_1 = arith.constant 0 : i32
    return %arg0, %c0_i32, %c0_i32_0 : i32, i32, i32
  }
  func.func @transform_4(%arg0: i32, %arg1: i32) -> (i32, i32, i32) {
    %c0_i32 = arith.constant 0 : i32
    %c0_i32_0 = arith.constant 0 : i32
    %c0_i32_1 = arith.constant 0 : i32
    return %arg0, %c0_i32, %c0_i32_0 : i32, i32, i32
  }
  func.func @transform_5(%arg0: i32, %arg1: i32) -> (i32, i32, i32) {
    %c1_i32 = arith.constant 1 : i32
    %0 = arith.subi %c1_i32, %arg0 : i32
    %1 = arith.muli %0, %arg1 : i32
    %c0_i32 = arith.constant 0 : i32
    %2 = arith.subi %c0_i32, %arg1 : i32
    %3 = arith.muli %arg0, %2 : i32
    %4 = arith.addi %1, %3 : i32
    %c0_i32_0 = arith.constant 0 : i32
    %c0_i32_1 = arith.constant 0 : i32
    return %4, %c0_i32_0, %arg0 : i32, i32, i32
  }
}

module attributes {stable_mosaic.version = 11 : i64} {
  func.func @_gru_dir_kernel(%arg0: i32, %arg1: i32, %arg2: memref<1x128x256xf32, #tpu.memory_space<vmem>>, %arg3: memref<1x256x384xf32, #tpu.memory_space<vmem>>, %arg4: memref<1x1x384xf32, #tpu.memory_space<vmem>>, %arg5: memref<1x128x384xf32, #tpu.memory_space<vmem>>, %arg6: memref<1x1x128xf32, #tpu.memory_space<vmem>>, %arg7: memref<1x128x128xf32, #tpu.memory_space<vmem>>, %arg8: memref<8x128xf32, #tpu.memory_space<vmem>>, %arg9: memref<128x384xf32, #tpu.memory_space<vmem>>) attributes {dimension_semantics = [#tpu.dimension_semantics<parallel>, #tpu.dimension_semantics<arbitrary>], iteration_bounds = array<i64: 2, 1>, scalar_prefetch = 0 : i64, scratch_operands = 2 : i64, tpu.core_type = #tpu.core_type<tc>, window_params = [{transform_indices = @transform_0, window_bounds = array<i64: 1, 128, 256>}, {transform_indices = @transform_1, window_bounds = array<i64: 1, 256, 384>}, {transform_indices = @transform_2, window_bounds = array<i64: 1, 1, 384>}, {transform_indices = @transform_3, window_bounds = array<i64: 1, 128, 384>}, {transform_indices = @transform_4, window_bounds = array<i64: 1, 1, 128>}, {transform_indices = @transform_5, window_bounds = array<i64: 1, 128, 128>}]} {
    %c0_i32 = arith.constant 0 : i32
    %0 = arith.cmpi eq, %arg1, %c0_i32 : i32
    %1 = arith.extui %0 : i1 to i32
    %c0_i32_0 = arith.constant 0 : i32
    %2 = arith.cmpi ne, %1, %c0_i32_0 : i32
    scf.if %2 {
      %cst_23 = arith.constant 0.000000e+00 : f32
      %21 = vector.broadcast %cst_23 : f32 to vector<8x128xf32>
      %c0_24 = arith.constant 0 : index
      %c0_25 = arith.constant 0 : index
      %22 = vector.load %arg8[%c0_24, %c0_25] : memref<8x128xf32, #tpu.memory_space<vmem>>, vector<8x128xf32>
      tpu.vector_store %arg8[%c0_24, %c0_25], %21 {strides = array<i32>} : memref<8x128xf32, #tpu.memory_space<vmem>>, vector<8x128xf32>,
    } else {
    }
    %c0 = arith.constant 0 : index
    %c0_1 = arith.constant 0 : index
    %c0_2 = arith.constant 0 : index
    %3 = vector.load %arg2[%c0, %c0_1, %c0_2] : memref<1x128x256xf32, #tpu.memory_space<vmem>>, vector<1x128x256xf32>
    %4 = vector.shape_cast %3 : vector<1x128x256xf32> to vector<128x256xf32>
    %c0_3 = arith.constant 0 : index
    %c0_4 = arith.constant 0 : index
    %c0_5 = arith.constant 0 : index
    %5 = vector.load %arg3[%c0_3, %c0_4, %c0_5] : memref<1x256x384xf32, #tpu.memory_space<vmem>>, vector<1x256x384xf32>
    %6 = vector.shape_cast %5 : vector<1x256x384xf32> to vector<256x384xf32>
    %cst = arith.constant dense<0.000000e+00> : vector<128x384xf32>
    %7 = tpu.matmul %4, %6, %cst {dimension_numbers = #tpu.dot_dimension_numbers<[1], [0], [0], [1], [0, 0, 1, 1], [], []>} : vector<128x256xf32>, vector<256x384xf32>, vector<128x384xf32> -> vector<128x384xf32>
    %c0_6 = arith.constant 0 : index
    %c0_7 = arith.constant 0 : index
    %c0_8 = arith.constant 0 : index
    %8 = vector.load %arg4[%c0_6, %c0_7, %c0_8] : memref<1x1x384xf32, #tpu.memory_space<vmem>>, vector<1x1x384xf32>
    %9 = vector.shape_cast %8 : vector<1x1x384xf32> to vector<1x384xf32>
    %10 = vector.broadcast %9 : vector<1x384xf32> to vector<128x384xf32>
    %11 = arith.addf %7, %10 : vector<128x384xf32>
    %c0_9 = arith.constant 0 : index
    %c0_10 = arith.constant 0 : index
    %12 = vector.load %arg9[%c0_9, %c0_10] : memref<128x384xf32, #tpu.memory_space<vmem>>, vector<128x384xf32>
    tpu.vector_store %arg9[%c0_9, %c0_10], %11 {strides = array<i32>} : memref<128x384xf32, #tpu.memory_space<vmem>>, vector<128x384xf32>,
    %c0_11 = arith.constant 0 : index
    %c0_12 = arith.constant 0 : index
    %c0_13 = arith.constant 0 : index
    %13 = vector.load %arg5[%c0_11, %c0_12, %c0_13] : memref<1x128x384xf32, #tpu.memory_space<vmem>>, vector<1x128x384xf32>
    %14 = vector.shape_cast %13 : vector<1x128x384xf32> to vector<128x384xf32>
    %c0_14 = arith.constant 0 : index
    %c0_15 = arith.constant 0 : index
    %c0_16 = arith.constant 0 : index
    %15 = vector.load %arg6[%c0_14, %c0_15, %c0_16] : memref<1x1x128xf32, #tpu.memory_space<vmem>>, vector<1x1x128xf32>
    %16 = vector.shape_cast %15 : vector<1x1x128xf32> to vector<1x128xf32>
    %c0_17 = arith.constant 0 : index
    %c0_18 = arith.constant 0 : index
    %17 = vector.load %arg8[%c0_17, %c0_18] : memref<8x128xf32, #tpu.memory_space<vmem>>, vector<8x128xf32>
    %c0_i32_19 = arith.constant 0 : i32
    %c16_i32 = arith.constant 16 : i32
    %18 = arith.addi %c0_i32_19, %c16_i32 : i32
    %c1_i32 = arith.constant 1 : i32
    %19 = scf.for %arg10 = %c0_i32_19 to %18 step %c1_i32 iter_args(%arg11 = %17) -> (vector<8x128xf32>)  : i32 {
      %c1_i32_23 = arith.constant 1 : i32
      %21 = arith.subi %c1_i32_23, %arg0 : i32
      %22 = arith.muli %21, %arg10 : i32
      %c15_i32 = arith.constant 15 : i32
      %23 = arith.subi %c15_i32, %arg10 : i32
      %24 = arith.muli %arg0, %23 : i32
      %25 = arith.addi %22, %24 : i32
      %c8_i32 = arith.constant 8 : i32
      %26 = arith.muli %25, %c8_i32 : i32
      %27 = tpu.assume_multiple %26, 8 : i32
      %28 = arith.index_cast %27 : i32 to index
      %c0_24 = arith.constant 0 : index
      %29 = vector.load %arg9[%28, %c0_24] : memref<128x384xf32, #tpu.memory_space<vmem>>, vector<8x384xf32>
      %cst_25 = arith.constant dense<0.000000e+00> : vector<8x384xf32>
      %30 = tpu.matmul %arg11, %14, %cst_25 {dimension_numbers = #tpu.dot_dimension_numbers<[1], [0], [0], [1], [0, 0, 1, 1], [], []>} : vector<8x128xf32>, vector<128x384xf32>, vector<8x384xf32> -> vector<8x384xf32>
      %31 = vector.extract_strided_slice %29 {offsets = [0, 0], sizes = [8, 128], strides = [1, 1]} : vector<8x384xf32> to vector<8x128xf32>
      %32 = vector.extract_strided_slice %30 {offsets = [0, 0], sizes = [8, 128], strides = [1, 1]} : vector<8x384xf32> to vector<8x128xf32>
      %33 = arith.addf %31, %32 : vector<8x128xf32>
      %34 = arith.negf %33 : vector<8x128xf32>
      %35 = math.exp %34 : vector<8x128xf32>
      %cst_26 = arith.constant 1.000000e+00 : f32
      %36 = vector.broadcast %cst_26 : f32 to vector<8x128xf32>
      %37 = arith.addf %36, %35 : vector<8x128xf32>
      %38 = arith.divf %36, %37 : vector<8x128xf32>
      %39 = vector.extract_strided_slice %29 {offsets = [0, 128], sizes = [8, 128], strides = [1, 1]} : vector<8x384xf32> to vector<8x128xf32>
      %40 = vector.extract_strided_slice %30 {offsets = [0, 128], sizes = [8, 128], strides = [1, 1]} : vector<8x384xf32> to vector<8x128xf32>
      %41 = arith.addf %39, %40 : vector<8x128xf32>
      %42 = arith.negf %41 : vector<8x128xf32>
      %43 = math.exp %42 : vector<8x128xf32>
      %cst_27 = arith.constant 1.000000e+00 : f32
      %44 = vector.broadcast %cst_27 : f32 to vector<8x128xf32>
      %45 = arith.addf %44, %43 : vector<8x128xf32>
      %46 = arith.divf %44, %45 : vector<8x128xf32>
      %47 = vector.extract_strided_slice %29 {offsets = [0, 256], sizes = [8, 128], strides = [1, 1]} : vector<8x384xf32> to vector<8x128xf32>
      %48 = vector.extract_strided_slice %30 {offsets = [0, 256], sizes = [8, 128], strides = [1, 1]} : vector<8x384xf32> to vector<8x128xf32>
      %49 = vector.broadcast %16 : vector<1x128xf32> to vector<8x128xf32>
      %50 = arith.addf %48, %49 : vector<8x128xf32>
      %51 = arith.mulf %38, %50 : vector<8x128xf32>
      %52 = arith.addf %47, %51 : vector<8x128xf32>
      %53 = math.tanh %52 : vector<8x128xf32>
      %cst_28 = arith.constant 1.000000e+00 : f32
      %54 = vector.broadcast %cst_28 : f32 to vector<8x128xf32>
      %55 = arith.subf %54, %46 : vector<8x128xf32>
      %56 = arith.mulf %55, %53 : vector<8x128xf32>
      %57 = arith.mulf %46, %arg11 : vector<8x128xf32>
      %58 = arith.addf %56, %57 : vector<8x128xf32>
      %c0_29 = arith.constant 0 : index
      %59 = arith.index_cast %27 : i32 to index
      %c0_30 = arith.constant 0 : index
      %60 = vector.load %arg7[%c0_29, %59, %c0_30] : memref<1x128x128xf32, #tpu.memory_space<vmem>>, vector<1x8x128xf32>
      %61 = vector.shape_cast %60 : vector<1x8x128xf32> to vector<8x128xf32>
      %62 = vector.shape_cast %58 : vector<8x128xf32> to vector<1x8x128xf32>
      tpu.vector_store %arg7[%c0_29, %59, %c0_30], %62 {strides = array<i32>} : memref<1x128x128xf32, #tpu.memory_space<vmem>>, vector<1x8x128xf32>,
      scf.yield %58 : vector<8x128xf32>
    }
    %c16_i32_20 = arith.constant 16 : i32
    %c0_21 = arith.constant 0 : index
    %c0_22 = arith.constant 0 : index
    %20 = vector.load %arg8[%c0_21, %c0_22] : memref<8x128xf32, #tpu.memory_space<vmem>>, vector<8x128xf32>
    tpu.vector_store %arg8[%c0_21, %c0_22], %19 {strides = array<i32>} : memref<8x128xf32, #tpu.memory_space<vmem>>, vector<8x128xf32>,
    return
  }
  func.func @transform_0(%arg0: i32, %arg1: i32) -> (i32, i32, i32) {
    %c1_i32 = arith.constant 1 : i32
    %0 = arith.subi %c1_i32, %arg0 : i32
    %1 = arith.muli %0, %arg1 : i32
    %c0_i32 = arith.constant 0 : i32
    %2 = arith.subi %c0_i32, %arg1 : i32
    %3 = arith.muli %arg0, %2 : i32
    %4 = arith.addi %1, %3 : i32
    %c0_i32_0 = arith.constant 0 : i32
    %c0_i32_1 = arith.constant 0 : i32
    %c0_i32_2 = arith.constant 0 : i32
    return %4, %c0_i32_0, %c0_i32_1 : i32, i32, i32
  }
  func.func @transform_1(%arg0: i32, %arg1: i32) -> (i32, i32, i32) {
    %c0_i32 = arith.constant 0 : i32
    %c0_i32_0 = arith.constant 0 : i32
    %c0_i32_1 = arith.constant 0 : i32
    return %arg0, %c0_i32, %c0_i32_0 : i32, i32, i32
  }
  func.func @transform_2(%arg0: i32, %arg1: i32) -> (i32, i32, i32) {
    %c0_i32 = arith.constant 0 : i32
    %c0_i32_0 = arith.constant 0 : i32
    %c0_i32_1 = arith.constant 0 : i32
    return %arg0, %c0_i32, %c0_i32_0 : i32, i32, i32
  }
  func.func @transform_3(%arg0: i32, %arg1: i32) -> (i32, i32, i32) {
    %c0_i32 = arith.constant 0 : i32
    %c0_i32_0 = arith.constant 0 : i32
    %c0_i32_1 = arith.constant 0 : i32
    return %arg0, %c0_i32, %c0_i32_0 : i32, i32, i32
  }
  func.func @transform_4(%arg0: i32, %arg1: i32) -> (i32, i32, i32) {
    %c0_i32 = arith.constant 0 : i32
    %c0_i32_0 = arith.constant 0 : i32
    %c0_i32_1 = arith.constant 0 : i32
    return %arg0, %c0_i32, %c0_i32_0 : i32, i32, i32
  }
  func.func @transform_5(%arg0: i32, %arg1: i32) -> (i32, i32, i32) {
    %c1_i32 = arith.constant 1 : i32
    %0 = arith.subi %c1_i32, %arg0 : i32
    %1 = arith.muli %0, %arg1 : i32
    %c0_i32 = arith.constant 0 : i32
    %2 = arith.subi %c0_i32, %arg1 : i32
    %3 = arith.muli %arg0, %2 : i32
    %4 = arith.addi %1, %3 : i32
    %c0_i32_0 = arith.constant 0 : i32
    %c0_i32_1 = arith.constant 0 : i32
    return %4, %c0_i32_0, %arg0 : i32, i32, i32
  }
}

module attributes {stable_mosaic.version = 11 : i64} {
  func.func @_matmul_bias_kernel(%arg0: i32, %arg1: memref<128x256xf32, #tpu.memory_space<vmem>>, %arg2: memref<256x128xf32, #tpu.memory_space<vmem>>, %arg3: memref<1x128xf32, #tpu.memory_space<vmem>>, %arg4: memref<128x128xf32, #tpu.memory_space<vmem>>) attributes {dimension_semantics = [#tpu.dimension_semantics<parallel>], iteration_bounds = array<i64: 1>, scalar_prefetch = 0 : i64, scratch_operands = 0 : i64, tpu.core_type = #tpu.core_type<tc>, window_params = [{transform_indices = @transform_0, window_bounds = array<i64: 128, 256>}, {pipeline_mode = #tpu.pipeline_mode<synchronous>, transform_indices = @transform_1, window_bounds = array<i64: 256, 128>}, {pipeline_mode = #tpu.pipeline_mode<synchronous>, transform_indices = @transform_2, window_bounds = array<i64: 1, 128>}, {transform_indices = @transform_3, window_bounds = array<i64: 128, 128>}]} {
    %c0 = arith.constant 0 : index
    %c0_0 = arith.constant 0 : index
    %0 = vector.load %arg1[%c0, %c0_0] : memref<128x256xf32, #tpu.memory_space<vmem>>, vector<128x256xf32>
    %c0_1 = arith.constant 0 : index
    %c0_2 = arith.constant 0 : index
    %1 = vector.load %arg2[%c0_1, %c0_2] : memref<256x128xf32, #tpu.memory_space<vmem>>, vector<256x128xf32>
    %cst = arith.constant dense<0.000000e+00> : vector<128x128xf32>
    %2 = tpu.matmul %0, %1, %cst {dimension_numbers = #tpu.dot_dimension_numbers<[1], [0], [0], [1], [0, 0, 1, 1], [], []>} : vector<128x256xf32>, vector<256x128xf32>, vector<128x128xf32> -> vector<128x128xf32>
    %c0_3 = arith.constant 0 : index
    %c0_4 = arith.constant 0 : index
    %3 = vector.load %arg3[%c0_3, %c0_4] : memref<1x128xf32, #tpu.memory_space<vmem>>, vector<1x128xf32>
    %4 = vector.broadcast %3 : vector<1x128xf32> to vector<128x128xf32>
    %5 = arith.addf %2, %4 : vector<128x128xf32>
    %c0_5 = arith.constant 0 : index
    %c0_6 = arith.constant 0 : index
    %6 = vector.load %arg4[%c0_5, %c0_6] : memref<128x128xf32, #tpu.memory_space<vmem>>, vector<128x128xf32>
    tpu.vector_store %arg4[%c0_5, %c0_6], %5 {strides = array<i32>} : memref<128x128xf32, #tpu.memory_space<vmem>>, vector<128x128xf32>,
    return
  }
  func.func @transform_0(%arg0: i32) -> (i32, i32) {
    %c0_i32 = arith.constant 0 : i32
    %c0_i32_0 = arith.constant 0 : i32
    return %arg0, %c0_i32 : i32, i32
  }
  func.func @transform_1(%arg0: i32) -> (i32, i32) {
    %c0_i32 = arith.constant 0 : i32
    %c0_i32_0 = arith.constant 0 : i32
    %c0_i32_1 = arith.constant 0 : i32
    return %c0_i32, %c0_i32_0 : i32, i32
  }
  func.func @transform_2(%arg0: i32) -> (i32, i32) {
    %c0_i32 = arith.constant 0 : i32
    %c0_i32_0 = arith.constant 0 : i32
    %c0_i32_1 = arith.constant 0 : i32
    return %c0_i32, %c0_i32_0 : i32, i32
  }
  func.func @transform_3(%arg0: i32) -> (i32, i32) {
    %c0_i32 = arith.constant 0 : i32
    %c0_i32_0 = arith.constant 0 : i32
    return %arg0, %c0_i32 : i32, i32
  }
}

</mosaic_0001>

<bundles_post_ra>
// kernel: cnn_gru_forward.4
= control target key start
LH: loop header
LB: loop body
LE: loop exit
PB: predicated region body
PF: predicated region fallthrough
CT: control target
= control target key end

     0   :  { %s743_s15 = smov 0   ;;  %s745_s16 = smov 0   ;;  %s905_s0 = inlined_call_operand.vmem [shape: f32[2,16,128], index: 0, kind: input, shape index: {}]   ;;  %s906_s1 = inlined_call_operand.vmem [shape: f32[2,3,128,128], index: 1, kind: input, shape index: {}]   ;;  %s907_s2 = inlined_call_operand.vmem [shape: f32[2,1,128], index: 2, kind: input, shape index: {}]   ;;  %s908_s3 = inlined_call_operand.vmem [shape: f32[2,1,128], index: 3, kind: input, shape index: {}]   ;;  %s909_s4 = inlined_call_operand.vmem [shape: f32[2,16,128], index: 4, kind: output, shape index: {}]  }
   0x1   :  { %s747_s17 = smov 0   ;;  %s749_s18 = smov 0  }
   0x2   :  { %s751_s19 = smov 0  }
   0x3 LB: > { %s23_s20 = sadd.s32 1, %s707_s17  ;;  %s26_s21 = sadd.s32 1, %s711_s18  ;;  %s715_s19 = sphi %s751_s19, %s14_s19   ;;  %s711_s18 = sphi %s749_s18, %s915_s18   ;;  %s707_s17 = sphi %s747_s17, %s914_s17   ;;  %s703_s16 = sphi %s745_s16, %s913_s16   ;;  %s699_s15 = sphi %s743_s15, %s912_s15  }
   0x4   : > { %p24_p0 = scmp.ge.s32.totalorder %s23_s20, 2  ;;  %p568_p1 = scmp.ge.s32.totalorder %s715_s19, 1 }
   0x5   : > { %p200_p2 = scmp.lt.s32.totalorder %s715_s19, 5 }
   0x6   : > { %s917_s20 = smov (%p24_p0, %s23_s20), 0  ;;  %s919_s21 = smov (!%p24_p0, %s26_s21), %s711_s18 }
   0x7   : > { %p201_p3 = pnand %p568_p1, %p200_p2  ;;  %p28_p4 = scmp.ge.s32.totalorder %s919_s21, 2 }
   0x8   : > { %p237_p5 = scmp.lt.s32.totalorder (!%p201_p3), %s703_s16, 1  ;;  %p242_p6 = scmp.lt.s32.totalorder (!%p201_p3), %s699_s15, 1 }
   0x9   : > { %s921_s21 = smov (%p28_p4, %s919_s21), 0  ;;  %204 = sbr.rel (%p201_p3) target bundleno = 231 (0xe7), region = 36 }
   0xa   : > { %p258_p7 = scmp.lt.s32.totalorder (!%p201_p3), %s699_s15, 0  ;;  %s259_s22 = ssub.s32 (!%p201_p3), 0, %s699_s15 }
   0xb   : > { %s574_s25 = smin.u32 (!%p201_p3), %s699_s15, %s259_s22  ;;  %p577_p10 = scmp.ne.s32.totalorder (!%p201_p3), %s699_s15, 0 }
   0xc   : > { %s261_s22 = sand.u32 (!%p201_p3), 1, %s574_s25  }
   0xd   : > { %s262_s26 = ssub.s32 (!%p201_p3), 0, %s261_s22 }
   0xe   : > { %s923_s16 = smov (!%p237_p5, %s703_s16), 1  ;;  %s925_s26 = smov (!%p258_p7, %s262_s26), %s261_s22 }
   0xf   : > { %s779_s23 = scalar_select %p242_p6, %s699_s15, 1 }
  0x10   : > { %s615_s24 = sshll.u32 %s923_s16, 4  ;;  %p576_p8 = scmp.lt.s32.totalorder %s925_s26, 0 }
  0x11   : > { %s241_s28 = scalar_lea.vmem %s905_s0, %s615_s24  ;;  %s633_s29 = smul.u32 384, %s779_s23 }
  0x12   : > { %s249_s6 = scalar_lea.vmem %s907_s2, %s779_s23  ;;  %s252_s9 = scalar_lea.vmem %s908_s3, %s779_s23 }
  0x13   : > { %s797_s12 = scalar_lea.vmem %s906_s1, %s633_s29  ;;  %s802_s16 = scalar_lea.vmem %s909_s4, %s615_s24 }
  0x14   : > { %s268_s27 = sadd.s32 2, %s925_s26  ;;  %274 = sbr.rel (%p577_p10) target bundleno = 34 (0x22), region = 40 }
  0x15   : > { %s927_s27 = smov (!%p576_p8, %s268_s27), %s925_s26 }
  0x16   : > { %p270_p9 = scmp.eq.s32.totalorder %s927_s27, 0 }
  0x19   : > { %v717_v0 = vmov 0.0   ;;  %v281_v1 = vld [vmem:[%s241_s28] sm:$0xff]  ;;  %v282_v2 = vld [vmem:[%s241_s28 + $0x8] sm:$0xff] }
  0x1a   : > { %275 = vst [vmem:[#allocation2] sm:$0xff] %v717_v0 }
  0x1b   : > { %276 = vst [vmem:[#allocation2 + $0x8] sm:$0xff] %v717_v0 }
  0x1c   : > { %277 = vst [vmem:[#allocation2 + $0x10] sm:$0x3] %v717_v0 }
  0x1d   : > { %278 = vst [vmem:[#allocation3] sm:$0xff] %v717_v0 }
  0x1e   : > { %279 = vst [vmem:[#allocation3 + $0x8] sm:$0xff] %v717_v0 }
  0x1f   : > { %280 = vst [vmem:[#allocation3 + $0x10] sm:$0x3] %v717_v0 }
  0x20   : > { %283 = vst [vmem:[#allocation2 + $0x1] sm:$0xff] %v281_v1 }
  0x21   : > { %284 = vst [vmem:[#allocation2 + $0x9] sm:$0xff] %v282_v2 }
  0x22 PF: > { %v609_v3 = vld [vmem:[%s797_s12 + $0x178] sm:$0xff]  ;;  %v608_v4 = vld [vmem:[%s797_s12 + $0x170] sm:$0xff]  ;;  %v607_v8 = vld [vmem:[%s797_s12 + $0x168] sm:$0xff]  ;;  %s291_s24 = scalar_select %p270_p9, 1, 0  ;;  %vm404_vm1 = vcmask 1045504  }
  0x23   : > { %v593_v5 = vld [vmem:[%s797_s12 + $0xf8] sm:$0xff]  ;;  %412 = vmatpush.msra.mxu2 %v609_v3  ;;  %v592_v7 = vld [vmem:[%s797_s12 + $0xf0] sm:$0xff]  ;;  %v591_v10 = vld [vmem:[%s797_s12 + $0xe8] sm:$0xff]  ;;  %vm333_vm2 = vcmask 1046528   ;;  %p610_p11 = scmp.ne.s32.totalorder %s927_s27, 0 }
  0x24   : > { %341 = vmatpush.msra.mxu0 %v593_v5  ;;  %v312_v6 = vld [vmem:[%s797_s12 + $0x78] sm:$0xff]  ;;  %617 = vmatpush.msra.mxu3 %v593_v5  ;;  %v311_v9 = vld [vmem:[%s797_s12 + $0x70] sm:$0xff]  ;;  %v310_v11 = vld [vmem:[%s797_s12 + $0x68] sm:$0xff]  ;;  %v292_v33 = vstv %s291_s24 }
  0x25   : > { %364 = vmatpush.msra.mxu1 %v312_v6  ;;  %413 = vmatpush.msra.mxu2 %v608_v4  ;;  %v606_v12 = vld [vmem:[%s797_s12 + $0x160] sm:$0xff]  ;;  %v605_v15 = vld [vmem:[%s797_s12 + $0x158] sm:$0xff]  ;;  %v604_v18 = vld [vmem:[%s797_s12 + $0x150] sm:$0xff]  ;;  %vm845_vm0 = vcmp.eq.s32.totalorder %v292_v33, 1 }
  0x26   : > { %342 = vmatpush.msra.mxu0 %v592_v7  ;;  %618 = vmatpush.msra.mxu3 %v592_v7  ;;  %v590_v13 = vld [vmem:[%s797_s12 + $0xe0] sm:$0xff]  ;;  %v589_v16 = vld [vmem:[%s797_s12 + $0xd8] sm:$0xff]  ;;  %v588_v19 = vld [vmem:[%s797_s12 + $0xd0] sm:$0xff] }
  0x27   : > { %365 = vmatpush.msra.mxu1 %v311_v9  ;;  %414 = vmatpush.msra.mxu2 %v607_v8  ;;  %v309_v14 = vld [vmem:[%s797_s12 + $0x60] sm:$0xff]  ;;  %v308_v17 = vld [vmem:[%s797_s12 + $0x58] sm:$0xff]  ;;  %v307_v20 = vld [vmem:[%s797_s12 + $0x50] sm:$0xff] }
  0x28   : > { %343 = vmatpush.msra.mxu0 %v591_v10  ;;  %619 = vmatpush.msra.mxu3 %v591_v10  ;;  %v603_v21 = vld [vmem:[%s797_s12 + $0x148] sm:$0xff]  ;;  %v602_v24 = vld [vmem:[%s797_s12 + $0x140] sm:$0xff]  ;;  %v601_v27 = vld [vmem:[%s797_s12 + $0x138] sm:$0xff] }
  0x29   : > { %366 = vmatpush.msra.mxu1 %v310_v11  ;;  %415 = vmatpush.msra.mxu2 %v606_v12  ;;  %v587_v22 = vld [vmem:[%s797_s12 + $0xc8] sm:$0xff]  ;;  %v586_v25 = vld [vmem:[%s797_s12 + $0xc0] sm:$0xff]  ;;  %v585_v28 = vld [vmem:[%s797_s12 + $0xb8] sm:$0xff] }
  0x2a   : > { %344 = vmatpush.msra.mxu0 %v590_v13  ;;  %620 = vmatpush.msra.mxu3 %v590_v13  ;;  %v306_v23 = vld [vmem:[%s797_s12 + $0x48] sm:$0xff]  ;;  %v305_v26 = vld [vmem:[%s797_s12 + $0x40] sm:$0xff]  ;;  %v304_v29 = vld [vmem:[%s797_s12 + $0x38] sm:$0xff] }
  0x2b   : > { %367 = vmatpush.msra.mxu1 %v309_v14  ;;  %416 = vmatpush.msra.mxu2 %v605_v15  ;;  %v600_v30 = vld [vmem:[%s797_s12 + $0x130] sm:$0xff]  ;;  %v599_v31 = vld [vmem:[%s797_s12 + $0x128] sm:$0xff]  ;;  %v285_v37 = vld [vmem:[#allocation2] sm:$0xff] }
  0x2c   : > { %345 = vmatpush.msra.mxu0 %v589_v16  ;;  %621 = vmatpush.msra.mxu3 %v589_v16  ;;  %v584_v32 = vld [vmem:[%s797_s12 + $0xb0] sm:$0xff]  ;;  %v583_v35 = vld [vmem:[%s797_s12 + $0xa8] sm:$0xff]  ;;  %v288_v39 = vld [vmem:[#allocation3] sm:$0xff] }
  0x2d   : > { %368 = vmatpush.msra.mxu1 %v308_v17  ;;  %417 = vmatpush.msra.mxu2 %v604_v18  ;;  %v303_v34 = vld [vmem:[%s797_s12 + $0x30] sm:$0xff]  ;;  %v302_v36 = vld [vmem:[%s797_s12 + $0x28] sm:$0xff]  ;;  %v289_v40 = vld [vmem:[#allocation3 + $0x8] sm:$0xff]  ;;  %v294_v47 = vsel %vm845_vm0, %v285_v37, %v288_v39 }
  0x2e   : > { %346 = vmatpush.msra.mxu0 %v588_v19  ;;  %622 = vmatpush.msra.mxu3 %v588_v19  ;;  %v286_v38 = vld [vmem:[#allocation2 + $0x8] sm:$0xff]  ;;  %v598_v42 = vld [vmem:[%s797_s12 + $0x120] sm:$0xff]  ;;  %v597_v44 = vld [vmem:[%s797_s12 + $0x118] sm:$0xff]  ;;  %v405_v55 = vrot.slane %v294_v47, 2  ;;  %v334_v60 = vrot.slane %v294_v47, 1 }
  0x2f   : > { %369 = vmatpush.msra.mxu1 %v307_v20  ;;  %418 = vmatpush.msra.mxu2 %v603_v21  ;;  %v582_v43 = vld [vmem:[%s797_s12 + $0xa0] sm:$0xff]  ;;  %v581_v46 = vld [vmem:[%s797_s12 + $0x98] sm:$0xff]  ;;  %v295_v48 = vsel %vm845_vm0, %v286_v38, %v289_v40  ;;  %v287_v49 = vld [vmem:[#allocation2 + $0x10] sm:$0x3] }
  0x30   : > { %347 = vmatpush.msra.mxu0 %v587_v22  ;;  %623 = vmatpush.msra.mxu3 %v587_v22  ;;  %v301_v45 = vld [vmem:[%s797_s12 + $0x20] sm:$0xff]  ;;  %v290_v50 = vld [vmem:[#allocation3 + $0x10] sm:$0x3]  ;;  %v300_v51 = vld [vmem:[%s797_s12 + $0x18] sm:$0xff]  ;;  %v406_v56 = vrot.slane %v295_v48, 2  ;;  %v335_v61 = vrot.slane %v295_v48, 1 }
  0x31   : > { %370 = vmatpush.msra.mxu1 %v306_v23  ;;  %419 = vmatpush.msra.mxu2 %v602_v24  ;;  %v596_v52 = vld [vmem:[%s797_s12 + $0x110] sm:$0xff]  ;;  %v296_v57 = vsel %vm845_vm0, %v287_v49, %v290_v50  ;;  %v595_v58 = vld [vmem:[%s797_s12 + $0x108] sm:$0xff]  ;;  %v594_v63 = vld [vmem:[%s797_s12 + $0x100] sm:$0xff] }
  0x32   : > { %348 = vmatpush.msra.mxu0 %v586_v25  ;;  %624 = vmatpush.msra.mxu3 %v586_v25  ;;  %v580_v53 = vld [vmem:[%s797_s12 + $0x90] sm:$0xff]  ;;  %v579_v59 = vld [vmem:[%s797_s12 + $0x88] sm:$0xff]  ;;  %v578_v0 = vld [vmem:[%s797_s12 + $0x80] sm:$0xff]  ;;  %v337_v1 = vrot.slane %v296_v57, 1  ;;  %v407_v2 = vsel %vm404_vm1, %v405_v55, %v406_v56  ;;  %v336_v4 = vsel %vm333_vm2, %v334_v60, %v335_v61  ;;  %v408_v6 = vrot.slane %v296_v57, 2 }
  0x33   : > { %371 = vmatpush.msra.mxu1 %v305_v26  ;;  %420 = vmatpush.msra.mxu2 %v601_v27  ;;  %v299_v54 = vld [vmem:[%s797_s12 + $0x10] sm:$0xff]  ;;  %v298_v62 = vld [vmem:[%s797_s12 + $0x8] sm:$0xff]  ;;  %v297_v3 = vld [vmem:[%s797_s12] sm:$0xff] }
  0x34   : > { %349 = vmatpush.msra.mxu0 %v585_v28  ;;  %625 = vmatpush.msra.mxu3 %v585_v28  ;;  %v338_v5 = vsel %vm333_vm2, %v335_v61, %v337_v1  ;;  %v409_v7 = vsel %vm404_vm1, %v406_v56, %v408_v6  ;;  %v675_v11 = vld [vmem:[%s249_s6] ss:$0 sm:$0xff] }
  0x35   : > { %372 = vmatpush.msra.mxu1 %v304_v29  ;;  %421 = vmatpush.msra.mxu2 %v600_v30  ;;  %v676_v14 = vld [vmem:[%s252_s9] ss:$0 sm:$0xff] }
  0x36   : > { %350 = vmatpush.msra.mxu0 %v584_v32  ;;  %626 = vmatpush.msra.mxu3 %v584_v32 }
  0x37   : > { %373 = vmatpush.msra.mxu1 %v303_v34  ;;  %422 = vmatpush.msra.mxu2 %v599_v31 }
  0x38   : > { %351 = vmatpush.msra.mxu0 %v583_v35  ;;  %627 = vmatpush.msra.mxu3 %v583_v35 }
  0x39   : > { %374 = vmatpush.msra.mxu1 %v302_v36  ;;  %423 = vmatpush.msra.mxu2 %v598_v42 }
  0x3a   : > { %352 = vmatpush.msra.mxu0 %v582_v43  ;;  %628 = vmatpush.msra.mxu3 %v582_v43 }
  0x3b   : > { %375 = vmatpush.msra.mxu1 %v301_v45  ;;  %424 = vmatpush.msra.mxu2 %v597_v44 }
  0x3c   : > { %353 = vmatpush.msra.mxu0 %v581_v46  ;;  %629 = vmatpush.msra.mxu3 %v581_v46 }
  0x3d   : > { %376 = vmatpush.msra.mxu1 %v300_v51  ;;  %425 = vmatpush.msra.mxu2 %v596_v52 }
  0x3e   : > { %354 = vmatpush.msra.mxu0 %v580_v53  ;;  %630 = vmatpush.msra.mxu3 %v580_v53 }
  0x3f   : > { %377 = vmatpush.msra.mxu1 %v299_v54  ;;  %426 = vmatpush.msra.mxu2 %v595_v58 }
  0x40   : > { %355 = vmatpush.msra.mxu0 %v579_v59  ;;  %631 = vmatpush.msra.mxu3 %v579_v59 }
  0x41   : > { %378 = vmatpush.msra.mxu1 %v298_v62  ;;  %427 = vmatpush.msra.mxu2 %v594_v63 }
  0x42   : > { %356 = vmatpush.msra.mxu0 %v578_v0  ;;  %428 = vmatmul.f32.vlgmr.msra.gmra.mxu2 %v407_v2 }
  0x43   : > { %379 = vmatpush.msra.mxu1 %v297_v3  ;;  %357 = vmatmul.f32.vlgmr.msra.gmra.mxu0 %v336_v4 }
  0x44   : > { %380 = vmatmul.f32.vlgmr.msra.gmra.mxu1 %v294_v47  ;;  %632 = vmatpush.msra.mxu3 %v578_v0 }
  0x45   : > { %360 = vmatmul.f32.vlgmr.msra.gmra.mxu3 %v338_v5 }
  0x4a   : > { %431 = vmatmul.f32.gmra.mxu2 %v409_v7 }
  0x4c   : > { %383 = vmatmul.f32.gmra.mxu1 %v295_v48 }
  0xc0   : > { %v358_v8 = vpop.f32.mrf.mxu0 }
  0xc1   : > { %v381_v9 = vpop.f32.mrf.mxu1 }
  0xc2   : > { %v382_v10 = vadd.f32 %v381_v9, %v358_v8 }
  0xc5   : > { %v429_v12 = vpop.f32.mrf.mxu2 }
  0xc6   : > { %v435_v13 = vadd.f32 %v429_v12, %v382_v10 }
  0xc8   : > { %v441_v15 = vmul.f32 %v675_v11, %v435_v13  ;;  %v361_v16 = vpop.f32.mrf.mxu3 }
  0xc9   : > { %v384_v17 = vpop.f32.mrf.mxu1 }
  0xca   : > { %v447_v18 = vadd.f32 %v676_v14, %v441_v15  ;;  %v385_v19 = vadd.f32 %v384_v17, %v361_v16 }
  0xcc   : > { %v449_v20 = vmax.f32 %v447_v18, 0.0 }
  0xcd   : > { %v432_v21 = vpop.f32.mrf.mxu2 }
  0xce   : > { %v436_v22 = vadd.f32 %v432_v21, %v385_v19 }
  0xd0   : > { %v442_v23 = vmul.f32 %v675_v11, %v436_v22  ;;  %453 = sbr.rel (%p610_p11) target bundleno = 215 (0xd7), region = 44 }
  0xd2   : > { %v448_v24 = vadd.f32 %v676_v14, %v442_v23 }
  0xd4   : > { %v450_v25 = vmax.f32 %v448_v24, 0.0 }
  0xd5   : > { %454 = vst [vmem:[#allocation3 + $0x1] sm:$0xff] %v449_v20 }
  0xd6   : > { %455 = vst [vmem:[#allocation3 + $0x9] sm:$0xff] %v450_v25 }
  0xd7 PF: > { %459 = sbr.rel (%p270_p9) target bundleno = 222 (0xde), region = 48 }
  0xdc   : > { %460 = vst [vmem:[#allocation2 + $0x1] sm:$0xff] %v449_v20 }
  0xdd   : > { %461 = vst [vmem:[#allocation2 + $0x9] sm:$0xff] %v450_v25 }
  0xde PF: > { %p612_p12 = scmp.ne.s32.totalorder %s699_s15, 1 }
  0xe0   : > { %465 = sbr.rel (%p612_p12) target bundleno = 231 (0xe7), region = 52 }
  0xe5   : > { %466 = vst [vmem:[%s802_s16] sm:$0xff] %v449_v20 }
  0xe6   : > { %467 = vst [vmem:[%s802_s16 + $0x8] sm:$0xff] %v450_v25 }
  0xe7 PF: > { %s14_s19 = sadd.s32 1, %s715_s19   ;;  %s912_s15 = smov %s707_s17 }
  0xe8   : > { %p11_p13 = scmp.ge.s32.totalorder %s14_s19, 6   ;;  %s913_s16 = smov %s711_s18 }
  0xe9   : > { %s914_s17 = smov %s917_s20  ;;  %s915_s18 = smov %s921_s21 }
  0xea   :  { %13 = sbr.rel (!%p11_p13) target bundleno = 3 (0x3), region = 93 }

// kernel: cnn_gru_forward.5
= control target key start
LH: loop header
LB: loop body
LE: loop exit
PB: predicated region body
PF: predicated region fallthrough
CT: control target
= control target key end

     0   :  { %s1309_s18 = smov 0   ;;  %s1311_s19 = smov 0   ;;  %s1911_s0 = inlined_call_operand.vmem [shape: f32[1,128,128], index: 0, kind: input, shape index: {}]   ;;  %s1912_s1 = inlined_call_operand.vmem [shape: f32[2,128,384], index: 1, kind: input, shape index: {}]   ;;  %s1913_s2 = inlined_call_operand.vmem [shape: f32[2,1,384], index: 2, kind: input, shape index: {}]   ;;  %s1914_s3 = inlined_call_operand.vmem [shape: f32[2,128,384], index: 3, kind: input, shape index: {}]   ;;  %s1915_s4 = inlined_call_operand.vmem [shape: f32[2,1,128], index: 4, kind: input, shape index: {}]   ;;  %s1916_s5 = inlined_call_operand.vmem [shape: f32[1,128,256], index: 5, kind: output, shape index: {}]  }
   0x1   :  { %s1313_s20 = smov 0   ;;  %s1315_s21 = smov 0  }
   0x2   :  { %s1317_s22 = smov 0  }
   0x3 LB: > { %s1088_s23 = sadd.s32 4294967295, %s1269_s22   ;;  %s27_s24 = sadd.s32 1, %s1265_s21  ;;  %s1269_s22 = sphi %s1317_s22, %s15_s22   ;;  %s1265_s21 = sphi %s1315_s21, %s1963_s21   ;;  %s1261_s20 = sphi %s1313_s20, %s1962_s20   ;;  %s1257_s19 = sphi %s1311_s19, %s1961_s19   ;;  %s1253_s18 = sphi %s1309_s18, %s1960_s18  }
   0x4   : > { %p29_p0 = scmp.ge.s32.totalorder %s27_s24, 2  ;;  %s186_s25 = sadd.s32 1, %s1257_s19 }
   0x5   : > { %p196_p1 = scmp.ne.s32.totalorder %s1257_s19, %s1253_s18  ;;  %p197_p2 = scmp.eq.s32.totalorder %s1088_s23, 1 }
   0x6   : > { %s1965_s24 = smov (%p29_p0, %s27_s24), 0  ;;  %p1093_p4 = scmp.ge.s32.totalorder %s1269_s22, 1 }
   0x7   : > { %p1338_p3 = por %p197_p2, %p196_p1  ;;  %s182_s27 = ssub.s32 %s1265_s21, %s1965_s24 }
   0x8   : > { %p268_p5 = scmp.lt.s32.totalorder %s1269_s22, 3  ;;  %p184_p6 = scmp.eq.s32.totalorder %s182_s27, 0 }
   0xa   : > { %p269_p7 = pnand %p1093_p4, %p268_p5 }
   0xb   : > { %s1347_s28 = scalar_select %p184_p6, %s1257_s19, %s186_s25  }
   0xc   : > { %272 = sbr.rel (%p269_p7) target bundleno = 522 (0x20a), region = 40 }
  0x11   : > { %p332_p8 = scmp.lt.s32.totalorder %s1261_s20, 1  ;;  %s314_s29 = sand.u32 1, %s1253_s18  }
  0x12   : > { %s1350_s30 = sshll.u32 %s314_s29, 7  ;;  %s1794_s27 = smov 0  }
  0x13   : > { %s1353_s6 = scalar_select %p332_p8, %s1261_s20, 1 }
  0x15   : > { %s1154_s7 = smul.u32 384, %s1353_s6  ;;  %s348_s10 = scalar_lea.vmem %s1915_s4, %s1353_s6 }
  0x16   : > { %v1360_v0 = vld [vmem:[%s348_s10] sm:$0x1]  ;;  %s1155_s17 = smul.u32 3, %s1353_s6  ;;  %s1790_s6 = scalar_lea.vmem [#allocation4], %s1350_s30 }
  0x17   : > { %1918 = vst [vmem:[#allocation5_spill] sm:$0xff] %v1360_v0  ;;  %s1365_s13 = scalar_lea.vmem %s1912_s1, %s1154_s7  ;;  %s1370_s16 = scalar_lea.vmem %s1914_s3, %s1154_s7 }
  0x18   : > { %v420_v1 = vld [vmem:[%s1365_s13 + $0x168] sm:$0xff]  ;;  %v1374_v2 = vld [vmem:[%s1370_s16] sm:$0xff]  ;;  %v1380_v4 = vld [vmem:[%s1370_s16 + $0x10] sm:$0xff]  ;;  %s340_s25 = scalar_lea.vmem %s1913_s2, %s1155_s17 }
  0x19   : > { %1919 = vst [vmem:[#allocation6_spill] sm:$0xff] %v1374_v2  ;;  %v1377_v3 = vld [vmem:[%s1370_s16 + $0x8] sm:$0xff]  ;;  %1106 = vmatpush.msra.mxu3 %v420_v1  ;;  %v1383_v5 = vld [vmem:[%s1370_s16 + $0x18] sm:$0xff]  ;;  %v1386_v6 = vld [vmem:[%s1370_s16 + $0x20] sm:$0xff]  ;;  %431 = vmatpush.msra.mxu0 %v420_v1 }
  0x1a   : > { %1920 = vst [vmem:[#allocation7_spill] sm:$0xff] %v1377_v3  ;;  %v1389_v7 = vld [vmem:[%s1370_s16 + $0x28] sm:$0xff]  ;;  %v1392_v8 = vld [vmem:[%s1370_s16 + $0x30] sm:$0xff]  ;;  %v1395_v9 = vld [vmem:[%s1370_s16 + $0x38] sm:$0xff] }
  0x1b   : > { %1921 = vst [vmem:[#allocation8_spill] sm:$0xff] %v1380_v4  ;;  %v1398_v10 = vld [vmem:[%s1370_s16 + $0x40] sm:$0xff]  ;;  %v1401_v11 = vld [vmem:[%s1370_s16 + $0x48] sm:$0xff]  ;;  %v1404_v12 = vld [vmem:[%s1370_s16 + $0x50] sm:$0xff] }
  0x1c   : > { %1922 = vst [vmem:[#allocation9_spill] sm:$0xff] %v1383_v5  ;;  %v1407_v13 = vld [vmem:[%s1370_s16 + $0x58] sm:$0xff]  ;;  %v1410_v14 = vld [vmem:[%s1370_s16 + $0x60] sm:$0xff]  ;;  %v1413_v15 = vld [vmem:[%s1370_s16 + $0x68] sm:$0xff] }
  0x1d   : > { %1923 = vst [vmem:[#allocation10_spill] sm:$0xff] %v1386_v6  ;;  %v1416_v16 = vld [vmem:[%s1370_s16 + $0x70] sm:$0xff]  ;;  %v1419_v17 = vld [vmem:[%s1370_s16 + $0x78] sm:$0xff]  ;;  %v1422_v18 = vld [vmem:[%s1370_s16 + $0x80] sm:$0xff] }
  0x1e   : > { %1924 = vst [vmem:[#allocation11_spill] sm:$0xff] %v1389_v7  ;;  %v1425_v19 = vld [vmem:[%s1370_s16 + $0x88] sm:$0xff]  ;;  %v1428_v20 = vld [vmem:[%s1370_s16 + $0x90] sm:$0xff]  ;;  %v1431_v21 = vld [vmem:[%s1370_s16 + $0x98] sm:$0xff] }
  0x1f   : > { %1925 = vst [vmem:[#allocation12_spill] sm:$0xff] %v1392_v8  ;;  %v1434_v22 = vld [vmem:[%s1370_s16 + $0xa0] sm:$0xff]  ;;  %v1437_v23 = vld [vmem:[%s1370_s16 + $0xa8] sm:$0xff]  ;;  %v1440_v24 = vld [vmem:[%s1370_s16 + $0xb0] sm:$0xff] }
  0x20   : > { %1926 = vst [vmem:[#allocation13_spill] sm:$0xff] %v1395_v9  ;;  %v1443_v25 = vld [vmem:[%s1370_s16 + $0xb8] sm:$0xff]  ;;  %v1446_v26 = vld [vmem:[%s1370_s16 + $0xc0] sm:$0xff]  ;;  %v1449_v27 = vld [vmem:[%s1370_s16 + $0xc8] sm:$0xff] }
  0x21   : > { %1927 = vst [vmem:[#allocation14_spill] sm:$0xff] %v1398_v10  ;;  %v1452_v28 = vld [vmem:[%s1370_s16 + $0xd0] sm:$0xff]  ;;  %v1455_v29 = vld [vmem:[%s1370_s16 + $0xd8] sm:$0xff]  ;;  %v1458_v30 = vld [vmem:[%s1370_s16 + $0xe0] sm:$0xff] }
  0x22   : > { %1928 = vst [vmem:[#allocation15_spill] sm:$0xff] %v1401_v11  ;;  %v1461_v31 = vld [vmem:[%s1370_s16 + $0xe8] sm:$0xff]  ;;  %v1464_v32 = vld [vmem:[%s1370_s16 + $0xf0] sm:$0xff]  ;;  %v1467_v33 = vld [vmem:[%s1370_s16 + $0xf8] sm:$0xff] }
  0x23   : > { %1929 = vst [vmem:[#allocation16_spill] sm:$0xff] %v1404_v12  ;;  %v1470_v34 = vld [vmem:[%s1370_s16 + $0x100] sm:$0xff]  ;;  %v1473_v35 = vld [vmem:[%s1370_s16 + $0x108] sm:$0xff]  ;;  %v1476_v36 = vld [vmem:[%s1370_s16 + $0x110] sm:$0xff] }
  0x24   : > { %1930 = vst [vmem:[#allocation17_spill] sm:$0xff] %v1407_v13  ;;  %v1479_v37 = vld [vmem:[%s1370_s16 + $0x118] sm:$0xff]  ;;  %v1482_v38 = vld [vmem:[%s1370_s16 + $0x120] sm:$0xff]  ;;  %v1485_v39 = vld [vmem:[%s1370_s16 + $0x128] sm:$0xff] }
  0x25   : > { %1931 = vst [vmem:[#allocation18_spill] sm:$0xff] %v1410_v14  ;;  %v1488_v40 = vld [vmem:[%s1370_s16 + $0x130] sm:$0xff]  ;;  %v1491_v41 = vld [vmem:[%s1370_s16 + $0x138] sm:$0xff]  ;;  %v1494_v42 = vld [vmem:[%s1370_s16 + $0x140] sm:$0xff] }
  0x26   : > { %1932 = vst [vmem:[#allocation19_spill] sm:$0xff] %v1413_v15  ;;  %v1497_v43 = vld [vmem:[%s1370_s16 + $0x148] sm:$0xff]  ;;  %v1500_v44 = vld [vmem:[%s1370_s16 + $0x150] sm:$0xff]  ;;  %v1503_v45 = vld [vmem:[%s1370_s16 + $0x158] sm:$0xff] }
  0x27   : > { %1933 = vst [vmem:[#allocation20_spill] sm:$0xff] %v1416_v16  ;;  %v1506_v46 = vld [vmem:[%s1370_s16 + $0x160] sm:$0xff]  ;;  %v1509_v47 = vld [vmem:[%s1370_s16 + $0x168] sm:$0xff]  ;;  %v1512_v48 = vld [vmem:[%s1370_s16 + $0x170] sm:$0xff] }
  0x28   : > { %1934 = vst [vmem:[#allocation21_spill] sm:$0xff] %v1419_v17  ;;  %v1515_v49 = vld [vmem:[%s1370_s16 + $0x178] sm:$0xff]  ;;  %v417_v51 = vld [vmem:[%s1365_s13 + $0x150] sm:$0xff]  ;;  %v1523_v52 = vld [vmem:[%s1365_s13 + $0x160] sm:$0xff] }
  0x29   : > { %1935 = vst [vmem:[#allocation22_spill] sm:$0xff] %v1422_v18  ;;  %v1518_v50 = vld [vmem:[%s1365_s13 + $0x178] sm:$0xff]  ;;  %1107 = vmatpush.msra.mxu3 %v417_v51  ;;  %v1527_v54 = vld [vmem:[%s1365_s13 + $0x148] sm:$0xff]  ;;  %v411_v55 = vld [vmem:[%s1365_s13 + $0x120] sm:$0xff]  ;;  %432 = vmatpush.msra.mxu0 %v417_v51 }
  0x2a   : > { %1936 = vst [vmem:[#allocation23_spill] sm:$0xff] %v1425_v19  ;;  %561 = vmatpush.msra.mxu2 %v1518_v50  ;;  %v414_v53 = vld [vmem:[%s1365_s13 + $0x138] sm:$0xff]  ;;  %v1531_v56 = vld [vmem:[%s1365_s13 + $0x170] sm:$0xff]  ;;  %v408_v59 = vld [vmem:[%s1365_s13 + $0x108] sm:$0xff] }
  0x2b   : > { %1937 = vst [vmem:[#allocation24_spill] sm:$0xff] %v1431_v21  ;;  %1108 = vmatpush.msra.mxu3 %v414_v53  ;;  %v1535_v57 = vld [vmem:[%s1365_s13 + $0x158] sm:$0xff]  ;;  %496 = vmatpush.msra.mxu1 %v1531_v56  ;;  %v1539_v58 = vld [vmem:[%s1365_s13 + $0x130] sm:$0xff]  ;;  %v1544_v60 = vld [vmem:[%s1365_s13 + $0x140] sm:$0xff] }
  0x2c   : > { %1938 = vst [vmem:[#allocation25_spill] sm:$0xff] %v1434_v22  ;;  %562 = vmatpush.msra.mxu2 %v1523_v52  ;;  %433 = vmatpush.msra.mxu0 %v414_v53  ;;  %v1548_v61 = vld [vmem:[%s1365_s13 + $0x118] sm:$0xff]  ;;  %v405_v62 = vld [vmem:[%s1365_s13 + $0xf0] sm:$0xff]  ;;  %v1553_v63 = vld [vmem:[%s1365_s13 + $0x128] sm:$0xff] }
  0x2d   : > { %1109 = vmatpush.msra.mxu3 %v411_v55  ;;  %497 = vmatpush.msra.mxu1 %v1535_v57  ;;  %v1557_v1 = vld [vmem:[%s1365_s13 + $0x100] sm:$0xff]  ;;  %v402_v51 = vld [vmem:[%s1365_s13 + $0xd8] sm:$0xff]  ;;  %v1562_v53 = vld [vmem:[%s1365_s13 + $0x110] sm:$0xff] }
  0x2e   : > { %563 = vmatpush.msra.mxu2 %v1527_v54  ;;  %434 = vmatpush.msra.mxu0 %v411_v55  ;;  %v1566_v55 = vld [vmem:[%s1365_s13 + $0xe8] sm:$0xff]  ;;  %v399_v0 = vld [vmem:[%s1365_s13 + $0xc0] sm:$0xff]  ;;  %v1571_v4 = vld [vmem:[%s1365_s13 + $0xf8] sm:$0xff] }
  0x2f   : > { %1110 = vmatpush.msra.mxu3 %v408_v59  ;;  %498 = vmatpush.msra.mxu1 %v1544_v60  ;;  %v396_v3 = vld [vmem:[%s1365_s13 + $0xa8] sm:$0xff]  ;;  %v1580_v2 = vld [vmem:[%s1365_s13 + $0xe0] sm:$0xff]  ;;  %v393_v7 = vld [vmem:[%s1365_s13 + $0x90] sm:$0xff] }
  0x30   : > { %564 = vmatpush.msra.mxu2 %v1539_v58  ;;  %435 = vmatpush.msra.mxu0 %v408_v59  ;;  %v1575_v59 = vld [vmem:[%s1365_s13 + $0xd0] sm:$0xff]  ;;  %v1589_v6 = vld [vmem:[%s1365_s13 + $0xc8] sm:$0xff]  ;;  %v390_v5 = vld [vmem:[%s1365_s13 + $0x78] sm:$0xff] }
  0x31   : > { %1111 = vmatpush.msra.mxu3 %v405_v62  ;;  %499 = vmatpush.msra.mxu1 %v1553_v63  ;;  %v1598_v10 = vld [vmem:[%s1365_s13 + $0xb0] sm:$0xff]  ;;  %v387_v9 = vld [vmem:[%s1365_s13 + $0x60] sm:$0xff]  ;;  %v1607_v8 = vld [vmem:[%s1365_s13 + $0x98] sm:$0xff] }
  0x32   : > { %565 = vmatpush.msra.mxu2 %v1548_v61  ;;  %436 = vmatpush.msra.mxu0 %v405_v62  ;;  %v1584_v62 = vld [vmem:[%s1365_s13 + $0xb8] sm:$0xff]  ;;  %v384_v13 = vld [vmem:[%s1365_s13 + $0x48] sm:$0xff]  ;;  %v391_v12 = vld [vmem:[%s1365_s13 + $0x80] sm:$0xff] }
  0x33   : > { %1112 = vmatpush.msra.mxu3 %v402_v51  ;;  %500 = vmatpush.msra.mxu1 %v1562_v53  ;;  %v381_v11 = vld [vmem:[%s1365_s13 + $0x30] sm:$0xff]  ;;  %v388_v16 = vld [vmem:[%s1365_s13 + $0x68] sm:$0xff]  ;;  %v378_v15 = vld [vmem:[%s1365_s13 + $0x18] sm:$0xff] }
  0x34   : > { %566 = vmatpush.msra.mxu2 %v1557_v1  ;;  %437 = vmatpush.msra.mxu0 %v402_v51  ;;  %v1593_v51 = vld [vmem:[%s1365_s13 + $0xa0] sm:$0xff]  ;;  %v385_v14 = vld [vmem:[%s1365_s13 + $0x50] sm:$0xff]  ;;  %v1630_v19 = vld [vmem:[%s1365_s13 + $0x28] sm:$0xff] }
  0x35   : > { %1113 = vmatpush.msra.mxu3 %v399_v0  ;;  %501 = vmatpush.msra.mxu1 %v1571_v4  ;;  %v1637_v18 = vld [vmem:[%s1911_s0 + $0x60] sm:$0xff]  ;;  %v1641_v17 = vld [vmem:[%s1365_s13 + $0x10] sm:$0xff]  ;;  %v376_v21 = vld [vmem:[%s1365_s13 + $0x8] sm:$0xff] }
  0x36   : > { %567 = vmatpush.msra.mxu2 %v1566_v55  ;;  %438 = vmatpush.msra.mxu0 %v399_v0  ;;  %v1602_v0 = vld [vmem:[%s1365_s13 + $0x88] sm:$0xff]  ;;  %v379_v22 = vld [vmem:[%s1365_s13 + $0x20] sm:$0xff] }
  0x37   : > { %1114 = vmatpush.msra.mxu3 %v396_v3  ;;  %502 = vmatpush.msra.mxu1 %v1580_v2 }
  0x38   : > { %568 = vmatpush.msra.mxu2 %v1575_v59  ;;  %439 = vmatpush.msra.mxu0 %v396_v3  ;;  %v1611_v3 = vld [vmem:[%s1365_s13 + $0x70] sm:$0xff] }
  0x39   : > { %1115 = vmatpush.msra.mxu3 %v393_v7  ;;  %503 = vmatpush.msra.mxu1 %v1589_v6 }
  0x3a   : > { %569 = vmatpush.msra.mxu2 %v1584_v62  ;;  %440 = vmatpush.msra.mxu0 %v393_v7  ;;  %v1618_v7 = vld [vmem:[%s1365_s13 + $0x58] sm:$0xff] }
  0x3b   : > { %1116 = vmatpush.msra.mxu3 %v390_v5  ;;  %504 = vmatpush.msra.mxu1 %v1598_v10 }
  0x3c   : > { %570 = vmatpush.msra.mxu2 %v1593_v51  ;;  %441 = vmatpush.msra.mxu0 %v390_v5  ;;  %v1624_v5 = vld [vmem:[%s1365_s13 + $0x40] sm:$0xff] }
  0x3d   : > { %1117 = vmatpush.msra.mxu3 %v387_v9  ;;  %505 = vmatpush.msra.mxu1 %v1607_v8 }
  0x3e   : > { %571 = vmatpush.msra.mxu2 %v1602_v0  ;;  %442 = vmatpush.msra.mxu0 %v387_v9  ;;  %v375_v9 = vld [vmem:[%s1365_s13] sm:$0xff] }
  0x3f   : > { %1118 = vmatpush.msra.mxu3 %v384_v13  ;;  %506 = vmatpush.msra.mxu1 %v391_v12 }
  0x40   : > { %572 = vmatpush.msra.mxu2 %v1611_v3  ;;  %443 = vmatpush.msra.mxu0 %v384_v13  ;;  %v382_v13 = vld [vmem:[%s1365_s13 + $0x38] sm:$0xff] }
  0x41   : > { %1119 = vmatpush.msra.mxu3 %v381_v11  ;;  %507 = vmatpush.msra.mxu1 %v388_v16 }
  0x42   : > { %573 = vmatpush.msra.mxu2 %v1618_v7  ;;  %444 = vmatpush.msra.mxu0 %v381_v11  ;;  %v359_v11 = vld [vmem:[%s1911_s0] sm:$0xff] }
  0x43   : > { %1120 = vmatpush.msra.mxu3 %v378_v15  ;;  %508 = vmatpush.msra.mxu1 %v385_v14 }
  0x44   : > { %574 = vmatpush.msra.mxu2 %v1624_v5  ;;  %445 = vmatpush.msra.mxu0 %v378_v15  ;;  %v1657_v15 = vld [vmem:[%s1911_s0 + $0x68] sm:$0xff] }
  0x45   : > { %1121 = vmatpush.msra.mxu3 %v375_v9  ;;  %509 = vmatpush.msra.mxu1 %v382_v13 }
  0x46   : > { %575 = vmatpush.msra.mxu2 %v1630_v19  ;;  %483 = vmatmul.f32.vlgmr.msra.gmra.mxu3 %v1637_v18 }
  0x47   : > { %1122 = vmatpush.msrb.mxu3 %v1531_v56  ;;  %510 = vmatpush.msra.mxu1 %v379_v22  ;;  %v360_v56 = vld [vmem:[%s1911_s0 + $0x8] sm:$0xff] }
  0x48   : > { %576 = vmatpush.msra.mxu2 %v1641_v17  ;;  %446 = vmatpush.msra.mxu0 %v375_v9 }
  0x49   : > { %577 = vmatmul.f32.vlgmr.msra.gmra.mxu2 %v359_v11  ;;  %1123 = vmatpush.msrb.mxu3 %v1535_v57  ;;  %v1670_v57 = vld [vmem:[%s1911_s0 + $0x70] sm:$0xff] }
  0x4a   : > { %511 = vmatpush.msra.mxu1 %v376_v21  ;;  %447 = vmatmul.f32.vlgmr.msra.gmra.mxu0 %v359_v11 }
  0x4b   : > { %1124 = vmatpush.msrb.mxu3 %v1544_v60  ;;  %512 = vmatmul.f32.vlgmr.msra.gmra.mxu1 %v359_v11  ;;  %v361_v60 = vld [vmem:[%s1911_s0 + $0x10] sm:$0xff] }
  0x4d   : > { %1125 = vmatpush.msrb.mxu3 %v1553_v63 }
  0x4e   : > { %486 = vmatmul.f32.gmra.mxu3 %v1657_v15 }
  0x4f   : > { %1126 = vmatpush.msrb.mxu3 %v1562_v53 }
  0x51   : > { %580 = vmatmul.f32.gmra.mxu2 %v360_v56  ;;  %1127 = vmatpush.msrb.mxu3 %v1571_v4  ;;  %v362_v4 = vld [vmem:[%s1911_s0 + $0x18] sm:$0xff] }
  0x52   : > { %450 = vmatmul.f32.gmra.mxu0 %v360_v56 }
  0x53   : > { %1128 = vmatpush.msrb.mxu3 %v1580_v2  ;;  %515 = vmatmul.f32.gmra.mxu1 %v360_v56  ;;  %v374_v2 = vld [vmem:[%s1911_s0 + $0x78] sm:$0xff] }
  0x55   : > { %1129 = vmatpush.msrb.mxu3 %v1589_v6  ;;  %v363_v6 = vld [vmem:[%s1911_s0 + $0x20] sm:$0xff] }
  0x56   : > { %489 = vmatmul.f32.gmra.mxu3 %v1670_v57 }
  0x57   : > { %1130 = vmatpush.msrb.mxu3 %v1598_v10  ;;  %v365_v10 = vld [vmem:[%s1911_s0 + $0x30] sm:$0xff] }
  0x59   : > { %583 = vmatmul.f32.gmra.mxu2 %v361_v60  ;;  %1131 = vmatpush.msrb.mxu3 %v1607_v8  ;;  %v364_v8 = vld [vmem:[%s1911_s0 + $0x28] sm:$0xff] }
  0x5a   : > { %453 = vmatmul.f32.gmra.mxu0 %v361_v60 }
  0x5b   : > { %1132 = vmatpush.msrb.mxu3 %v391_v12  ;;  %518 = vmatmul.f32.gmra.mxu1 %v361_v60  ;;  %v366_v12 = vld [vmem:[%s1911_s0 + $0x38] sm:$0xff] }
  0x5d   : > { %1133 = vmatpush.msrb.mxu3 %v388_v16  ;;  %v368_v16 = vld [vmem:[%s1911_s0 + $0x48] sm:$0xff] }
  0x5e   : > { %492 = vmatmul.f32.gmra.mxu3 %v374_v2 }
  0x5f   : > { %1134 = vmatpush.msrb.mxu3 %v385_v14  ;;  %v367_v14 = vld [vmem:[%s1911_s0 + $0x40] sm:$0xff] }
  0x61   : > { %586 = vmatmul.f32.gmra.mxu2 %v362_v4  ;;  %1135 = vmatpush.msrb.mxu3 %v382_v13 }
  0x62   : > { %456 = vmatmul.f32.gmra.mxu0 %v362_v4 }
  0x63   : > { %1136 = vmatpush.msrb.mxu3 %v379_v22  ;;  %521 = vmatmul.f32.gmra.mxu1 %v362_v4 }
  0x65   : > { %1137 = vmatpush.msrb.mxu3 %v376_v21 }
  0x66   : > { %548 = vmatmul.f32.vlgmr.msrb.gmra.mxu3 %v1637_v18 }
  0x67   : > { %1138 = vmatpush.msra.mxu3 %v1518_v50 }
  0x69   : > { %589 = vmatmul.f32.gmra.mxu2 %v363_v6  ;;  %1139 = vmatpush.msra.mxu3 %v1523_v52 }
  0x6a   : > { %459 = vmatmul.f32.gmra.mxu0 %v363_v6 }
  0x6b   : > { %1140 = vmatpush.msra.mxu3 %v1527_v54  ;;  %524 = vmatmul.f32.gmra.mxu1 %v363_v6 }
  0x6d   : > { %1141 = vmatpush.msra.mxu3 %v1539_v58 }
  0x6e   : > { %551 = vmatmul.f32.gmra.mxu3 %v1657_v15 }
  0x6f   : > { %1142 = vmatpush.msra.mxu3 %v1548_v61 }
  0x71   : > { %592 = vmatmul.f32.gmra.mxu2 %v364_v8  ;;  %1143 = vmatpush.msra.mxu3 %v1557_v1 }
  0x72   : > { %462 = vmatmul.f32.gmra.mxu0 %v364_v8 }
  0x73   : > { %1144 = vmatpush.msra.mxu3 %v1566_v55  ;;  %527 = vmatmul.f32.gmra.mxu1 %v364_v8 }
  0x75   : > { %1145 = vmatpush.msra.mxu3 %v1575_v59 }
  0x76   : > { %554 = vmatmul.f32.gmra.mxu3 %v1670_v57 }
  0x77   : > { %1146 = vmatpush.msra.mxu3 %v1584_v62 }
  0x79   : > { %595 = vmatmul.f32.gmra.mxu2 %v365_v10  ;;  %1147 = vmatpush.msra.mxu3 %v1593_v51 }
  0x7a   : > { %465 = vmatmul.f32.gmra.mxu0 %v365_v10 }
  0x7b   : > { %1148 = vmatpush.msra.mxu3 %v1602_v0  ;;  %530 = vmatmul.f32.gmra.mxu1 %v365_v10 }
  0x7d   : > { %1149 = vmatpush.msra.mxu3 %v1611_v3 }
  0x7e   : > { %557 = vmatmul.f32.gmra.mxu3 %v374_v2 }
  0x7f   : > { %1150 = vmatpush.msra.mxu3 %v1618_v7 }
  0x81   : > { %598 = vmatmul.f32.gmra.mxu2 %v366_v12  ;;  %1151 = vmatpush.msra.mxu3 %v1624_v5 }
  0x82   : > { %468 = vmatmul.f32.gmra.mxu0 %v366_v12 }
  0x83   : > { %1152 = vmatpush.msra.mxu3 %v1630_v19  ;;  %533 = vmatmul.f32.gmra.mxu1 %v366_v12  ;;  %v423_v19 = vld [vmem:[%s340_s25] sm:$0x7] }
  0x84   : > { %v1735_v21 = vperm.slane %v423_v19, 0  ;;  %v1737_v22 = vperm.slane %v423_v19, 1  ;;  %v1740_v58 = vperm.slane %v423_v19, 2 }
  0x85   : > { %1153 = vmatpush.msra.mxu3 %v1641_v17  ;;  %v369_v17 = vld [vmem:[%s1911_s0 + $0x50] sm:$0xff] }
  0x86   : > { %613 = vmatmul.f32.vlgmr.msra.gmra.mxu3 %v1637_v18  ;;  %v370_v18 = vld [vmem:[%s1911_s0 + $0x58] sm:$0xff] }
  0x89   : > { %601 = vmatmul.f32.gmra.mxu2 %v367_v14 }
  0x8a   : > { %471 = vmatmul.f32.gmra.mxu0 %v367_v14 }
  0x8b   : > { %536 = vmatmul.f32.gmra.mxu1 %v367_v14 }
  0x8e   : > { %616 = vmatmul.f32.gmra.mxu3 %v1657_v15 }
  0x91   : > { %604 = vmatmul.f32.gmra.mxu2 %v368_v16 }
  0x92   : > { %474 = vmatmul.f32.gmra.mxu0 %v368_v16 }
  0x93   : > { %539 = vmatmul.f32.gmra.mxu1 %v368_v16 }
  0x96   : > { %619 = vmatmul.f32.gmra.mxu3 %v1670_v57 }
  0x99   : > { %607 = vmatmul.f32.gmra.mxu2 %v369_v17 }
  0x9a   : > { %477 = vmatmul.f32.gmra.mxu0 %v369_v17 }
  0x9b   : > { %542 = vmatmul.f32.gmra.mxu1 %v369_v17 }
  0x9e   : > { %622 = vmatmul.f32.gmra.mxu3 %v374_v2 }
  0xa1   : > { %610 = vmatmul.f32.gmra.mxu2 %v370_v18 }
  0xa2   : > { %480 = vmatmul.f32.gmra.mxu0 %v370_v18 }
  0xa3   : > { %545 = vmatmul.f32.gmra.mxu1 %v370_v18 }
  0xc7   : > { %v448_v50 = vpop.f32.mrf.mxu0 }
  0xc8   : > { %v449_v52 = vadd.f32 %v448_v50, %v1735_v21  ;;  %v513_v54 = vpop.f32.mrf.mxu1 }
  0xc9   : > { %v484_v61 = vpop.f32.mrf.mxu3  ;;  %v514_v63 = vadd.f32 %v513_v54, %v1737_v22 }
  0xca   : > { %626 = vst [vmem:[#allocation3] sm:$0xff] %v449_v52  ;;  %v485_v1 = vadd.f32 %v484_v61, %v1735_v21 }
  0xcb   : > { %627 = vst [vmem:[#allocation3 + $0x8] sm:$0xff] %v514_v63 }
  0xcc   : > { %v578_v53 = vpop.f32.mrf.mxu2  ;;  %662 = vst [vmem:[#allocation3 + $0x120] sm:$0xff] %v485_v1 }
  0xcd   : > { %v579_v55 = vadd.f32 %v578_v53, %v1740_v58 }
  0xcf   : > { %628 = vst [vmem:[#allocation3 + $0x10] sm:$0xff] %v579_v55  ;;  %v451_v59 = vpop.f32.mrf.mxu0 }
  0xd0   : > { %v452_v62 = vadd.f32 %v451_v59, %v1735_v21  ;;  %v516_v51 = vpop.f32.mrf.mxu1 }
  0xd1   : > { %v487_v0 = vpop.f32.mrf.mxu3  ;;  %v517_v3 = vadd.f32 %v516_v51, %v1737_v22 }
  0xd2   : > { %629 = vst [vmem:[#allocation3 + $0x18] sm:$0xff] %v452_v62  ;;  %v488_v7 = vadd.f32 %v487_v0, %v1735_v21 }
  0xd3   : > { %630 = vst [vmem:[#allocation3 + $0x20] sm:$0xff] %v517_v3 }
  0xd4   : > { %v581_v5 = vpop.f32.mrf.mxu2  ;;  %665 = vst [vmem:[#allocation3 + $0x138] sm:$0xff] %v488_v7 }
  0xd5   : > { %v582_v9 = vadd.f32 %v581_v5, %v1740_v58 }
  0xd7   : > { %631 = vst [vmem:[#allocation3 + $0x28] sm:$0xff] %v582_v9  ;;  %v454_v13 = vpop.f32.mrf.mxu0 }
  0xd8   : > { %v455_v11 = vadd.f32 %v454_v13, %v1735_v21  ;;  %v519_v15 = vpop.f32.mrf.mxu1 }
  0xd9   : > { %v490_v56 = vpop.f32.mrf.mxu3  ;;  %v520_v57 = vadd.f32 %v519_v15, %v1737_v22 }
  0xda   : > { %632 = vst [vmem:[#allocation3 + $0x30] sm:$0xff] %v455_v11  ;;  %v491_v60 = vadd.f32 %v490_v56, %v1735_v21 }
  0xdb   : > { %633 = vst [vmem:[#allocation3 + $0x38] sm:$0xff] %v520_v57 }
  0xdc   : > { %v584_v2 = vpop.f32.mrf.mxu2  ;;  %668 = vst [vmem:[#allocation3 + $0x150] sm:$0xff] %v491_v60 }
  0xdd   : > { %v585_v4 = vadd.f32 %v584_v2, %v1740_v58 }
  0xdf   : > { %634 = vst [vmem:[#allocation3 + $0x40] sm:$0xff] %v585_v4  ;;  %v457_v6 = vpop.f32.mrf.mxu0 }
  0xe0   : > { %v458_v8 = vadd.f32 %v457_v6, %v1735_v21  ;;  %v522_v10 = vpop.f32.mrf.mxu1 }
  0xe1   : > { %v493_v12 = vpop.f32.mrf.mxu3  ;;  %v523_v14 = vadd.f32 %v522_v10, %v1737_v22 }
  0xe2   : > { %635 = vst [vmem:[#allocation3 + $0x48] sm:$0xff] %v458_v8  ;;  %v494_v16 = vadd.f32 %v493_v12, %v1735_v21 }
  0xe3   : > { %636 = vst [vmem:[#allocation3 + $0x50] sm:$0xff] %v523_v14 }
  0xe4   : > { %v587_v17 = vpop.f32.mrf.mxu2  ;;  %671 = vst [vmem:[#allocation3 + $0x168] sm:$0xff] %v494_v16 }
  0xe5   : > { %v588_v18 = vadd.f32 %v587_v17, %v1740_v58 }
  0xe7   : > { %637 = vst [vmem:[#allocation3 + $0x58] sm:$0xff] %v588_v18  ;;  %v460_v19 = vpop.f32.mrf.mxu0 }
  0xe8   : > { %v461_v50 = vadd.f32 %v460_v19, %v1735_v21  ;;  %v525_v52 = vpop.f32.mrf.mxu1 }
  0xe9   : > { %v526_v54 = vadd.f32 %v525_v52, %v1737_v22  ;;  %v549_v61 = vpop.f32.mrf.mxu3 }
  0xea   : > { %638 = vst [vmem:[#allocation3 + $0x60] sm:$0xff] %v461_v50  ;;  %v550_v63 = vadd.f32 %v549_v61, %v1737_v22 }
  0xeb   : > { %639 = vst [vmem:[#allocation3 + $0x68] sm:$0xff] %v526_v54 }
  0xec   : > { %v590_v1 = vpop.f32.mrf.mxu2  ;;  %663 = vst [vmem:[#allocation3 + $0x128] sm:$0xff] %v550_v63 }
  0xed   : > { %v591_v53 = vadd.f32 %v590_v1, %v1740_v58 }
  0xef   : > { %640 = vst [vmem:[#allocation3 + $0x70] sm:$0xff] %v591_v53  ;;  %v463_v55 = vpop.f32.mrf.mxu0 }
  0xf0   : > { %v464_v59 = vadd.f32 %v463_v55, %v1735_v21  ;;  %v528_v62 = vpop.f32.mrf.mxu1 }
  0xf1   : > { %v529_v51 = vadd.f32 %v528_v62, %v1737_v22  ;;  %v552_v0 = vpop.f32.mrf.mxu3 }
  0xf2   : > { %641 = vst [vmem:[#allocation3 + $0x78] sm:$0xff] %v464_v59  ;;  %v553_v3 = vadd.f32 %v552_v0, %v1737_v22 }
  0xf3   : > { %642 = vst [vmem:[#allocation3 + $0x80] sm:$0xff] %v529_v51 }
  0xf4   : > { %v593_v7 = vpop.f32.mrf.mxu2  ;;  %666 = vst [vmem:[#allocation3 + $0x140] sm:$0xff] %v553_v3 }
  0xf5   : > { %v594_v5 = vadd.f32 %v593_v7, %v1740_v58 }
  0xf7   : > { %643 = vst [vmem:[#allocation3 + $0x88] sm:$0xff] %v594_v5  ;;  %v466_v9 = vpop.f32.mrf.mxu0 }
  0xf8   : > { %v467_v13 = vadd.f32 %v466_v9, %v1735_v21  ;;  %v531_v11 = vpop.f32.mrf.mxu1 }
  0xf9   : > { %v532_v15 = vadd.f32 %v531_v11, %v1737_v22  ;;  %v555_v56 = vpop.f32.mrf.mxu3 }
  0xfa   : > { %644 = vst [vmem:[#allocation3 + $0x90] sm:$0xff] %v467_v13  ;;  %v556_v57 = vadd.f32 %v555_v56, %v1737_v22 }
  0xfb   : > { %645 = vst [vmem:[#allocation3 + $0x98] sm:$0xff] %v532_v15 }
  0xfc   : > { %v596_v60 = vpop.f32.mrf.mxu2  ;;  %669 = vst [vmem:[#allocation3 + $0x158] sm:$0xff] %v556_v57 }
  0xfd   : > { %v597_v2 = vadd.f32 %v596_v60, %v1740_v58 }
  0xff   : > { %646 = vst [vmem:[#allocation3 + $0xa0] sm:$0xff] %v597_v2  ;;  %v469_v4 = vpop.f32.mrf.mxu0 }
 0x100   : > { %v470_v6 = vadd.f32 %v469_v4, %v1735_v21  ;;  %v534_v8 = vpop.f32.mrf.mxu1 }
 0x101   : > { %v535_v10 = vadd.f32 %v534_v8, %v1737_v22  ;;  %v558_v12 = vpop.f32.mrf.mxu3 }
 0x102   : > { %647 = vst [vmem:[#allocation3 + $0xa8] sm:$0xff] %v470_v6  ;;  %v559_v14 = vadd.f32 %v558_v12, %v1737_v22 }
 0x103   : > { %648 = vst [vmem:[#allocation3 + $0xb0] sm:$0xff] %v535_v10 }
 0x104   : > { %v599_v16 = vpop.f32.mrf.mxu2  ;;  %672 = vst [vmem:[#allocation3 + $0x170] sm:$0xff] %v559_v14 }
 0x105   : > { %v600_v17 = vadd.f32 %v599_v16, %v1740_v58 }
 0x107   : > { %649 = vst [vmem:[#allocation3 + $0xb8] sm:$0xff] %v600_v17  ;;  %v472_v18 = vpop.f32.mrf.mxu0  ;;  %v1792_v17 = vmov 0.0  }
 0x108   : > { %v473_v19 = vadd.f32 %v472_v18, %v1735_v21  ;;  %v537_v50 = vpop.f32.mrf.mxu1 }
 0x109   : > { %v538_v52 = vadd.f32 %v537_v50, %v1737_v22  ;;  %v614_v54 = vpop.f32.mrf.mxu3 }
 0x10a   : > { %650 = vst [vmem:[#allocation3 + $0xc0] sm:$0xff] %v473_v19  ;;  %v615_v61 = vadd.f32 %v614_v54, %v1740_v58 }
 0x10b   : > { %651 = vst [vmem:[#allocation3 + $0xc8] sm:$0xff] %v538_v52 }
 0x10c   : > { %v602_v63 = vpop.f32.mrf.mxu2  ;;  %664 = vst [vmem:[#allocation3 + $0x130] sm:$0xff] %v615_v61 }
 0x10d   : > { %v603_v1 = vadd.f32 %v602_v63, %v1740_v58 }
 0x10f   : > { %652 = vst [vmem:[#allocation3 + $0xd0] sm:$0xff] %v603_v1  ;;  %v475_v53 = vpop.f32.mrf.mxu0 }
 0x110   : > { %v476_v55 = vadd.f32 %v475_v53, %v1735_v21  ;;  %v540_v59 = vpop.f32.mrf.mxu1 }
 0x111   : > { %v541_v62 = vadd.f32 %v540_v59, %v1737_v22  ;;  %v617_v51 = vpop.f32.mrf.mxu3 }
 0x112   : > { %653 = vst [vmem:[#allocation3 + $0xd8] sm:$0xff] %v476_v55  ;;  %v618_v0 = vadd.f32 %v617_v51, %v1740_v58 }
 0x113   : > { %654 = vst [vmem:[#allocation3 + $0xe0] sm:$0xff] %v541_v62 }
 0x114   : > { %v605_v3 = vpop.f32.mrf.mxu2  ;;  %667 = vst [vmem:[#allocation3 + $0x148] sm:$0xff] %v618_v0 }
 0x115   : > { %v606_v7 = vadd.f32 %v605_v3, %v1740_v58 }
 0x117   : > { %655 = vst [vmem:[#allocation3 + $0xe8] sm:$0xff] %v606_v7  ;;  %v478_v5 = vpop.f32.mrf.mxu0 }
 0x118   : > { %v479_v9 = vadd.f32 %v478_v5, %v1735_v21  ;;  %v543_v13 = vpop.f32.mrf.mxu1 }
 0x119   : > { %v544_v11 = vadd.f32 %v543_v13, %v1737_v22  ;;  %v620_v15 = vpop.f32.mrf.mxu3 }
 0x11a   : > { %656 = vst [vmem:[#allocation3 + $0xf0] sm:$0xff] %v479_v9  ;;  %v621_v56 = vadd.f32 %v620_v15, %v1740_v58 }
 0x11b   : > { %657 = vst [vmem:[#allocation3 + $0xf8] sm:$0xff] %v544_v11 }
 0x11c   : > { %v608_v57 = vpop.f32.mrf.mxu2  ;;  %670 = vst [vmem:[#allocation3 + $0x160] sm:$0xff] %v621_v56 }
 0x11d   : > { %v609_v60 = vadd.f32 %v608_v57, %v1740_v58 }
 0x11f   : > { %658 = vst [vmem:[#allocation3 + $0x100] sm:$0xff] %v609_v60  ;;  %v481_v2 = vpop.f32.mrf.mxu0 }
 0x120   : > { %v482_v4 = vadd.f32 %v481_v2, %v1735_v21  ;;  %v546_v6 = vpop.f32.mrf.mxu1 }
 0x121   : > { %v547_v8 = vadd.f32 %v546_v6, %v1737_v22  ;;  %v623_v10 = vpop.f32.mrf.mxu3 }
 0x122   : > { %659 = vst [vmem:[#allocation3 + $0x108] sm:$0xff] %v482_v4  ;;  %v624_v12 = vadd.f32 %v623_v10, %v1740_v58 }
 0x123   : > { %660 = vst [vmem:[#allocation3 + $0x110] sm:$0xff] %v547_v8 }
 0x124   : > { %v611_v14 = vpop.f32.mrf.mxu2  ;;  %673 = vst [vmem:[#allocation3 + $0x178] sm:$0xff] %v624_v12 }
 0x125   : > { %v612_v16 = vadd.f32 %v611_v14, %v1740_v58 }
 0x127   : > { %661 = vst [vmem:[#allocation3 + $0x118] sm:$0xff] %v612_v16 }
 0x128 LB: >> { %745 = vmatpush.msra.mxu0 %v1509_v47  ;;  %765 = vmatpush.msra.mxu1 %v1512_v48  ;;  %v1939_v21 = vld [vmem:[#allocation24_spill] sm:$0xff]  ;;  %v1940_v22 = vld [vmem:[#allocation25_spill] sm:$0xff]  ;;  %v1942_v18 = vld [vmem:[#allocation22_spill] sm:$0xff]  ;;  %s731_s30 = ssub.s32 1, %s1261_s20  ;;  %s733_s29 = ssub.s32 15, %s1277_s27  ;;  %s1277_s27 = sphi %s1794_s27, %s729_s27   ;;  %v1273_v17 = vphi %v1792_v17, %v855_v17  }
 0x129   : >> { %785 = vmatpush.msra.mxu2 %v1515_v49  ;;  %v1941_v58 = vld [vmem:[#allocation21_spill] sm:$0xff]  ;;  %v1943_v19 = vld [vmem:[#allocation23_spill] sm:$0xff]  ;;  %v1944_v50 = vld [vmem:[#allocation18_spill] sm:$0xff]  ;;  %s732_s7 = smul.u32 %s1277_s27, %s731_s30  ;;  %s729_s27 = sadd.s32 1, %s1277_s27  }
 0x12a   : >> { %746 = vmatpush.msra.mxu0 %v1500_v44  ;;  %766 = vmatpush.msra.mxu1 %v1503_v45  ;;  %v1945_v52 = vld [vmem:[#allocation19_spill] sm:$0xff]  ;;  %v1946_v54 = vld [vmem:[#allocation20_spill] sm:$0xff]  ;;  %v1949_v1 = vld [vmem:[#allocation17_spill] sm:$0xff]  ;;  %s734_s8 = smul.u32 %s1261_s20, %s733_s29  ;;  %p726_p9 = scmp.ge.s32.totalorder %s729_s27, 16  }
 0x12b   : >> { %786 = vmatpush.msra.mxu2 %v1506_v46  ;;  %v1947_v61 = vld [vmem:[#allocation15_spill] sm:$0xff]  ;;  %v1948_v63 = vld [vmem:[#allocation16_spill] sm:$0xff]  ;;  %v1951_v55 = vld [vmem:[#allocation13_spill] sm:$0xff] }
 0x12c   : >> { %747 = vmatpush.msra.mxu0 %v1491_v41  ;;  %767 = vmatpush.msra.mxu1 %v1494_v42  ;;  %v1950_v53 = vld [vmem:[#allocation12_spill] sm:$0xff]  ;;  %v1952_v59 = vld [vmem:[#allocation14_spill] sm:$0xff]  ;;  %v1953_v62 = vld [vmem:[#allocation9_spill] sm:$0xff]  ;;  %s735_s9 = sadd.s32 %s734_s8, %s732_s7 }
 0x12d   : >> { %787 = vmatpush.msra.mxu2 %v1497_v43  ;;  %v1954_v51 = vld [vmem:[#allocation10_spill] sm:$0xff]  ;;  %v1955_v0 = vld [vmem:[#allocation11_spill] sm:$0xff]  ;;  %v1958_v5 = vld [vmem:[#allocation8_spill] sm:$0xff]  ;;  %s1857_s10 = sshll.u32 %s735_s9, 3 }
 0x12e   : >> { %748 = vmatpush.msra.mxu0 %v1482_v38  ;;  %768 = vmatpush.msra.mxu1 %v1485_v39  ;;  %v1956_v3 = vld [vmem:[#allocation6_spill] sm:$0xff]  ;;  %v1957_v7 = vld [vmem:[#allocation7_spill] sm:$0xff]  ;;  %s737_s11 = sshra.s32 %s1857_s10, 3  ;;  %s856_s14 = scalar_lea.vmem %s1790_s6, %s1857_s10 [#allocation4] }
 0x12f   : >> { %788 = vmatpush.msra.mxu2 %v1488_v40  ;;  %s1105_s12 = smul.u32 24, %s737_s11 }
 0x130   : >> { %749 = vmatpush.msra.mxu0 %v1473_v35  ;;  %769 = vmatpush.msra.mxu1 %v1476_v36 }
 0x131   : >> { %789 = vmatpush.msra.mxu2 %v1479_v37  ;;  %s1860_s13 = scalar_lea.vmem [#allocation3], %s1105_s12 }
 0x132   : >> { %750 = vmatpush.msra.mxu0 %v1464_v32  ;;  %770 = vmatpush.msra.mxu1 %v1467_v33  ;;  %v742_v9 = vld [vmem:[%s1860_s13] sm:$0xff]  ;;  %v743_v13 = vld [vmem:[%s1860_s13 + $0x8] sm:$0xff] }
 0x133   : >> { %790 = vmatpush.msra.mxu2 %v1470_v34 }
 0x134   : >> { %751 = vmatpush.msra.mxu0 %v1455_v29  ;;  %771 = vmatpush.msra.mxu1 %v1458_v30 }
 0x135   : >> { %791 = vmatpush.msra.mxu2 %v1461_v31 }
 0x136   : >> { %752 = vmatpush.msra.mxu0 %v1446_v26  ;;  %772 = vmatpush.msra.mxu1 %v1449_v27 }
 0x137   : >> { %792 = vmatpush.msra.mxu2 %v1452_v28 }
 0x138   : >> { %753 = vmatpush.msra.mxu0 %v1437_v23  ;;  %773 = vmatpush.msra.mxu1 %v1440_v24 }
 0x139   : >> { %793 = vmatpush.msra.mxu2 %v1443_v25 }
 0x13a   : >> { %754 = vmatpush.msra.mxu0 %v1428_v20  ;;  %774 = vmatpush.msra.mxu1 %v1939_v21 }
 0x13b   : >> { %794 = vmatpush.msra.mxu2 %v1940_v22 }
 0x13c   : >> { %755 = vmatpush.msra.mxu0 %v1941_v58  ;;  %775 = vmatpush.msra.mxu1 %v1942_v18  ;;  %v1959_v58 = vld [vmem:[#allocation5_spill] sm:$0xff] }
 0x13d   : >> { %795 = vmatpush.msra.mxu2 %v1943_v19  ;;  %v846_v18 = vperm.slane %v1959_v58, 0 }
 0x13e   : >> { %756 = vmatpush.msra.mxu0 %v1944_v50  ;;  %776 = vmatpush.msra.mxu1 %v1945_v52 }
 0x13f   : >> { %796 = vmatpush.msra.mxu2 %v1946_v54 }
 0x140   : >> { %757 = vmatpush.msra.mxu0 %v1947_v61  ;;  %777 = vmatpush.msra.mxu1 %v1948_v63 }
 0x141   : >> { %797 = vmatpush.msra.mxu2 %v1949_v1 }
 0x142   : >> { %758 = vmatpush.msra.mxu0 %v1950_v53  ;;  %778 = vmatpush.msra.mxu1 %v1951_v55 }
 0x143   : >> { %798 = vmatpush.msra.mxu2 %v1952_v59 }
 0x144   : >> { %759 = vmatpush.msra.mxu0 %v1953_v62  ;;  %779 = vmatpush.msra.mxu1 %v1954_v51  ;;  %v744_v51 = vld [vmem:[%s1860_s13 + $0x10] sm:$0xff] }
 0x145   : >> { %799 = vmatpush.msra.mxu2 %v1955_v0 }
 0x146   : >> { %760 = vmatpush.msra.mxu0 %v1956_v3  ;;  %780 = vmatpush.msra.mxu1 %v1957_v7 }
 0x147   : >> { %761 = vmatmul.f32.vlgmr.msra.gmra.mxu0 %v1273_v17  ;;  %781 = vmatmul.f32.vlgmr.msra.gmra.mxu1 %v1273_v17 }
 0x148   : >> { %800 = vmatpush.msra.mxu2 %v1958_v5 }
 0x149   : >> { %801 = vmatmul.f32.vlgmr.msra.gmra.mxu2 %v1273_v17 }
 0x1c4   : >> { %v762_v11 = vpop.f32.mrf.mxu0  ;;  %v782_v15 = vpop.f32.mrf.mxu1 }
 0x1c5   : >> { %v805_v56 = vadd.f32 %v762_v11, %v742_v9  ;;  %v825_v57 = vadd.f32 %v782_v15, %v743_v13 }
 0x1c7   : >> { %v1099_v60 = vmul.f32 -1.442695, %v805_v56  ;;  %v1100_v2 = vmul.f32 -1.442695, %v825_v57 }
 0x1c9   : >> { %1213 = vpow2.f32 %v1099_v60 }
 0x1ca   : >> { %1215 = vpow2.f32 %v1100_v2 }
 0x1cc   : >> { %v802_v50 = vpop.f32.mrf.mxu2 }
 0x1cd   : >> { %v848_v53 = vadd.f32 %v846_v18, %v802_v50 }
 0x1cf   : >> { %v1214_v4 = vpop.eup %1213 }
 0x1d0   : >> { %v1216_v6 = vpop.eup %1215  ;;  %v809_v8 = vadd.f32 1.0, %v1214_v4 }
 0x1d1   : >> { %v829_v10 = vadd.f32 1.0, %v1216_v6 }
 0x1d2   : >> { %1217 = vrcp.f32 %v809_v8  ;;  %v821_v52 = vand.u32 2147483648, %v809_v8  ;;  %v819_v61 = vand.u32 2147483647, %v809_v8  ;;  %vm815_vm1 = vweird.f32 %v809_v8 }
 0x1d3   : >> { %1219 = vrcp.f32 %v829_v10  ;;  %vm835_vm4 = vweird.f32 %v829_v10  ;;  %v841_v3 = vand.u32 2147483648, %v829_v10  ;;  %v839_v5 = vand.u32 2147483647, %v829_v10 }
 0x1d4   : >> { %v822_v55 = vor.u32 1.1754944e-38, %v821_v52  ;;  %vm820_vm3 = vcmp.eq.f32.partialorder %v819_v61, 8.507059e+37 }
 0x1d5   : >> { %v842_v11 = vor.u32 1.1754944e-38, %v841_v3  ;;  %vm840_vm7 = vcmp.eq.f32.partialorder %v839_v5, 8.507059e+37 }
 0x1d8   : >> { %v1218_v12 = vpop.eup %1217 }
 0x1d9   : >> { %v1220_v14 = vpop.eup %1219  ;;  %v811_v16 = vmul.f32 %v1218_v12, %v809_v8  ;;  %vm816_vm0 = vweird.f32 %v1218_v12 }
 0x1da   : >> { %v831_v21 = vmul.f32 %v1220_v14, %v829_v10  ;;  %vm817_vm2 = vmor %vm815_vm1, %vm816_vm0  ;;  %vm836_vm5 = vweird.f32 %v1220_v14 }
 0x1db   : >> { %v812_v22 = vsub.f32 1.0, %v811_v16  ;;  %vm837_vm6 = vmor %vm835_vm4, %vm836_vm5 }
 0x1dc   : >> { %v832_v19 = vsub.f32 1.0, %v831_v21 }
 0x1dd   : >> { %v813_v54 = vmul.f32 %v1218_v12, %v812_v22 }
 0x1de   : >> { %v833_v63 = vmul.f32 %v1220_v14, %v832_v19 }
 0x1df   : >> { %v814_v1 = vadd.f32 %v1218_v12, %v813_v54 }
 0x1e0   : >> { %v834_v62 = vadd.f32 %v1220_v14, %v833_v63 }
 0x1e1   : >> { %v818_v59 = vsel %vm817_vm2, %v1218_v12, %v814_v1 }
 0x1e2   : >> { %v823_v0 = vsel %vm820_vm3, %v822_v55, %v818_v59  ;;  %v838_v13 = vsel %vm837_vm6, %v1220_v14, %v834_v62 }
 0x1e3   : >> { %v849_v7 = vmul.f32 %v848_v53, %v823_v0  ;;  %v843_v15 = vsel %vm840_vm7, %v842_v11, %v838_v13 }
 0x1e4   : >> { %v852_v56 = vsub.f32 1.0, %v843_v15  ;;  %v854_v2 = vmul.f32 %v1273_v17, %v843_v15 }
 0x1e5   : >> { %v850_v9 = vadd.f32 %v849_v7, %v744_v51 }
 0x1e7   : >> { %1221 = vtanh.f32 %v850_v9 }
 0x1ed   : >> { %v1222_v57 = vpop.eup %1221 }
 0x1ee   : >> { %v853_v60 = vmul.f32 %v1222_v57, %v852_v56  ;;  %728 = sbr.rel (!%p726_p9) target bundleno = 296 (0x128), region = 133 }
 0x1f0   : >> { %v855_v17 = vadd.f32 %v854_v2, %v853_v60  }
 0x1f2   : >> { %857 = vst [vmem:[%s856_s14] sm:$0xff] %v855_v17 }
 0x1f3   : > { %865 = sbr.rel (!%p1338_p3) target bundleno = 522 (0x20a), region = 55  ;;  %s1102_s15 = sshll.u32 (%p1338_p3), %s1261_s20, 3 }
 0x1f4   : > { %s874_s18 = scalar_lea.vmem (%p1338_p3), %s1916_s5, %s1102_s15 }
 0x1f9   : > { %v933_v4 = vld [vmem:[%s1790_s6] sm:$0xff]  ;;  %v935_v6 = vld [vmem:[%s1790_s6 + $0x8] sm:$0xff]  ;;  %v937_v20 = vld [vmem:[%s1790_s6 + $0x10] sm:$0xff] }
 0x1fa   : > { %934 = vst [vmem:[%s874_s18] sm:$0xff] %v933_v4  ;;  %v939_v23 = vld [vmem:[%s1790_s6 + $0x18] sm:$0xff]  ;;  %v941_v24 = vld [vmem:[%s1790_s6 + $0x20] sm:$0xff]  ;;  %v943_v25 = vld [vmem:[%s1790_s6 + $0x28] sm:$0xff] }
 0x1fb   : > { %936 = vst [vmem:[%s874_s18 + $0x10] sm:$0xff] %v935_v6  ;;  %v945_v26 = vld [vmem:[%s1790_s6 + $0x30] sm:$0xff]  ;;  %v947_v27 = vld [vmem:[%s1790_s6 + $0x38] sm:$0xff]  ;;  %v949_v28 = vld [vmem:[%s1790_s6 + $0x40] sm:$0xff] }
 0x1fc   : > { %938 = vst [vmem:[%s874_s18 + $0x20] sm:$0xff] %v937_v20  ;;  %v951_v29 = vld [vmem:[%s1790_s6 + $0x48] sm:$0xff]  ;;  %v953_v30 = vld [vmem:[%s1790_s6 + $0x50] sm:$0xff]  ;;  %v955_v31 = vld [vmem:[%s1790_s6 + $0x58] sm:$0xff] }
 0x1fd   : > { %940 = vst [vmem:[%s874_s18 + $0x30] sm:$0xff] %v939_v23  ;;  %v957_v32 = vld [vmem:[%s1790_s6 + $0x60] sm:$0xff]  ;;  %v959_v33 = vld [vmem:[%s1790_s6 + $0x68] sm:$0xff]  ;;  %v961_v34 = vld [vmem:[%s1790_s6 + $0x70] sm:$0xff] }
 0x1fe   : > { %942 = vst [vmem:[%s874_s18 + $0x40] sm:$0xff] %v941_v24  ;;  %v963_v35 = vld [vmem:[%s1790_s6 + $0x78] sm:$0xff] }
 0x1ff   : > { %944 = vst [vmem:[%s874_s18 + $0x50] sm:$0xff] %v943_v25 }
 0x200   : > { %946 = vst [vmem:[%s874_s18 + $0x60] sm:$0xff] %v945_v26 }
 0x201   : > { %948 = vst [vmem:[%s874_s18 + $0x70] sm:$0xff] %v947_v27 }
 0x202   : > { %950 = vst [vmem:[%s874_s18 + $0x80] sm:$0xff] %v949_v28 }
 0x203   : > { %952 = vst [vmem:[%s874_s18 + $0x90] sm:$0xff] %v951_v29 }
 0x204   : > { %954 = vst [vmem:[%s874_s18 + $0xa0] sm:$0xff] %v953_v30 }
 0x205   : > { %956 = vst [vmem:[%s874_s18 + $0xb0] sm:$0xff] %v955_v31 }
 0x206   : > { %958 = vst [vmem:[%s874_s18 + $0xc0] sm:$0xff] %v957_v32 }
 0x207   : > { %960 = vst [vmem:[%s874_s18 + $0xd0] sm:$0xff] %v959_v33 }
 0x208   : > { %962 = vst [vmem:[%s874_s18 + $0xe0] sm:$0xff] %v961_v34 }
 0x209   : > { %964 = vst [vmem:[%s874_s18 + $0xf0] sm:$0xff] %v963_v35 }
 0x20a PF: > { %s15_s22 = sadd.s32 1, %s1269_s22   ;;  %s1960_s18 = smov %s1257_s19 }
 0x20b   : > { %p12_p10 = scmp.ge.s32.totalorder %s15_s22, 4   ;;  %s1961_s19 = smov %s1347_s28 }
 0x20c   : > { %s1962_s20 = smov %s1265_s21  ;;  %s1963_s21 = smov %s1965_s24 }
 0x20d   :  { %14 = sbr.rel (!%p12_p10) target bundleno = 3 (0x3), region = 144 }

// kernel: cnn_gru_forward.6
= control target key start
LH: loop header
LB: loop body
LE: loop exit
PB: predicated region body
PF: predicated region fallthrough
CT: control target
= control target key end

     0   :  { %s1553_s18 = smov 0   ;;  %s1555_s19 = smov 0   ;;  %s2268_s0 = inlined_call_operand.vmem [shape: f32[1,128,256], index: 0, kind: input, shape index: {}]   ;;  %s2269_s1 = inlined_call_operand.vmem [shape: f32[2,256,384], index: 1, kind: input, shape index: {}]   ;;  %s2270_s2 = inlined_call_operand.vmem [shape: f32[2,1,384], index: 2, kind: input, shape index: {}]   ;;  %s2271_s3 = inlined_call_operand.vmem [shape: f32[2,128,384], index: 3, kind: input, shape index: {}]   ;;  %s2272_s4 = inlined_call_operand.vmem [shape: f32[2,1,128], index: 4, kind: input, shape index: {}]   ;;  %s2273_s5 = inlined_call_operand.vmem [shape: f32[1,128,256], index: 5, kind: output, shape index: {}]  }
   0x1   :  { %s1557_s20 = smov 0   ;;  %s1559_s21 = smov 0  }
   0x2   :  { %s1561_s22 = smov 0  }
   0x3 LB: > { %s1347_s23 = sadd.s32 4294967295, %s1513_s22   ;;  %s27_s24 = sadd.s32 1, %s1509_s21  ;;  %s1513_s22 = sphi %s1561_s22, %s15_s22   ;;  %s1509_s21 = sphi %s1559_s21, %s2314_s21   ;;  %s1505_s20 = sphi %s1557_s20, %s2313_s20   ;;  %s1501_s19 = sphi %s1555_s19, %s2312_s19   ;;  %s1497_s18 = sphi %s1553_s18, %s2311_s18  }
   0x4   : > { %p29_p0 = scmp.ge.s32.totalorder %s27_s24, 2  ;;  %s186_s25 = sadd.s32 1, %s1501_s19 }
   0x5   : > { %p196_p1 = scmp.ne.s32.totalorder %s1501_s19, %s1497_s18  ;;  %p197_p2 = scmp.eq.s32.totalorder %s1347_s23, 1 }
   0x6   : > { %s2316_s24 = smov (%p29_p0, %s27_s24), 0  ;;  %p1352_p4 = scmp.ge.s32.totalorder %s1513_s22, 1 }
   0x7   : > { %p1582_p3 = por %p197_p2, %p196_p1  ;;  %s182_s27 = ssub.s32 %s1509_s21, %s2316_s24 }
   0x8   : > { %p268_p5 = scmp.lt.s32.totalorder %s1513_s22, 3  ;;  %p184_p6 = scmp.eq.s32.totalorder %s182_s27, 0 }
   0xa   : > { %p269_p7 = pnand %p1352_p4, %p268_p5 }
   0xb   : > { %s1591_s28 = scalar_select %p184_p6, %s1501_s19, %s186_s25  }
   0xc   : > { %272 = sbr.rel (%p269_p7) target bundleno = 616 (0x268), region = 40 }
  0x11   : > { %p332_p8 = scmp.lt.s32.totalorder %s1505_s20, 1  ;;  %s314_s29 = sand.u32 1, %s1497_s18  }
  0x12   : > { %s1594_s30 = sshll.u32 %s314_s29, 7 }
  0x13   : > { %s1597_s6 = scalar_select %p332_p8, %s1505_s20, 1 }
  0x15   : > { %s1397_s7 = smul.u32 768, %s1597_s6  ;;  %s348_s10 = scalar_lea.vmem %s2272_s4, %s1597_s6 }
  0x16   : > { %s1399_s11 = smul.u32 384, %s1597_s6  ;;  %v1605_v0 = vld [vmem:[%s348_s10] sm:$0x1] }
  0x17   : > { %2275 = vst [vmem:[#allocation5_spill] sm:$0xff] %v1605_v0  ;;  %s1610_s14 = scalar_lea.vmem %s2269_s1, %s1397_s7  ;;  %s1398_s27 = smul.u32 3, %s1597_s6 }
  0x18   : > { %s1615_s17 = scalar_lea.vmem %s2271_s3, %s1399_s11  ;;  %v436_v1 = vld [vmem:[%s1610_s14 + $0x168] sm:$0xff]  ;;  %v433_v2 = vld [vmem:[%s1610_s14 + $0x150] sm:$0xff]  ;;  %v430_v52 = vld [vmem:[%s1610_s14 + $0x138] sm:$0xff]  ;;  %s2147_s6 = scalar_lea.vmem [#allocation4], %s1594_s30 }
  0x19   : > { %v484_v3 = vld [vmem:[%s1610_s14 + $0x2e8] sm:$0xff]  ;;  %1365 = vmatpush.msra.mxu2 %v436_v1  ;;  %v1621_v4 = vld [vmem:[%s1615_s17] sm:$0xff]  ;;  %v1627_v6 = vld [vmem:[%s1615_s17 + $0x10] sm:$0xff]  ;;  %495 = vmatpush.msra.mxu0 %v436_v1  ;;  %s340_s8 = scalar_lea.vmem %s2270_s2, %s1398_s27 }
  0x1a   : > { %2276 = vst [vmem:[#allocation6_spill] sm:$0xff] %v1621_v4  ;;  %v1624_v5 = vld [vmem:[%s1615_s17 + $0x8] sm:$0xff]  ;;  %1381 = vmatpush.msra.mxu3 %v484_v3  ;;  %v1630_v7 = vld [vmem:[%s1615_s17 + $0x18] sm:$0xff]  ;;  %v1633_v8 = vld [vmem:[%s1615_s17 + $0x20] sm:$0xff]  ;;  %560 = vmatpush.msra.mxu1 %v484_v3 }
  0x1b   : > { %2277 = vst [vmem:[#allocation7_spill] sm:$0xff] %v1624_v5  ;;  %v1636_v9 = vld [vmem:[%s1615_s17 + $0x28] sm:$0xff]  ;;  %v1639_v10 = vld [vmem:[%s1615_s17 + $0x30] sm:$0xff]  ;;  %v1642_v11 = vld [vmem:[%s1615_s17 + $0x38] sm:$0xff]  ;;  %1366 = vmatpush.msra.mxu2 %v433_v2  ;;  %496 = vmatpush.msra.mxu0 %v433_v2 }
  0x1c   : > { %2278 = vst [vmem:[#allocation8_spill] sm:$0xff] %v1627_v6  ;;  %v1645_v12 = vld [vmem:[%s1615_s17 + $0x40] sm:$0xff]  ;;  %v1648_v13 = vld [vmem:[%s1615_s17 + $0x48] sm:$0xff]  ;;  %v1651_v14 = vld [vmem:[%s1615_s17 + $0x50] sm:$0xff] }
  0x1d   : > { %2279 = vst [vmem:[#allocation9_spill] sm:$0xff] %v1630_v7  ;;  %v1654_v15 = vld [vmem:[%s1615_s17 + $0x58] sm:$0xff]  ;;  %v1657_v16 = vld [vmem:[%s1615_s17 + $0x60] sm:$0xff]  ;;  %v1660_v17 = vld [vmem:[%s1615_s17 + $0x68] sm:$0xff]  ;;  %1367 = vmatpush.msra.mxu2 %v430_v52  ;;  %497 = vmatpush.msra.mxu0 %v430_v52 }
  0x1e   : > { %2280 = vst [vmem:[#allocation10_spill] sm:$0xff] %v1633_v8  ;;  %v1663_v18 = vld [vmem:[%s1615_s17 + $0x70] sm:$0xff]  ;;  %v1666_v19 = vld [vmem:[%s1615_s17 + $0x78] sm:$0xff]  ;;  %v1669_v20 = vld [vmem:[%s1615_s17 + $0x80] sm:$0xff] }
  0x1f   : > { %2281 = vst [vmem:[#allocation11_spill] sm:$0xff] %v1636_v9  ;;  %v1672_v21 = vld [vmem:[%s1615_s17 + $0x88] sm:$0xff]  ;;  %v1675_v22 = vld [vmem:[%s1615_s17 + $0x90] sm:$0xff]  ;;  %v1678_v23 = vld [vmem:[%s1615_s17 + $0x98] sm:$0xff] }
  0x20   : > { %2282 = vst [vmem:[#allocation12_spill] sm:$0xff] %v1639_v10  ;;  %v1681_v24 = vld [vmem:[%s1615_s17 + $0xa0] sm:$0xff]  ;;  %v1684_v25 = vld [vmem:[%s1615_s17 + $0xa8] sm:$0xff]  ;;  %v1687_v26 = vld [vmem:[%s1615_s17 + $0xb0] sm:$0xff] }
  0x21   : > { %2283 = vst [vmem:[#allocation13_spill] sm:$0xff] %v1642_v11  ;;  %v1690_v27 = vld [vmem:[%s1615_s17 + $0xb8] sm:$0xff]  ;;  %v1693_v28 = vld [vmem:[%s1615_s17 + $0xc0] sm:$0xff]  ;;  %v1696_v29 = vld [vmem:[%s1615_s17 + $0xc8] sm:$0xff] }
  0x22   : > { %2284 = vst [vmem:[#allocation14_spill] sm:$0xff] %v1645_v12  ;;  %v1699_v30 = vld [vmem:[%s1615_s17 + $0xd0] sm:$0xff]  ;;  %v1702_v31 = vld [vmem:[%s1615_s17 + $0xd8] sm:$0xff]  ;;  %v1705_v32 = vld [vmem:[%s1615_s17 + $0xe0] sm:$0xff] }
  0x23   : > { %2285 = vst [vmem:[#allocation15_spill] sm:$0xff] %v1648_v13  ;;  %v1708_v33 = vld [vmem:[%s1615_s17 + $0xe8] sm:$0xff]  ;;  %v1711_v34 = vld [vmem:[%s1615_s17 + $0xf0] sm:$0xff]  ;;  %v1714_v35 = vld [vmem:[%s1615_s17 + $0xf8] sm:$0xff] }
  0x24   : > { %2286 = vst [vmem:[#allocation16_spill] sm:$0xff] %v1651_v14  ;;  %v1717_v36 = vld [vmem:[%s1615_s17 + $0x100] sm:$0xff]  ;;  %v1720_v37 = vld [vmem:[%s1615_s17 + $0x108] sm:$0xff]  ;;  %v1723_v38 = vld [vmem:[%s1615_s17 + $0x110] sm:$0xff] }
  0x25   : > { %2287 = vst [vmem:[#allocation17_spill] sm:$0xff] %v1654_v15  ;;  %v1726_v39 = vld [vmem:[%s1615_s17 + $0x118] sm:$0xff]  ;;  %v1729_v40 = vld [vmem:[%s1615_s17 + $0x120] sm:$0xff]  ;;  %v1732_v41 = vld [vmem:[%s1615_s17 + $0x128] sm:$0xff] }
  0x26   : > { %2288 = vst [vmem:[#allocation18_spill] sm:$0xff] %v1657_v16  ;;  %v1735_v42 = vld [vmem:[%s1615_s17 + $0x130] sm:$0xff]  ;;  %v1738_v43 = vld [vmem:[%s1615_s17 + $0x138] sm:$0xff]  ;;  %v1741_v44 = vld [vmem:[%s1615_s17 + $0x140] sm:$0xff] }
  0x27   : > { %2289 = vst [vmem:[#allocation19_spill] sm:$0xff] %v1660_v17  ;;  %v1744_v45 = vld [vmem:[%s1615_s17 + $0x148] sm:$0xff]  ;;  %v1747_v46 = vld [vmem:[%s1615_s17 + $0x150] sm:$0xff]  ;;  %v1750_v47 = vld [vmem:[%s1615_s17 + $0x158] sm:$0xff] }
  0x28   : > { %2290 = vst [vmem:[#allocation20_spill] sm:$0xff] %v1663_v18  ;;  %v1753_v48 = vld [vmem:[%s1615_s17 + $0x160] sm:$0xff]  ;;  %v1756_v49 = vld [vmem:[%s1615_s17 + $0x168] sm:$0xff]  ;;  %v1759_v50 = vld [vmem:[%s1615_s17 + $0x170] sm:$0xff] }
  0x29   : > { %2291 = vst [vmem:[#allocation21_spill] sm:$0xff] %v1669_v20  ;;  %v1762_v51 = vld [vmem:[%s1615_s17 + $0x178] sm:$0xff]  ;;  %v481_v53 = vld [vmem:[%s1610_s14 + $0x2d0] sm:$0xff]  ;;  %v427_v54 = vld [vmem:[%s1610_s14 + $0x120] sm:$0xff] }
  0x2a   : > { %2292 = vst [vmem:[#allocation22_spill] sm:$0xff] %v1672_v21  ;;  %1382 = vmatpush.msra.mxu3 %v481_v53  ;;  %v478_v55 = vld [vmem:[%s1610_s14 + $0x2b8] sm:$0xff]  ;;  %v424_v56 = vld [vmem:[%s1610_s14 + $0x108] sm:$0xff]  ;;  %v475_v57 = vld [vmem:[%s1610_s14 + $0x2a0] sm:$0xff]  ;;  %561 = vmatpush.msra.mxu1 %v481_v53 }
  0x2b   : > { %1368 = vmatpush.msra.mxu2 %v427_v54  ;;  %v421_v58 = vld [vmem:[%s1610_s14 + $0xf0] sm:$0xff]  ;;  %v472_v59 = vld [vmem:[%s1610_s14 + $0x288] sm:$0xff]  ;;  %498 = vmatpush.msra.mxu0 %v427_v54  ;;  %v418_v60 = vld [vmem:[%s1610_s14 + $0xd8] sm:$0xff] }
  0x2c   : > { %1383 = vmatpush.msra.mxu3 %v478_v55  ;;  %562 = vmatpush.msra.mxu1 %v478_v55  ;;  %v469_v61 = vld [vmem:[%s1610_s14 + $0x270] sm:$0xff]  ;;  %v415_v62 = vld [vmem:[%s1610_s14 + $0xc0] sm:$0xff]  ;;  %v466_v63 = vld [vmem:[%s1610_s14 + $0x258] sm:$0xff] }
  0x2d   : > { %1369 = vmatpush.msra.mxu2 %v424_v56  ;;  %499 = vmatpush.msra.mxu0 %v424_v56  ;;  %v412_v1 = vld [vmem:[%s1610_s14 + $0xa8] sm:$0xff]  ;;  %v463_v2 = vld [vmem:[%s1610_s14 + $0x240] sm:$0xff]  ;;  %v409_v3 = vld [vmem:[%s1610_s14 + $0x90] sm:$0xff] }
  0x2e   : > { %1384 = vmatpush.msra.mxu3 %v475_v57  ;;  %563 = vmatpush.msra.mxu1 %v475_v57  ;;  %v460_v52 = vld [vmem:[%s1610_s14 + $0x228] sm:$0xff]  ;;  %v406_v53 = vld [vmem:[%s1610_s14 + $0x78] sm:$0xff]  ;;  %v457_v54 = vld [vmem:[%s1610_s14 + $0x210] sm:$0xff] }
  0x2f   : > { %1370 = vmatpush.msra.mxu2 %v421_v58  ;;  %500 = vmatpush.msra.mxu0 %v421_v58  ;;  %v403_v55 = vld [vmem:[%s1610_s14 + $0x60] sm:$0xff]  ;;  %v454_v56 = vld [vmem:[%s1610_s14 + $0x1f8] sm:$0xff]  ;;  %v400_v57 = vld [vmem:[%s1610_s14 + $0x48] sm:$0xff] }
  0x30   : > { %1385 = vmatpush.msra.mxu3 %v472_v59  ;;  %564 = vmatpush.msra.mxu1 %v472_v59  ;;  %v451_v58 = vld [vmem:[%s1610_s14 + $0x1e0] sm:$0xff]  ;;  %v397_v59 = vld [vmem:[%s1610_s14 + $0x30] sm:$0xff]  ;;  %v470_v6 = vld [vmem:[%s1610_s14 + $0x278] sm:$0xff] }
  0x31   : > { %1371 = vmatpush.msra.mxu2 %v418_v60  ;;  %501 = vmatpush.msra.mxu0 %v418_v60  ;;  %v448_v60 = vld [vmem:[%s1610_s14 + $0x1c8] sm:$0xff]  ;;  %v429_v0 = vld [vmem:[%s1610_s14 + $0x130] sm:$0xff]  ;;  %v474_v5 = vld [vmem:[%s1610_s14 + $0x298] sm:$0xff] }
  0x32   : > { %1386 = vmatpush.msra.mxu3 %v469_v61  ;;  %565 = vmatpush.msra.mxu1 %v469_v61  ;;  %v394_v61 = vld [vmem:[%s1610_s14 + $0x18] sm:$0xff]  ;;  %v423_v4 = vld [vmem:[%s1610_s14 + $0x100] sm:$0xff]  ;;  %v413_v8 = vld [vmem:[%s1610_s14 + $0xb0] sm:$0xff] }
  0x33   : > { %1372 = vmatpush.msra.mxu2 %v415_v62  ;;  %502 = vmatpush.msra.mxu0 %v415_v62  ;;  %v445_v62 = vld [vmem:[%s1610_s14 + $0x1b0] sm:$0xff]  ;;  %v471_v9 = vld [vmem:[%s1610_s14 + $0x280] sm:$0xff]  ;;  %v414_v12 = vld [vmem:[%s1610_s14 + $0xb8] sm:$0xff] }
  0x34   : > { %1387 = vmatpush.msra.mxu3 %v466_v63  ;;  %566 = vmatpush.msra.mxu1 %v466_v63  ;;  %v391_v63 = vld [vmem:[%s1610_s14] sm:$0xff]  ;;  %v417_v7 = vld [vmem:[%s1610_s14 + $0xd0] sm:$0xff]  ;;  %v462_v11 = vld [vmem:[%s1610_s14 + $0x238] sm:$0xff] }
  0x35   : > { %1373 = vmatpush.msra.mxu2 %v412_v1  ;;  %503 = vmatpush.msra.mxu0 %v412_v1  ;;  %v442_v1 = vld [vmem:[%s1610_s14 + $0x198] sm:$0xff]  ;;  %v404_v10 = vld [vmem:[%s1610_s14 + $0x68] sm:$0xff]  ;;  %v405_v14 = vld [vmem:[%s1610_s14 + $0x70] sm:$0xff] }
  0x36   : > { %1388 = vmatpush.msra.mxu3 %v463_v2  ;;  %567 = vmatpush.msra.mxu1 %v463_v2  ;;  %v1795_v2 = vld [vmem:[%s2268_s0 + $0x80] sm:$0xff]  ;;  %v408_v15 = vld [vmem:[%s1610_s14 + $0x88] sm:$0xff]  ;;  %v453_v13 = vld [vmem:[%s1610_s14 + $0x1f0] sm:$0xff] }
  0x37   : > { %1374 = vmatpush.msra.mxu2 %v409_v3  ;;  %504 = vmatpush.msra.mxu0 %v409_v3  ;;  %v437_v3 = vld [vmem:[%s1610_s14 + $0x170] sm:$0xff]  ;;  %v395_v18 = vld [vmem:[%s1610_s14 + $0x20] sm:$0xff]  ;;  %v396_v16 = vld [vmem:[%s1610_s14 + $0x28] sm:$0xff] }
  0x38   : > { %1389 = vmatpush.msra.mxu3 %v460_v52  ;;  %568 = vmatpush.msra.mxu1 %v460_v52  ;;  %v439_v52 = vld [vmem:[%s1610_s14 + $0x180] sm:$0xff]  ;;  %v393_v21 = vld [vmem:[%s1610_s14 + $0x10] sm:$0xff] }
  0x39   : > { %1375 = vmatpush.msra.mxu2 %v406_v53  ;;  %505 = vmatpush.msra.mxu0 %v406_v53  ;;  %v1802_v53 = vld [vmem:[%s2268_s0 + $0x88] sm:$0xff]  ;;  %v399_v17 = vld [vmem:[%s1610_s14 + $0x40] sm:$0xff]  ;;  %v441_v20 = vld [vmem:[%s1610_s14 + $0x190] sm:$0xff] }
  0x3a   : > { %1390 = vmatpush.msra.mxu3 %v457_v54  ;;  %569 = vmatpush.msra.mxu1 %v457_v54  ;;  %v485_v54 = vld [vmem:[%s1610_s14 + $0x2f0] sm:$0xff] }
  0x3b   : > { %1376 = vmatpush.msra.mxu2 %v403_v55  ;;  %506 = vmatpush.msra.mxu0 %v403_v55  ;;  %v434_v55 = vld [vmem:[%s1610_s14 + $0x158] sm:$0xff] }
  0x3c   : > { %1391 = vmatpush.msra.mxu3 %v454_v56  ;;  %570 = vmatpush.msra.mxu1 %v454_v56  ;;  %v1810_v56 = vld [vmem:[%s2268_s0] sm:$0xff] }
  0x3d   : > { %1377 = vmatpush.msra.mxu2 %v400_v57  ;;  %507 = vmatpush.msra.mxu0 %v400_v57  ;;  %v482_v57 = vld [vmem:[%s1610_s14 + $0x2d8] sm:$0xff] }
  0x3e   : > { %1392 = vmatpush.msra.mxu3 %v451_v58  ;;  %571 = vmatpush.msra.mxu1 %v451_v58  ;;  %v438_v58 = vld [vmem:[%s1610_s14 + $0x178] sm:$0xff] }
  0x3f   : > { %1378 = vmatpush.msra.mxu2 %v397_v59  ;;  %508 = vmatpush.msra.mxu0 %v397_v59  ;;  %v1818_v59 = vld [vmem:[%s2268_s0 + $0x8] sm:$0xff] }
  0x40   : > { %1393 = vmatpush.msra.mxu3 %v448_v60  ;;  %572 = vmatpush.msra.mxu1 %v448_v60  ;;  %v431_v60 = vld [vmem:[%s1610_s14 + $0x140] sm:$0xff] }
  0x41   : > { %1379 = vmatpush.msra.mxu2 %v394_v61  ;;  %509 = vmatpush.msra.mxu0 %v394_v61  ;;  %v486_v61 = vld [vmem:[%s1610_s14 + $0x2f8] sm:$0xff] }
  0x42   : > { %1394 = vmatpush.msra.mxu3 %v445_v62  ;;  %573 = vmatpush.msra.mxu1 %v445_v62  ;;  %v479_v62 = vld [vmem:[%s1610_s14 + $0x2c0] sm:$0xff] }
  0x43   : > { %1380 = vmatpush.msra.mxu2 %v391_v63  ;;  %510 = vmatpush.msra.mxu0 %v391_v63  ;;  %v1827_v63 = vld [vmem:[%s2268_s0 + $0x90] sm:$0xff] }
  0x44   : > { %1395 = vmatpush.msra.mxu3 %v442_v1  ;;  %535 = vmatmul.f32.vlgmr.msra.gmra.mxu2 %v1795_v2 }
  0x45   : > { %625 = vmatpush.msrb.mxu2 %v437_v3  ;;  %574 = vmatpush.msra.mxu1 %v442_v1  ;;  %v435_v1 = vld [vmem:[%s1610_s14 + $0x160] sm:$0xff]  ;;  %v428_v3 = vld [vmem:[%s1610_s14 + $0x128] sm:$0xff] }
  0x46   : > { %1396 = vmatpush.msra.mxu3 %v439_v52  ;;  %511 = vmatmul.f32.vlgmr.msra.gmra.mxu0 %v1810_v56 }
  0x47   : > { %600 = vmatmul.f32.vlgmr.msra.gmra.mxu3 %v1802_v53  ;;  %626 = vmatpush.msrb.mxu2 %v434_v55  ;;  %v432_v55 = vld [vmem:[%s1610_s14 + $0x148] sm:$0xff] }
  0x48   : > { %690 = vmatpush.msrb.mxu3 %v485_v54  ;;  %575 = vmatpush.msra.mxu1 %v439_v52  ;;  %v483_v54 = vld [vmem:[%s1610_s14 + $0x2e0] sm:$0xff]  ;;  %v1836_v52 = vld [vmem:[%s2268_s0 + $0x98] sm:$0xff] }
  0x49   : > { %755 = vmatpush.msrb.mxu0 %v438_v58  ;;  %576 = vmatmul.f32.vlgmr.msra.gmra.mxu1 %v1818_v59  ;;  %v425_v58 = vld [vmem:[%s1610_s14 + $0x110] sm:$0xff] }
  0x4a   : > { %691 = vmatpush.msrb.mxu3 %v482_v57  ;;  %627 = vmatpush.msrb.mxu2 %v431_v60  ;;  %v476_v57 = vld [vmem:[%s1610_s14 + $0x2a8] sm:$0xff]  ;;  %v1845_v60 = vld [vmem:[%s2268_s0 + $0x10] sm:$0xff] }
  0x4b   : > { %820 = vmatpush.msrb.mxu1 %v486_v61  ;;  %756 = vmatpush.msrb.mxu0 %v435_v1  ;;  %v480_v61 = vld [vmem:[%s1610_s14 + $0x2c8] sm:$0xff]  ;;  %v1854_v1 = vld [vmem:[%s2268_s0 + $0x18] sm:$0xff] }
  0x4c   : > { %692 = vmatpush.msrb.mxu3 %v479_v62  ;;  %538 = vmatmul.f32.gmra.mxu2 %v1827_v63  ;;  %v473_v62 = vld [vmem:[%s1610_s14 + $0x290] sm:$0xff] }
  0x4d   : > { %628 = vmatpush.msrb.mxu2 %v428_v3  ;;  %821 = vmatpush.msrb.mxu1 %v483_v54  ;;  %v422_v3 = vld [vmem:[%s1610_s14 + $0xf8] sm:$0xff]  ;;  %v477_v54 = vld [vmem:[%s1610_s14 + $0x2b0] sm:$0xff] }
  0x4e   : > { %757 = vmatpush.msrb.mxu0 %v432_v55  ;;  %693 = vmatpush.msrb.mxu3 %v476_v57  ;;  %v1863_v55 = vld [vmem:[%s2268_s0 + $0xa0] sm:$0xff]  ;;  %v426_v57 = vld [vmem:[%s1610_s14 + $0x118] sm:$0xff] }
  0x4f   : > { %603 = vmatmul.f32.gmra.mxu3 %v1836_v52  ;;  %629 = vmatpush.msrb.mxu2 %v425_v58  ;;  %v419_v58 = vld [vmem:[%s1610_s14 + $0xe0] sm:$0xff] }
  0x50   : > { %514 = vmatmul.f32.gmra.mxu0 %v1845_v60  ;;  %822 = vmatpush.msrb.mxu1 %v480_v61  ;;  %v1872_v61 = vld [vmem:[%s2268_s0 + $0xa8] sm:$0xff] }
  0x51   : > { %694 = vmatpush.msrb.mxu3 %v473_v62  ;;  %758 = vmatpush.msrb.mxu0 %v429_v0  ;;  %v467_v0 = vld [vmem:[%s1610_s14 + $0x260] sm:$0xff]  ;;  %v416_v62 = vld [vmem:[%s1610_s14 + $0xc8] sm:$0xff] }
  0x52   : > { %579 = vmatmul.f32.gmra.mxu1 %v1854_v1  ;;  %630 = vmatpush.msrb.mxu2 %v422_v3  ;;  %v1881_v3 = vld [vmem:[%s2268_s0 + $0x20] sm:$0xff] }
  0x53   : > { %823 = vmatpush.msrb.mxu1 %v477_v54  ;;  %695 = vmatpush.msrb.mxu3 %v470_v6  ;;  %v464_v6 = vld [vmem:[%s1610_s14 + $0x248] sm:$0xff] }
  0x54   : > { %541 = vmatmul.f32.gmra.mxu2 %v1863_v55  ;;  %759 = vmatpush.msrb.mxu0 %v426_v57  ;;  %v420_v54 = vld [vmem:[%s1610_s14 + $0xe8] sm:$0xff] }
  0x55   : > { %631 = vmatpush.msrb.mxu2 %v419_v58  ;;  %824 = vmatpush.msrb.mxu1 %v474_v5  ;;  %v1890_v57 = vld [vmem:[%s2268_s0 + $0x28] sm:$0xff]  ;;  %v461_v58 = vld [vmem:[%s1610_s14 + $0x230] sm:$0xff] }
  0x56   : > { %760 = vmatpush.msrb.mxu0 %v423_v4  ;;  %696 = vmatpush.msrb.mxu3 %v467_v0  ;;  %v468_v5 = vld [vmem:[%s1610_s14 + $0x268] sm:$0xff]  ;;  %v1899_v4 = vld [vmem:[%s2268_s0 + $0xb0] sm:$0xff]  ;;  %v410_v0 = vld [vmem:[%s1610_s14 + $0x98] sm:$0xff] }
  0x57   : > { %606 = vmatmul.f32.gmra.mxu3 %v1872_v61  ;;  %632 = vmatpush.msrb.mxu2 %v416_v62  ;;  %v465_v62 = vld [vmem:[%s1610_s14 + $0x250] sm:$0xff] }
  0x58   : > { %517 = vmatmul.f32.gmra.mxu0 %v1881_v3  ;;  %825 = vmatpush.msrb.mxu1 %v471_v9  ;;  %v1908_v9 = vld [vmem:[%s2268_s0 + $0xb8] sm:$0xff] }
  0x59   : > { %697 = vmatpush.msrb.mxu3 %v464_v6  ;;  %761 = vmatpush.msrb.mxu0 %v420_v54  ;;  %v458_v6 = vld [vmem:[%s1610_s14 + $0x218] sm:$0xff]  ;;  %v407_v54 = vld [vmem:[%s1610_s14 + $0x80] sm:$0xff] }
  0x5a   : > { %582 = vmatmul.f32.gmra.mxu1 %v1890_v57  ;;  %633 = vmatpush.msrb.mxu2 %v413_v8  ;;  %v1917_v8 = vld [vmem:[%s2268_s0 + $0x30] sm:$0xff] }
  0x5b   : > { %826 = vmatpush.msrb.mxu1 %v468_v5  ;;  %698 = vmatpush.msrb.mxu3 %v461_v58  ;;  %v455_v5 = vld [vmem:[%s1610_s14 + $0x200] sm:$0xff] }
  0x5c   : > { %544 = vmatmul.f32.gmra.mxu2 %v1899_v4  ;;  %762 = vmatpush.msrb.mxu0 %v417_v7  ;;  %v411_v58 = vld [vmem:[%s1610_s14 + $0xa0] sm:$0xff]  ;;  %v1926_v7 = vld [vmem:[%s2268_s0 + $0x38] sm:$0xff] }
  0x5d   : > { %634 = vmatpush.msrb.mxu2 %v410_v0  ;;  %827 = vmatpush.msrb.mxu1 %v465_v62  ;;  %v459_v0 = vld [vmem:[%s1610_s14 + $0x220] sm:$0xff]  ;;  %v452_v62 = vld [vmem:[%s1610_s14 + $0x1e8] sm:$0xff] }
  0x5e   : > { %763 = vmatpush.msrb.mxu0 %v414_v12  ;;  %699 = vmatpush.msrb.mxu3 %v458_v6  ;;  %v1935_v12 = vld [vmem:[%s2268_s0 + $0xc0] sm:$0xff]  ;;  %v401_v6 = vld [vmem:[%s1610_s14 + $0x50] sm:$0xff] }
  0x5f   : > { %609 = vmatmul.f32.gmra.mxu3 %v1908_v9  ;;  %635 = vmatpush.msrb.mxu2 %v407_v54  ;;  %v456_v54 = vld [vmem:[%s1610_s14 + $0x208] sm:$0xff] }
  0x60   : > { %520 = vmatmul.f32.gmra.mxu0 %v1917_v8  ;;  %828 = vmatpush.msrb.mxu1 %v462_v11  ;;  %v1944_v11 = vld [vmem:[%s2268_s0 + $0xc8] sm:$0xff] }
  0x61   : > { %700 = vmatpush.msrb.mxu3 %v455_v5  ;;  %764 = vmatpush.msrb.mxu0 %v411_v58  ;;  %v449_v5 = vld [vmem:[%s1610_s14 + $0x1d0] sm:$0xff]  ;;  %v398_v58 = vld [vmem:[%s1610_s14 + $0x38] sm:$0xff] }
  0x62   : > { %585 = vmatmul.f32.gmra.mxu1 %v1926_v7  ;;  %636 = vmatpush.msrb.mxu2 %v404_v10  ;;  %v1953_v10 = vld [vmem:[%s2268_s0 + $0x40] sm:$0xff] }
  0x63   : > { %829 = vmatpush.msrb.mxu1 %v459_v0  ;;  %701 = vmatpush.msrb.mxu3 %v452_v62  ;;  %v446_v0 = vld [vmem:[%s1610_s14 + $0x1b8] sm:$0xff] }
  0x64   : > { %547 = vmatmul.f32.gmra.mxu2 %v1935_v12  ;;  %765 = vmatpush.msrb.mxu0 %v408_v15  ;;  %v402_v62 = vld [vmem:[%s1610_s14 + $0x58] sm:$0xff]  ;;  %v1962_v15 = vld [vmem:[%s2268_s0 + $0x48] sm:$0xff] }
  0x65   : > { %637 = vmatpush.msrb.mxu2 %v401_v6  ;;  %830 = vmatpush.msrb.mxu1 %v456_v54  ;;  %v450_v6 = vld [vmem:[%s1610_s14 + $0x1d8] sm:$0xff]  ;;  %v443_v54 = vld [vmem:[%s1610_s14 + $0x1a0] sm:$0xff] }
  0x66   : > { %766 = vmatpush.msrb.mxu0 %v405_v14  ;;  %702 = vmatpush.msrb.mxu3 %v449_v5  ;;  %v1971_v14 = vld [vmem:[%s2268_s0 + $0xd0] sm:$0xff]  ;;  %v392_v5 = vld [vmem:[%s1610_s14 + $0x8] sm:$0xff] }
  0x67   : > { %612 = vmatmul.f32.gmra.mxu3 %v1944_v11  ;;  %638 = vmatpush.msrb.mxu2 %v398_v58  ;;  %v447_v58 = vld [vmem:[%s1610_s14 + $0x1c0] sm:$0xff] }
  0x68   : > { %523 = vmatmul.f32.gmra.mxu0 %v1953_v10  ;;  %831 = vmatpush.msrb.mxu1 %v453_v13  ;;  %v1980_v13 = vld [vmem:[%s2268_s0 + $0xd8] sm:$0xff] }
  0x69   : > { %703 = vmatpush.msrb.mxu3 %v446_v0  ;;  %767 = vmatpush.msrb.mxu0 %v402_v62  ;;  %v440_v0 = vld [vmem:[%s1610_s14 + $0x188] sm:$0xff] }
  0x6a   : > { %588 = vmatmul.f32.gmra.mxu1 %v1962_v15  ;;  %639 = vmatpush.msrb.mxu2 %v395_v18  ;;  %v444_v62 = vld [vmem:[%s1610_s14 + $0x1a8] sm:$0xff]  ;;  %v369_v18 = vld [vmem:[%s2268_s0 + $0x50] sm:$0xff]  ;;  %s2151_s14 = smov 0  }
  0x6b   : > { %832 = vmatpush.msrb.mxu1 %v450_v6  ;;  %704 = vmatpush.msrb.mxu3 %v443_v54  ;;  %v370_v6 = vld [vmem:[%s2268_s0 + $0x58] sm:$0xff]  ;;  %v371_v54 = vld [vmem:[%s2268_s0 + $0x60] sm:$0xff] }
  0x6c   : > { %550 = vmatmul.f32.gmra.mxu2 %v1971_v14  ;;  %768 = vmatpush.msrb.mxu0 %v399_v17  ;;  %v1998_v17 = vld [vmem:[%s2268_s0 + $0xe0] sm:$0xff] }
  0x6d   : > { %640 = vmatpush.msrb.mxu2 %v392_v5  ;;  %833 = vmatpush.msrb.mxu1 %v447_v58  ;;  %v372_v5 = vld [vmem:[%s2268_s0 + $0x68] sm:$0xff]  ;;  %v373_v58 = vld [vmem:[%s2268_s0 + $0x70] sm:$0xff] }
  0x6e   : > { %769 = vmatpush.msrb.mxu0 %v396_v16  ;;  %705 = vmatpush.msrb.mxu3 %v440_v0  ;;  %v2003_v16 = vld [vmem:[%s2268_s0 + $0xe8] sm:$0xff]  ;;  %v374_v0 = vld [vmem:[%s2268_s0 + $0x78] sm:$0xff] }
  0x6f   : > { %615 = vmatmul.f32.gmra.mxu3 %v1980_v13  ;;  %834 = vmatpush.msrb.mxu1 %v444_v62 }
  0x70   : > { %526 = vmatmul.f32.gmra.mxu0 %v369_v18 }
  0x71   : > { %770 = vmatpush.msrb.mxu0 %v393_v21  ;;  %835 = vmatpush.msrb.mxu1 %v441_v20  ;;  %v2016_v20 = vld [vmem:[%s2268_s0 + $0xf0] sm:$0xff]  ;;  %v2021_v21 = vld [vmem:[%s2268_s0 + $0xf8] sm:$0xff] }
  0x72   : > { %591 = vmatmul.f32.gmra.mxu1 %v370_v6 }
  0x74   : > { %553 = vmatmul.f32.gmra.mxu2 %v1998_v17 }
  0x77   : > { %618 = vmatmul.f32.gmra.mxu3 %v2003_v16 }
  0x78   : > { %529 = vmatmul.f32.gmra.mxu0 %v371_v54 }
  0x7a   : > { %594 = vmatmul.f32.gmra.mxu1 %v372_v5 }
  0x7c   : > { %556 = vmatmul.f32.gmra.mxu2 %v2016_v20 }
  0x7f   : > { %621 = vmatmul.f32.gmra.mxu3 %v2021_v21 }
  0x80   : > { %532 = vmatmul.f32.gmra.mxu0 %v373_v58 }
  0x82   : > { %597 = vmatmul.f32.gmra.mxu1 %v374_v0 }
  0x84   : > { %641 = vmatmul.f32.vlgmr.msrb.gmra.mxu2 %v1810_v56 }
  0x87   : > { %706 = vmatmul.f32.vlgmr.msrb.gmra.mxu3 %v1818_v59 }
  0x88   : > { %771 = vmatmul.f32.vlgmr.msrb.gmra.mxu0 %v1810_v56  ;;  %v2055_v56 = vld [vmem:[%s340_s8] sm:$0x7] }
  0x8a   : > { %836 = vmatmul.f32.vlgmr.msrb.gmra.mxu1 %v1818_v59  ;;  %v2058_v59 = vperm.slane %v2055_v56, 0 }
  0x8c   : > { %644 = vmatmul.f32.gmra.mxu2 %v1845_v60 }
  0x8f   : > { %709 = vmatmul.f32.gmra.mxu3 %v1854_v1 }
  0x90   : > { %774 = vmatmul.f32.gmra.mxu0 %v1845_v60 }
  0x92   : > { %839 = vmatmul.f32.gmra.mxu1 %v1854_v1 }
  0x94   : > { %647 = vmatmul.f32.gmra.mxu2 %v1881_v3 }
  0x97   : > { %712 = vmatmul.f32.gmra.mxu3 %v1890_v57 }
  0x98   : > { %777 = vmatmul.f32.gmra.mxu0 %v1881_v3 }
  0x9a   : > { %842 = vmatmul.f32.gmra.mxu1 %v1890_v57 }
  0x9c   : > { %650 = vmatmul.f32.gmra.mxu2 %v1917_v8 }
  0x9f   : > { %715 = vmatmul.f32.gmra.mxu3 %v1926_v7 }
  0xa0   : > { %780 = vmatmul.f32.gmra.mxu0 %v1917_v8 }
  0xa2   : > { %845 = vmatmul.f32.gmra.mxu1 %v1926_v7 }
  0xa4   : > { %653 = vmatmul.f32.gmra.mxu2 %v1953_v10 }
  0xa7   : > { %718 = vmatmul.f32.gmra.mxu3 %v1962_v15 }
  0xa8   : > { %783 = vmatmul.f32.gmra.mxu0 %v1953_v10 }
  0xaa   : > { %848 = vmatmul.f32.gmra.mxu1 %v1962_v15 }
  0xac   : > { %656 = vmatmul.f32.gmra.mxu2 %v369_v18 }
  0xaf   : > { %721 = vmatmul.f32.gmra.mxu3 %v370_v6 }
  0xb0   : > { %786 = vmatmul.f32.gmra.mxu0 %v369_v18 }
  0xb2   : > { %851 = vmatmul.f32.gmra.mxu1 %v370_v6 }
  0xb4   : > { %659 = vmatmul.f32.gmra.mxu2 %v371_v54 }
  0xb7   : > { %724 = vmatmul.f32.gmra.mxu3 %v372_v5 }
  0xb8   : > { %789 = vmatmul.f32.gmra.mxu0 %v371_v54 }
  0xba   : > { %854 = vmatmul.f32.gmra.mxu1 %v372_v5 }
  0xbc   : > { %662 = vmatmul.f32.gmra.mxu2 %v373_v58 }
  0xbf   : > { %727 = vmatmul.f32.gmra.mxu3 %v374_v0 }
  0xc0   : > { %792 = vmatmul.f32.gmra.mxu0 %v373_v58 }
  0xc2   : > { %857 = vmatmul.f32.gmra.mxu1 %v374_v0 }
  0xc3   : > { %v512_v60 = vpop.f32.mrf.mxu0 }
  0xc4   : > { %665 = vmatmul.f32.gmra.mxu2 %v1795_v2  ;;  %v513_v1 = vadd.f32 %v512_v60, %v2058_v59 }
  0xc6   : > { %v577_v57 = vpop.f32.mrf.mxu1 }
  0xc7   : > { %730 = vmatmul.f32.gmra.mxu3 %v1802_v53  ;;  %v536_v3 = vpop.f32.mrf.mxu2  ;;  %v578_v7 = vadd.f32 %v577_v57, %v513_v1 }
  0xc8   : > { %v537_v8 = vadd.f32 %v536_v3, %v2058_v59  ;;  %795 = vmatmul.f32.gmra.mxu0 %v1795_v2 }
  0xc9   : > { %885 = vst [vmem:[#allocation3] sm:$0xff] %v578_v7 }
  0xca   : > { %v601_v10 = vpop.f32.mrf.mxu3  ;;  %860 = vmatmul.f32.gmra.mxu1 %v1802_v53 }
  0xcb   : > { %v602_v15 = vadd.f32 %v601_v10, %v537_v8 }
  0xcc   : > { %668 = vmatmul.f32.gmra.mxu2 %v1827_v63 }
  0xcd   : > { %909 = vst [vmem:[#allocation3 + $0xc0] sm:$0xff] %v602_v15  ;;  %v515_v62 = vpop.f32.mrf.mxu0 }
  0xce   : > { %v516_v18 = vadd.f32 %v515_v62, %v2058_v59 }
  0xcf   : > { %733 = vmatmul.f32.gmra.mxu3 %v1836_v52  ;;  %v539_v6 = vpop.f32.mrf.mxu2  ;;  %v580_v54 = vpop.f32.mrf.mxu1 }
  0xd0   : > { %v540_v5 = vadd.f32 %v539_v6, %v2058_v59  ;;  %v581_v58 = vadd.f32 %v580_v54, %v516_v18  ;;  %798 = vmatmul.f32.gmra.mxu0 %v1827_v63 }
  0xd2   : > { %v604_v2 = vpop.f32.mrf.mxu3  ;;  %888 = vst [vmem:[#allocation3 + $0x18] sm:$0xff] %v581_v58  ;;  %863 = vmatmul.f32.gmra.mxu1 %v1836_v52 }
  0xd3   : > { %v605_v0 = vadd.f32 %v604_v2, %v540_v5 }
  0xd4   : > { %671 = vmatmul.f32.gmra.mxu2 %v1863_v55 }
  0xd5   : > { %912 = vst [vmem:[#allocation3 + $0xd8] sm:$0xff] %v605_v0  ;;  %v518_v53 = vpop.f32.mrf.mxu0 }
  0xd6   : > { %v519_v60 = vadd.f32 %v518_v53, %v2058_v59 }
  0xd7   : > { %736 = vmatmul.f32.gmra.mxu3 %v1872_v61  ;;  %v542_v1 = vpop.f32.mrf.mxu2  ;;  %v583_v3 = vpop.f32.mrf.mxu1 }
  0xd8   : > { %v543_v57 = vadd.f32 %v542_v1, %v2058_v59  ;;  %v584_v8 = vadd.f32 %v583_v3, %v519_v60  ;;  %801 = vmatmul.f32.gmra.mxu0 %v1863_v55 }
  0xda   : > { %v607_v63 = vpop.f32.mrf.mxu3  ;;  %891 = vst [vmem:[#allocation3 + $0x30] sm:$0xff] %v584_v8  ;;  %866 = vmatmul.f32.gmra.mxu1 %v1872_v61 }
  0xdb   : > { %v608_v7 = vadd.f32 %v607_v63, %v543_v57 }
  0xdc   : > { %674 = vmatmul.f32.gmra.mxu2 %v1899_v4 }
  0xdd   : > { %915 = vst [vmem:[#allocation3 + $0xf0] sm:$0xff] %v608_v7  ;;  %v521_v52 = vpop.f32.mrf.mxu0 }
  0xde   : > { %v522_v10 = vadd.f32 %v521_v52, %v2058_v59 }
  0xdf   : > { %739 = vmatmul.f32.gmra.mxu3 %v1908_v9  ;;  %v545_v15 = vpop.f32.mrf.mxu2  ;;  %v586_v62 = vpop.f32.mrf.mxu1 }
  0xe0   : > { %v546_v18 = vadd.f32 %v545_v15, %v2058_v59  ;;  %v587_v6 = vadd.f32 %v586_v62, %v522_v10  ;;  %804 = vmatmul.f32.gmra.mxu0 %v1899_v4 }
  0xe2   : > { %v610_v55 = vpop.f32.mrf.mxu3  ;;  %894 = vst [vmem:[#allocation3 + $0x48] sm:$0xff] %v587_v6  ;;  %869 = vmatmul.f32.gmra.mxu1 %v1908_v9 }
  0xe3   : > { %v611_v54 = vadd.f32 %v610_v55, %v546_v18 }
  0xe4   : > { %677 = vmatmul.f32.gmra.mxu2 %v1935_v12 }
  0xe5   : > { %918 = vst [vmem:[#allocation3 + $0x108] sm:$0xff] %v611_v54  ;;  %v524_v61 = vpop.f32.mrf.mxu0 }
  0xe6   : > { %v525_v5 = vadd.f32 %v524_v61, %v2058_v59 }
  0xe7   : > { %742 = vmatmul.f32.gmra.mxu3 %v1944_v11  ;;  %v548_v58 = vpop.f32.mrf.mxu2  ;;  %v589_v2 = vpop.f32.mrf.mxu1 }
  0xe8   : > { %v549_v0 = vadd.f32 %v548_v58, %v2058_v59  ;;  %v590_v53 = vadd.f32 %v589_v2, %v525_v5  ;;  %807 = vmatmul.f32.gmra.mxu0 %v1935_v12 }
  0xea   : > { %v613_v4 = vpop.f32.mrf.mxu3  ;;  %897 = vst [vmem:[#allocation3 + $0x60] sm:$0xff] %v590_v53  ;;  %872 = vmatmul.f32.gmra.mxu1 %v1944_v11 }
  0xeb   : > { %v614_v60 = vadd.f32 %v613_v4, %v549_v0  ;;  %v2112_v0 = vperm.slane %v2055_v56, 1 }
  0xec   : > { %680 = vmatmul.f32.gmra.mxu2 %v1971_v14 }
  0xed   : > { %921 = vst [vmem:[#allocation3 + $0x120] sm:$0xff] %v614_v60  ;;  %v527_v9 = vpop.f32.mrf.mxu0 }
  0xee   : > { %v528_v1 = vadd.f32 %v527_v9, %v2058_v59 }
  0xef   : > { %745 = vmatmul.f32.gmra.mxu3 %v1980_v13  ;;  %v551_v3 = vpop.f32.mrf.mxu2  ;;  %v592_v57 = vpop.f32.mrf.mxu1 }
  0xf0   : > { %v552_v8 = vadd.f32 %v551_v3, %v2058_v59  ;;  %v593_v63 = vadd.f32 %v592_v57, %v528_v1  ;;  %810 = vmatmul.f32.gmra.mxu0 %v1971_v14 }
  0xf2   : > { %v616_v12 = vpop.f32.mrf.mxu3  ;;  %900 = vst [vmem:[#allocation3 + $0x78] sm:$0xff] %v593_v63  ;;  %875 = vmatmul.f32.gmra.mxu1 %v1980_v13 }
  0xf3   : > { %v617_v7 = vadd.f32 %v616_v12, %v552_v8 }
  0xf4   : > { %683 = vmatmul.f32.gmra.mxu2 %v1998_v17 }
  0xf5   : > { %924 = vst [vmem:[#allocation3 + $0x138] sm:$0xff] %v617_v7  ;;  %v530_v11 = vpop.f32.mrf.mxu0 }
  0xf6   : > { %v531_v52 = vadd.f32 %v530_v11, %v2058_v59 }
  0xf7   : > { %748 = vmatmul.f32.gmra.mxu3 %v2003_v16  ;;  %v554_v10 = vpop.f32.mrf.mxu2  ;;  %v595_v15 = vpop.f32.mrf.mxu1 }
  0xf8   : > { %v555_v62 = vadd.f32 %v554_v10, %v2058_v59  ;;  %v596_v18 = vadd.f32 %v595_v15, %v531_v52  ;;  %813 = vmatmul.f32.gmra.mxu0 %v1998_v17 }
  0xfa   : > { %v619_v14 = vpop.f32.mrf.mxu3  ;;  %903 = vst [vmem:[#allocation3 + $0x90] sm:$0xff] %v596_v18  ;;  %878 = vmatmul.f32.gmra.mxu1 %v2003_v16  ;;  %v2109_v16 = vperm.slane %v2055_v56, 2 }
  0xfb   : > { %v620_v6 = vadd.f32 %v619_v14, %v555_v62 }
  0xfc   : > { %686 = vmatmul.f32.gmra.mxu2 %v2016_v20 }
  0xfd   : > { %927 = vst [vmem:[#allocation3 + $0x150] sm:$0xff] %v620_v6  ;;  %v533_v13 = vpop.f32.mrf.mxu0 }
  0xfe   : > { %v534_v55 = vadd.f32 %v533_v13, %v2058_v59 }
  0xff   : > { %751 = vmatmul.f32.gmra.mxu3 %v2021_v21  ;;  %v557_v54 = vpop.f32.mrf.mxu2  ;;  %v598_v61 = vpop.f32.mrf.mxu1 }
 0x100   : > { %v558_v5 = vadd.f32 %v557_v54, %v2058_v59  ;;  %v599_v58 = vadd.f32 %v598_v61, %v534_v55  ;;  %816 = vmatmul.f32.gmra.mxu0 %v2016_v20 }
 0x102   : > { %v622_v17 = vpop.f32.mrf.mxu3  ;;  %906 = vst [vmem:[#allocation3 + $0xa8] sm:$0xff] %v599_v58  ;;  %881 = vmatmul.f32.gmra.mxu1 %v2021_v21 }
 0x103   : > { %v623_v2 = vadd.f32 %v622_v17, %v558_v5 }
 0x105   : > { %930 = vst [vmem:[#allocation3 + $0x168] sm:$0xff] %v623_v2  ;;  %v772_v53 = vpop.f32.mrf.mxu0 }
 0x106   : > { %v773_v4 = vadd.f32 %v772_v53, %v2109_v16 }
 0x107   : > { %v642_v60 = vpop.f32.mrf.mxu2  ;;  %v837_v59 = vpop.f32.mrf.mxu1 }
 0x108   : > { %v643_v9 = vadd.f32 %v642_v60, %v2112_v0  ;;  %v838_v20 = vadd.f32 %v837_v59, %v773_v4 }
 0x10a   : > { %v707_v1 = vpop.f32.mrf.mxu3  ;;  %887 = vst [vmem:[#allocation3 + $0x10] sm:$0xff] %v838_v20 }
 0x10b   : > { %v708_v3 = vadd.f32 %v707_v1, %v643_v9 }
 0x10d   : > { %886 = vst [vmem:[#allocation3 + $0x8] sm:$0xff] %v708_v3  ;;  %v775_v21 = vpop.f32.mrf.mxu0 }
 0x10e   : > { %v776_v57 = vadd.f32 %v775_v21, %v2109_v16 }
 0x10f   : > { %v645_v8 = vpop.f32.mrf.mxu2  ;;  %v840_v63 = vpop.f32.mrf.mxu1 }
 0x110   : > { %v646_v56 = vadd.f32 %v645_v8, %v2112_v0  ;;  %v841_v12 = vadd.f32 %v840_v63, %v776_v57 }
 0x112   : > { %v710_v7 = vpop.f32.mrf.mxu3  ;;  %890 = vst [vmem:[#allocation3 + $0x28] sm:$0xff] %v841_v12 }
 0x113   : > { %v711_v11 = vadd.f32 %v710_v7, %v646_v56 }
 0x115   : > { %889 = vst [vmem:[#allocation3 + $0x20] sm:$0xff] %v711_v11  ;;  %v778_v52 = vpop.f32.mrf.mxu0 }
 0x116   : > { %v779_v10 = vadd.f32 %v778_v52, %v2109_v16 }
 0x117   : > { %v648_v15 = vpop.f32.mrf.mxu2  ;;  %v843_v62 = vpop.f32.mrf.mxu1 }
 0x118   : > { %v649_v18 = vadd.f32 %v648_v15, %v2112_v0  ;;  %v844_v14 = vadd.f32 %v843_v62, %v779_v10 }
 0x11a   : > { %v713_v6 = vpop.f32.mrf.mxu3  ;;  %893 = vst [vmem:[#allocation3 + $0x40] sm:$0xff] %v844_v14 }
 0x11b   : > { %v714_v13 = vadd.f32 %v713_v6, %v649_v18 }
 0x11d   : > { %892 = vst [vmem:[#allocation3 + $0x38] sm:$0xff] %v714_v13  ;;  %v781_v55 = vpop.f32.mrf.mxu0 }
 0x11e   : > { %v782_v54 = vadd.f32 %v781_v55, %v2109_v16 }
 0x11f   : > { %v651_v61 = vpop.f32.mrf.mxu2  ;;  %v846_v5 = vpop.f32.mrf.mxu1 }
 0x120   : > { %v652_v58 = vadd.f32 %v651_v61, %v2112_v0  ;;  %v847_v17 = vadd.f32 %v846_v5, %v782_v54 }
 0x122   : > { %v716_v2 = vpop.f32.mrf.mxu3  ;;  %896 = vst [vmem:[#allocation3 + $0x58] sm:$0xff] %v847_v17 }
 0x123   : > { %v717_v53 = vadd.f32 %v716_v2, %v652_v58 }
 0x125   : > { %895 = vst [vmem:[#allocation3 + $0x50] sm:$0xff] %v717_v53  ;;  %v784_v4 = vpop.f32.mrf.mxu0 }
 0x126   : > { %v785_v60 = vadd.f32 %v784_v4, %v2109_v16 }
 0x127   : > { %v654_v59 = vpop.f32.mrf.mxu2  ;;  %v849_v9 = vpop.f32.mrf.mxu1 }
 0x128   : > { %v655_v20 = vadd.f32 %v654_v59, %v2112_v0  ;;  %v850_v1 = vadd.f32 %v849_v9, %v785_v60 }
 0x12a   : > { %v719_v3 = vpop.f32.mrf.mxu3  ;;  %899 = vst [vmem:[#allocation3 + $0x70] sm:$0xff] %v850_v1 }
 0x12b   : > { %v720_v21 = vadd.f32 %v719_v3, %v655_v20 }
 0x12d   : > { %898 = vst [vmem:[#allocation3 + $0x68] sm:$0xff] %v720_v21  ;;  %v787_v57 = vpop.f32.mrf.mxu0 }
 0x12e   : > { %v788_v8 = vadd.f32 %v787_v57, %v2109_v16 }
 0x12f   : > { %v657_v63 = vpop.f32.mrf.mxu2  ;;  %v852_v56 = vpop.f32.mrf.mxu1 }
 0x130   : > { %v658_v12 = vadd.f32 %v657_v63, %v2112_v0  ;;  %v853_v7 = vadd.f32 %v852_v56, %v788_v8 }
 0x132   : > { %v722_v11 = vpop.f32.mrf.mxu3  ;;  %902 = vst [vmem:[#allocation3 + $0x88] sm:$0xff] %v853_v7 }
 0x133   : > { %v723_v52 = vadd.f32 %v722_v11, %v658_v12 }
 0x135   : > { %901 = vst [vmem:[#allocation3 + $0x80] sm:$0xff] %v723_v52  ;;  %v790_v10 = vpop.f32.mrf.mxu0 }
 0x136   : > { %v791_v15 = vadd.f32 %v790_v10, %v2109_v16 }
 0x137   : > { %v660_v62 = vpop.f32.mrf.mxu2  ;;  %v855_v18 = vpop.f32.mrf.mxu1 }
 0x138   : > { %v661_v14 = vadd.f32 %v660_v62, %v2112_v0  ;;  %v856_v6 = vadd.f32 %v855_v18, %v791_v15 }
 0x13a   : > { %v725_v13 = vpop.f32.mrf.mxu3  ;;  %905 = vst [vmem:[#allocation3 + $0xa0] sm:$0xff] %v856_v6 }
 0x13b   : > { %v726_v55 = vadd.f32 %v725_v13, %v661_v14 }
 0x13d   : > { %904 = vst [vmem:[#allocation3 + $0x98] sm:$0xff] %v726_v55  ;;  %v793_v54 = vpop.f32.mrf.mxu0 }
 0x13e   : > { %v794_v61 = vadd.f32 %v793_v54, %v2109_v16 }
 0x13f   : > { %v663_v5 = vpop.f32.mrf.mxu2  ;;  %v858_v58 = vpop.f32.mrf.mxu1 }
 0x140   : > { %v664_v17 = vadd.f32 %v663_v5, %v2112_v0  ;;  %v859_v2 = vadd.f32 %v858_v58, %v794_v61 }
 0x142   : > { %v728_v53 = vpop.f32.mrf.mxu3  ;;  %908 = vst [vmem:[#allocation3 + $0xb8] sm:$0xff] %v859_v2 }
 0x143   : > { %v729_v4 = vadd.f32 %v728_v53, %v664_v17 }
 0x145   : > { %907 = vst [vmem:[#allocation3 + $0xb0] sm:$0xff] %v729_v4  ;;  %v796_v60 = vpop.f32.mrf.mxu0 }
 0x146   : > { %v797_v59 = vadd.f32 %v796_v60, %v2109_v16 }
 0x147   : > { %v666_v9 = vpop.f32.mrf.mxu2  ;;  %v861_v20 = vpop.f32.mrf.mxu1 }
 0x148   : > { %v667_v1 = vadd.f32 %v666_v9, %v2112_v0  ;;  %v862_v3 = vadd.f32 %v861_v20, %v797_v59 }
 0x14a   : > { %v731_v21 = vpop.f32.mrf.mxu3  ;;  %911 = vst [vmem:[#allocation3 + $0xd0] sm:$0xff] %v862_v3 }
 0x14b   : > { %v732_v57 = vadd.f32 %v731_v21, %v667_v1 }
 0x14d   : > { %910 = vst [vmem:[#allocation3 + $0xc8] sm:$0xff] %v732_v57  ;;  %v799_v8 = vpop.f32.mrf.mxu0 }
 0x14e   : > { %v800_v63 = vadd.f32 %v799_v8, %v2109_v16 }
 0x14f   : > { %v669_v56 = vpop.f32.mrf.mxu2  ;;  %v864_v12 = vpop.f32.mrf.mxu1 }
 0x150   : > { %v670_v7 = vadd.f32 %v669_v56, %v2112_v0  ;;  %v865_v11 = vadd.f32 %v864_v12, %v800_v63 }
 0x152   : > { %v734_v52 = vpop.f32.mrf.mxu3  ;;  %914 = vst [vmem:[#allocation3 + $0xe8] sm:$0xff] %v865_v11 }
 0x153   : > { %v735_v10 = vadd.f32 %v734_v52, %v670_v7 }
 0x155   : > { %913 = vst [vmem:[#allocation3 + $0xe0] sm:$0xff] %v735_v10  ;;  %v802_v15 = vpop.f32.mrf.mxu0 }
 0x156   : > { %v803_v62 = vadd.f32 %v802_v15, %v2109_v16 }
 0x157   : > { %v672_v18 = vpop.f32.mrf.mxu2  ;;  %v867_v14 = vpop.f32.mrf.mxu1 }
 0x158   : > { %v673_v6 = vadd.f32 %v672_v18, %v2112_v0  ;;  %v868_v13 = vadd.f32 %v867_v14, %v803_v62 }
 0x15a   : > { %v737_v55 = vpop.f32.mrf.mxu3  ;;  %917 = vst [vmem:[#allocation3 + $0x100] sm:$0xff] %v868_v13 }
 0x15b   : > { %v738_v54 = vadd.f32 %v737_v55, %v673_v6 }
 0x15d   : > { %916 = vst [vmem:[#allocation3 + $0xf8] sm:$0xff] %v738_v54  ;;  %v805_v61 = vpop.f32.mrf.mxu0 }
 0x15e   : > { %v806_v5 = vadd.f32 %v805_v61, %v2109_v16 }
 0x15f   : > { %v675_v58 = vpop.f32.mrf.mxu2  ;;  %v870_v17 = vpop.f32.mrf.mxu1 }
 0x160   : > { %v676_v2 = vadd.f32 %v675_v58, %v2112_v0  ;;  %v871_v53 = vadd.f32 %v870_v17, %v806_v5 }
 0x162   : > { %v740_v4 = vpop.f32.mrf.mxu3  ;;  %920 = vst [vmem:[#allocation3 + $0x118] sm:$0xff] %v871_v53 }
 0x163   : > { %v741_v60 = vadd.f32 %v740_v4, %v676_v2 }
 0x165   : > { %919 = vst [vmem:[#allocation3 + $0x110] sm:$0xff] %v741_v60  ;;  %v808_v59 = vpop.f32.mrf.mxu0 }
 0x166   : > { %v809_v9 = vadd.f32 %v808_v59, %v2109_v16 }
 0x167   : > { %v678_v20 = vpop.f32.mrf.mxu2  ;;  %v873_v1 = vpop.f32.mrf.mxu1 }
 0x168   : > { %v679_v3 = vadd.f32 %v678_v20, %v2112_v0  ;;  %v874_v21 = vadd.f32 %v873_v1, %v809_v9  ;;  %v2149_v9 = vmov 0.0  }
 0x16a   : > { %v743_v57 = vpop.f32.mrf.mxu3  ;;  %923 = vst [vmem:[#allocation3 + $0x130] sm:$0xff] %v874_v21 }
 0x16b   : > { %v744_v8 = vadd.f32 %v743_v57, %v679_v3 }
 0x16d   : > { %922 = vst [vmem:[#allocation3 + $0x128] sm:$0xff] %v744_v8  ;;  %v811_v63 = vpop.f32.mrf.mxu0 }
 0x16e   : > { %v812_v56 = vadd.f32 %v811_v63, %v2109_v16 }
 0x16f   : > { %v681_v12 = vpop.f32.mrf.mxu2  ;;  %v876_v7 = vpop.f32.mrf.mxu1 }
 0x170   : > { %v682_v11 = vadd.f32 %v681_v12, %v2112_v0  ;;  %v877_v52 = vadd.f32 %v876_v7, %v812_v56 }
 0x172   : > { %v746_v10 = vpop.f32.mrf.mxu3  ;;  %926 = vst [vmem:[#allocation3 + $0x148] sm:$0xff] %v877_v52 }
 0x173   : > { %v747_v15 = vadd.f32 %v746_v10, %v682_v11 }
 0x175   : > { %925 = vst [vmem:[#allocation3 + $0x140] sm:$0xff] %v747_v15  ;;  %v814_v62 = vpop.f32.mrf.mxu0 }
 0x176   : > { %v815_v18 = vadd.f32 %v814_v62, %v2109_v16 }
 0x177   : > { %v684_v14 = vpop.f32.mrf.mxu2  ;;  %v879_v6 = vpop.f32.mrf.mxu1 }
 0x178   : > { %v685_v13 = vadd.f32 %v684_v14, %v2112_v0  ;;  %v880_v55 = vadd.f32 %v879_v6, %v815_v18 }
 0x17a   : > { %v749_v54 = vpop.f32.mrf.mxu3  ;;  %929 = vst [vmem:[#allocation3 + $0x160] sm:$0xff] %v880_v55 }
 0x17b   : > { %v750_v61 = vadd.f32 %v749_v54, %v685_v13 }
 0x17d   : > { %928 = vst [vmem:[#allocation3 + $0x158] sm:$0xff] %v750_v61  ;;  %v817_v5 = vpop.f32.mrf.mxu0 }
 0x17e   : > { %v818_v58 = vadd.f32 %v817_v5, %v2109_v16 }
 0x17f   : > { %v687_v17 = vpop.f32.mrf.mxu2  ;;  %v882_v2 = vpop.f32.mrf.mxu1 }
 0x180   : > { %v688_v53 = vadd.f32 %v687_v17, %v2112_v0  ;;  %v883_v4 = vadd.f32 %v882_v2, %v818_v58 }
 0x182   : > { %v752_v60 = vpop.f32.mrf.mxu3  ;;  %932 = vst [vmem:[#allocation3 + $0x178] sm:$0xff] %v883_v4 }
 0x183   : > { %v753_v59 = vadd.f32 %v752_v60, %v688_v53 }
 0x185   : > { %931 = vst [vmem:[#allocation3 + $0x170] sm:$0xff] %v753_v59 }
 0x186 LB: >> { %1004 = vmatpush.msra.mxu0 %v1756_v49  ;;  %1024 = vmatpush.msra.mxu1 %v1759_v50  ;;  %v2293_v16 = vld [vmem:[#allocation21_spill] sm:$0xff]  ;;  %v2294_v0 = vld [vmem:[#allocation22_spill] sm:$0xff]  ;;  %v2296_v1 = vld [vmem:[#allocation19_spill] sm:$0xff]  ;;  %s990_s30 = ssub.s32 1, %s1505_s20  ;;  %s992_s9 = ssub.s32 15, %s1521_s14  ;;  %s1521_s14 = sphi %s2151_s14, %s988_s14   ;;  %v1517_v9 = vphi %v2149_v9, %v1114_v9  }
 0x187   : >> { %1044 = vmatpush.msra.mxu2 %v1762_v51  ;;  %v2295_v20 = vld [vmem:[#allocation18_spill] sm:$0xff]  ;;  %v2297_v3 = vld [vmem:[#allocation20_spill] sm:$0xff]  ;;  %v2298_v21 = vld [vmem:[#allocation15_spill] sm:$0xff]  ;;  %s991_s10 = smul.u32 %s1521_s14, %s990_s30  ;;  %s988_s14 = sadd.s32 1, %s1521_s14  }
 0x188   : >> { %1005 = vmatpush.msra.mxu0 %v1747_v46  ;;  %1025 = vmatpush.msra.mxu1 %v1750_v47  ;;  %v2299_v57 = vld [vmem:[#allocation16_spill] sm:$0xff]  ;;  %v2300_v8 = vld [vmem:[#allocation17_spill] sm:$0xff]  ;;  %v2303_v12 = vld [vmem:[#allocation14_spill] sm:$0xff]  ;;  %s993_s11 = smul.u32 %s1505_s20, %s992_s9  ;;  %p985_p9 = scmp.ge.s32.totalorder %s988_s14, 16  }
 0x189   : >> { %1045 = vmatpush.msra.mxu2 %v1753_v48  ;;  %v2301_v63 = vld [vmem:[#allocation12_spill] sm:$0xff]  ;;  %v2302_v56 = vld [vmem:[#allocation13_spill] sm:$0xff]  ;;  %v2305_v11 = vld [vmem:[#allocation10_spill] sm:$0xff] }
 0x18a   : >> { %1006 = vmatpush.msra.mxu0 %v1738_v43  ;;  %1026 = vmatpush.msra.mxu1 %v1741_v44  ;;  %v2304_v7 = vld [vmem:[#allocation9_spill] sm:$0xff]  ;;  %v2306_v52 = vld [vmem:[#allocation11_spill] sm:$0xff]  ;;  %v2307_v10 = vld [vmem:[#allocation6_spill] sm:$0xff]  ;;  %s994_s12 = sadd.s32 %s993_s11, %s991_s10 }
 0x18b   : >> { %1046 = vmatpush.msra.mxu2 %v1744_v45  ;;  %v2308_v15 = vld [vmem:[#allocation7_spill] sm:$0xff]  ;;  %v2309_v62 = vld [vmem:[#allocation8_spill] sm:$0xff]  ;;  %s2214_s13 = sshll.u32 %s994_s12, 3 }
 0x18c   : >> { %1007 = vmatpush.msra.mxu0 %v1729_v40  ;;  %1027 = vmatpush.msra.mxu1 %v1732_v41  ;;  %s996_s15 = sshra.s32 %s2214_s13, 3  ;;  %s1115_s18 = scalar_lea.vmem %s2147_s6, %s2214_s13 [#allocation4] }
 0x18d   : >> { %1047 = vmatpush.msra.mxu2 %v1735_v42  ;;  %s1364_s16 = smul.u32 24, %s996_s15 }
 0x18e   : >> { %1008 = vmatpush.msra.mxu0 %v1720_v37  ;;  %1028 = vmatpush.msra.mxu1 %v1723_v38 }
 0x18f   : >> { %1048 = vmatpush.msra.mxu2 %v1726_v39  ;;  %s2217_s17 = scalar_lea.vmem [#allocation3], %s1364_s16 }
 0x190   : >> { %1009 = vmatpush.msra.mxu0 %v1711_v34  ;;  %1029 = vmatpush.msra.mxu1 %v1714_v35  ;;  %v1001_v18 = vld [vmem:[%s2217_s17] sm:$0xff]  ;;  %v1002_v14 = vld [vmem:[%s2217_s17 + $0x8] sm:$0xff] }
 0x191   : >> { %1049 = vmatpush.msra.mxu2 %v1717_v36 }
 0x192   : >> { %1010 = vmatpush.msra.mxu0 %v1702_v31  ;;  %1030 = vmatpush.msra.mxu1 %v1705_v32 }
 0x193   : >> { %1050 = vmatpush.msra.mxu2 %v1708_v33 }
 0x194   : >> { %1011 = vmatpush.msra.mxu0 %v1693_v28  ;;  %1031 = vmatpush.msra.mxu1 %v1696_v29 }
 0x195   : >> { %1051 = vmatpush.msra.mxu2 %v1699_v30 }
 0x196   : >> { %1012 = vmatpush.msra.mxu0 %v1684_v25  ;;  %1032 = vmatpush.msra.mxu1 %v1687_v26 }
 0x197   : >> { %1052 = vmatpush.msra.mxu2 %v1690_v27 }
 0x198   : >> { %1013 = vmatpush.msra.mxu0 %v1675_v22  ;;  %1033 = vmatpush.msra.mxu1 %v1678_v23 }
 0x199   : >> { %1053 = vmatpush.msra.mxu2 %v1681_v24 }
 0x19a   : >> { %1014 = vmatpush.msra.mxu0 %v1666_v19  ;;  %1034 = vmatpush.msra.mxu1 %v2293_v16 }
 0x19b   : >> { %1054 = vmatpush.msra.mxu2 %v2294_v0 }
 0x19c   : >> { %1015 = vmatpush.msra.mxu0 %v2295_v20  ;;  %1035 = vmatpush.msra.mxu1 %v2296_v1  ;;  %v2310_v20 = vld [vmem:[#allocation5_spill] sm:$0xff] }
 0x19d   : >> { %1055 = vmatpush.msra.mxu2 %v2297_v3  ;;  %v1105_v1 = vperm.slane %v2310_v20, 0 }
 0x19e   : >> { %1016 = vmatpush.msra.mxu0 %v2298_v21  ;;  %1036 = vmatpush.msra.mxu1 %v2299_v57 }
 0x19f   : >> { %1056 = vmatpush.msra.mxu2 %v2300_v8 }
 0x1a0   : >> { %1017 = vmatpush.msra.mxu0 %v2301_v63  ;;  %1037 = vmatpush.msra.mxu1 %v2302_v56 }
 0x1a1   : >> { %1057 = vmatpush.msra.mxu2 %v2303_v12 }
 0x1a2   : >> { %1018 = vmatpush.msra.mxu0 %v2304_v7  ;;  %1038 = vmatpush.msra.mxu1 %v2305_v11 }
 0x1a3   : >> { %1058 = vmatpush.msra.mxu2 %v2306_v52 }
 0x1a4   : >> { %1019 = vmatpush.msra.mxu0 %v2307_v10  ;;  %1039 = vmatpush.msra.mxu1 %v2308_v15  ;;  %v1003_v15 = vld [vmem:[%s2217_s17 + $0x10] sm:$0xff] }
 0x1a5   : >> { %1020 = vmatmul.f32.vlgmr.msra.gmra.mxu0 %v1517_v9  ;;  %1040 = vmatmul.f32.vlgmr.msra.gmra.mxu1 %v1517_v9 }
 0x1a6   : >> { %1059 = vmatpush.msra.mxu2 %v2309_v62 }
 0x1a7   : >> { %1060 = vmatmul.f32.vlgmr.msra.gmra.mxu2 %v1517_v9 }
 0x222   : >> { %v1021_v6 = vpop.f32.mrf.mxu0  ;;  %v1041_v13 = vpop.f32.mrf.mxu1 }
 0x223   : >> { %v1064_v55 = vadd.f32 %v1021_v6, %v1001_v18  ;;  %v1084_v54 = vadd.f32 %v1041_v13, %v1002_v14 }
 0x225   : >> { %v1358_v61 = vmul.f32 -1.442695, %v1064_v55  ;;  %v1359_v5 = vmul.f32 -1.442695, %v1084_v54 }
 0x227   : >> { %1457 = vpow2.f32 %v1358_v61 }
 0x228   : >> { %1459 = vpow2.f32 %v1359_v5 }
 0x22a   : >> { %v1061_v21 = vpop.f32.mrf.mxu2 }
 0x22b   : >> { %v1107_v7 = vadd.f32 %v1105_v1, %v1061_v21 }
 0x22d   : >> { %v1458_v58 = vpop.eup %1457 }
 0x22e   : >> { %v1460_v17 = vpop.eup %1459  ;;  %v1068_v2 = vadd.f32 1.0, %v1458_v58 }
 0x22f   : >> { %v1088_v53 = vadd.f32 1.0, %v1460_v17 }
 0x230   : >> { %1461 = vrcp.f32 %v1068_v2  ;;  %v1080_v57 = vand.u32 2147483648, %v1068_v2  ;;  %v1078_v63 = vand.u32 2147483647, %v1068_v2  ;;  %vm1074_vm1 = vweird.f32 %v1068_v2 }
 0x231   : >> { %1463 = vrcp.f32 %v1088_v53  ;;  %vm1094_vm4 = vweird.f32 %v1088_v53  ;;  %v1100_v18 = vand.u32 2147483648, %v1088_v53  ;;  %v1098_v6 = vand.u32 2147483647, %v1088_v53 }
 0x232   : >> { %v1081_v11 = vor.u32 1.1754944e-38, %v1080_v57  ;;  %vm1079_vm3 = vcmp.eq.f32.partialorder %v1078_v63, 8.507059e+37 }
 0x233   : >> { %v1101_v54 = vor.u32 1.1754944e-38, %v1100_v18  ;;  %vm1099_vm7 = vcmp.eq.f32.partialorder %v1098_v6, 8.507059e+37 }
 0x236   : >> { %v1462_v4 = vpop.eup %1461 }
 0x237   : >> { %v1464_v60 = vpop.eup %1463  ;;  %v1070_v59 = vmul.f32 %v1462_v4, %v1068_v2  ;;  %vm1075_vm0 = vweird.f32 %v1462_v4 }
 0x238   : >> { %v1090_v16 = vmul.f32 %v1464_v60, %v1088_v53  ;;  %vm1076_vm2 = vmor %vm1074_vm1, %vm1075_vm0  ;;  %vm1095_vm5 = vweird.f32 %v1464_v60 }
 0x239   : >> { %v1071_v0 = vsub.f32 1.0, %v1070_v59  ;;  %vm1096_vm6 = vmor %vm1094_vm4, %vm1095_vm5 }
 0x23a   : >> { %v1091_v3 = vsub.f32 1.0, %v1090_v16 }
 0x23b   : >> { %v1072_v8 = vmul.f32 %v1462_v4, %v1071_v0 }
 0x23c   : >> { %v1092_v56 = vmul.f32 %v1464_v60, %v1091_v3 }
 0x23d   : >> { %v1073_v12 = vadd.f32 %v1462_v4, %v1072_v8 }
 0x23e   : >> { %v1093_v10 = vadd.f32 %v1464_v60, %v1092_v56 }
 0x23f   : >> { %v1077_v52 = vsel %vm1076_vm2, %v1462_v4, %v1073_v12 }
 0x240   : >> { %v1082_v62 = vsel %vm1079_vm3, %v1081_v11, %v1077_v52  ;;  %v1097_v55 = vsel %vm1096_vm6, %v1464_v60, %v1093_v10 }
 0x241   : >> { %v1108_v14 = vmul.f32 %v1107_v7, %v1082_v62  ;;  %v1102_v61 = vsel %vm1099_vm7, %v1101_v54, %v1097_v55 }
 0x242   : >> { %v1111_v5 = vsub.f32 1.0, %v1102_v61  ;;  %v1113_v2 = vmul.f32 %v1517_v9, %v1102_v61 }
 0x243   : >> { %v1109_v13 = vadd.f32 %v1108_v14, %v1003_v15 }
 0x245   : >> { %1465 = vtanh.f32 %v1109_v13 }
 0x24b   : >> { %v1466_v58 = vpop.eup %1465 }
 0x24c   : >> { %v1112_v17 = vmul.f32 %v1466_v58, %v1111_v5  ;;  %987 = sbr.rel (!%p985_p9) target bundleno = 390 (0x186), region = 133 }
 0x24e   : >> { %v1114_v9 = vadd.f32 %v1113_v2, %v1112_v17  }
 0x250   : >> { %1116 = vst [vmem:[%s1115_s18] sm:$0xff] %v1114_v9 }
 0x251   : > { %1124 = sbr.rel (!%p1582_p3) target bundleno = 616 (0x268), region = 55  ;;  %s1361_s23 = sshll.u32 (%p1582_p3), %s1505_s20, 3 }
 0x252   : > { %s1133_s29 = scalar_lea.vmem (%p1582_p3), %s2273_s5, %s1361_s23 }
 0x257   : > { %v1192_v53 = vld [vmem:[%s2147_s6] sm:$0xff]  ;;  %v1194_v4 = vld [vmem:[%s2147_s6 + $0x8] sm:$0xff]  ;;  %v1196_v19 = vld [vmem:[%s2147_s6 + $0x10] sm:$0xff] }
 0x258   : > { %1193 = vst [vmem:[%s1133_s29] sm:$0xff] %v1192_v53  ;;  %v1198_v22 = vld [vmem:[%s2147_s6 + $0x18] sm:$0xff]  ;;  %v1200_v23 = vld [vmem:[%s2147_s6 + $0x20] sm:$0xff]  ;;  %v1202_v24 = vld [vmem:[%s2147_s6 + $0x28] sm:$0xff] }
 0x259   : > { %1195 = vst [vmem:[%s1133_s29 + $0x10] sm:$0xff] %v1194_v4  ;;  %v1204_v25 = vld [vmem:[%s2147_s6 + $0x30] sm:$0xff]  ;;  %v1206_v26 = vld [vmem:[%s2147_s6 + $0x38] sm:$0xff]  ;;  %v1208_v27 = vld [vmem:[%s2147_s6 + $0x40] sm:$0xff] }
 0x25a   : > { %1197 = vst [vmem:[%s1133_s29 + $0x20] sm:$0xff] %v1196_v19  ;;  %v1210_v28 = vld [vmem:[%s2147_s6 + $0x48] sm:$0xff]  ;;  %v1212_v29 = vld [vmem:[%s2147_s6 + $0x50] sm:$0xff]  ;;  %v1214_v30 = vld [vmem:[%s2147_s6 + $0x58] sm:$0xff] }
 0x25b   : > { %1199 = vst [vmem:[%s1133_s29 + $0x30] sm:$0xff] %v1198_v22  ;;  %v1216_v31 = vld [vmem:[%s2147_s6 + $0x60] sm:$0xff]  ;;  %v1218_v32 = vld [vmem:[%s2147_s6 + $0x68] sm:$0xff]  ;;  %v1220_v33 = vld [vmem:[%s2147_s6 + $0x70] sm:$0xff] }
 0x25c   : > { %1201 = vst [vmem:[%s1133_s29 + $0x40] sm:$0xff] %v1200_v23  ;;  %v1222_v34 = vld [vmem:[%s2147_s6 + $0x78] sm:$0xff] }
 0x25d   : > { %1203 = vst [vmem:[%s1133_s29 + $0x50] sm:$0xff] %v1202_v24 }
 0x25e   : > { %1205 = vst [vmem:[%s1133_s29 + $0x60] sm:$0xff] %v1204_v25 }
 0x25f   : > { %1207 = vst [vmem:[%s1133_s29 + $0x70] sm:$0xff] %v1206_v26 }
 0x260   : > { %1209 = vst [vmem:[%s1133_s29 + $0x80] sm:$0xff] %v1208_v27 }
 0x261   : > { %1211 = vst [vmem:[%s1133_s29 + $0x90] sm:$0xff] %v1210_v28 }
 0x262   : > { %1213 = vst [vmem:[%s1133_s29 + $0xa0] sm:$0xff] %v1212_v29 }
 0x263   : > { %1215 = vst [vmem:[%s1133_s29 + $0xb0] sm:$0xff] %v1214_v30 }
 0x264   : > { %1217 = vst [vmem:[%s1133_s29 + $0xc0] sm:$0xff] %v1216_v31 }
 0x265   : > { %1219 = vst [vmem:[%s1133_s29 + $0xd0] sm:$0xff] %v1218_v32 }
 0x266   : > { %1221 = vst [vmem:[%s1133_s29 + $0xe0] sm:$0xff] %v1220_v33 }
 0x267   : > { %1223 = vst [vmem:[%s1133_s29 + $0xf0] sm:$0xff] %v1222_v34 }
 0x268 PF: > { %s15_s22 = sadd.s32 1, %s1513_s22   ;;  %s2311_s18 = smov %s1501_s19 }
 0x269   : > { %p12_p10 = scmp.ge.s32.totalorder %s15_s22, 4   ;;  %s2312_s19 = smov %s1591_s28 }
 0x26a   : > { %s2313_s20 = smov %s1509_s21  ;;  %s2314_s21 = smov %s2316_s24 }
 0x26b   :  { %14 = sbr.rel (!%p12_p10) target bundleno = 3 (0x3), region = 144 }

// kernel: cnn_gru_forward.7
= control target key start
LH: loop header
LB: loop body
LE: loop exit
PB: predicated region body
PF: predicated region fallthrough
CT: control target
= control target key end

     0   :  { %s546_s1 = inlined_call_operand.vmem [shape: f32[256,128], index: 1, kind: input, shape index: {}]   ;;  %s547_s2 = inlined_call_operand.vmem [shape: f32[1,128], index: 2, kind: input, shape index: {}]   ;;  %s548_s0 = inlined_call_operand.vmem [shape: f32[128,256], index: 0, kind: input, shape index: {}]   ;;  %s549_s3 = inlined_call_operand.vmem [shape: f32[128,128], index: 3, kind: output, shape index: {}]  }
   0x1   :  { %v61_v0 = vld [vmem:[%s546_s1 + $0x78] sm:$0xff]  ;;  %v60_v1 = vld [vmem:[%s546_s1 + $0x70] sm:$0xff]  ;;  %v59_v4 = vld [vmem:[%s546_s1 + $0x68] sm:$0xff] }
   0x2   :  { %v77_v2 = vld [vmem:[%s546_s1 + $0xf8] sm:$0xff]  ;;  %232 = vmatpush.msra.mxu2 %v61_v0  ;;  %v76_v3 = vld [vmem:[%s546_s1 + $0xf0] sm:$0xff]  ;;  %82 = vmatpush.msra.mxu0 %v61_v0  ;;  %v75_v5 = vld [vmem:[%s546_s1 + $0xe8] sm:$0xff] }
   0x3   :  { %248 = vmatpush.msra.mxu3 %v77_v2  ;;  %147 = vmatpush.msra.mxu1 %v77_v2  ;;  %v58_v6 = vld [vmem:[%s546_s1 + $0x60] sm:$0xff]  ;;  %v57_v8 = vld [vmem:[%s546_s1 + $0x58] sm:$0xff]  ;;  %v56_v10 = vld [vmem:[%s546_s1 + $0x50] sm:$0xff] }
   0x4   :  { %233 = vmatpush.msra.mxu2 %v60_v1  ;;  %83 = vmatpush.msra.mxu0 %v60_v1  ;;  %v74_v7 = vld [vmem:[%s546_s1 + $0xe0] sm:$0xff]  ;;  %v73_v9 = vld [vmem:[%s546_s1 + $0xd8] sm:$0xff]  ;;  %v72_v11 = vld [vmem:[%s546_s1 + $0xd0] sm:$0xff] }
   0x5   :  { %249 = vmatpush.msra.mxu3 %v76_v3  ;;  %148 = vmatpush.msra.mxu1 %v76_v3  ;;  %v55_v12 = vld [vmem:[%s546_s1 + $0x48] sm:$0xff]  ;;  %v54_v14 = vld [vmem:[%s546_s1 + $0x40] sm:$0xff]  ;;  %v53_v16 = vld [vmem:[%s546_s1 + $0x38] sm:$0xff] }
   0x6   :  { %234 = vmatpush.msra.mxu2 %v59_v4  ;;  %84 = vmatpush.msra.mxu0 %v59_v4  ;;  %v71_v13 = vld [vmem:[%s546_s1 + $0xc8] sm:$0xff]  ;;  %v70_v15 = vld [vmem:[%s546_s1 + $0xc0] sm:$0xff]  ;;  %v69_v17 = vld [vmem:[%s546_s1 + $0xb8] sm:$0xff] }
   0x7   :  { %250 = vmatpush.msra.mxu3 %v75_v5  ;;  %149 = vmatpush.msra.mxu1 %v75_v5  ;;  %v52_v18 = vld [vmem:[%s546_s1 + $0x30] sm:$0xff]  ;;  %v51_v20 = vld [vmem:[%s546_s1 + $0x28] sm:$0xff]  ;;  %v50_v22 = vld [vmem:[%s546_s1 + $0x20] sm:$0xff] }
   0x8   :  { %235 = vmatpush.msra.mxu2 %v58_v6  ;;  %85 = vmatpush.msra.mxu0 %v58_v6  ;;  %v68_v19 = vld [vmem:[%s546_s1 + $0xb0] sm:$0xff]  ;;  %v67_v21 = vld [vmem:[%s546_s1 + $0xa8] sm:$0xff]  ;;  %v66_v23 = vld [vmem:[%s546_s1 + $0xa0] sm:$0xff] }
   0x9   :  { %251 = vmatpush.msra.mxu3 %v74_v7  ;;  %150 = vmatpush.msra.mxu1 %v74_v7  ;;  %v49_v24 = vld [vmem:[%s546_s1 + $0x18] sm:$0xff]  ;;  %v48_v26 = vld [vmem:[%s546_s1 + $0x10] sm:$0xff]  ;;  %v47_v28 = vld [vmem:[%s546_s1 + $0x8] sm:$0xff] }
   0xa   :  { %236 = vmatpush.msra.mxu2 %v57_v8  ;;  %86 = vmatpush.msra.mxu0 %v57_v8  ;;  %v65_v25 = vld [vmem:[%s546_s1 + $0x98] sm:$0xff]  ;;  %v64_v27 = vld [vmem:[%s546_s1 + $0x90] sm:$0xff]  ;;  %v63_v29 = vld [vmem:[%s546_s1 + $0x88] sm:$0xff] }
   0xb   :  { %252 = vmatpush.msra.mxu3 %v73_v9  ;;  %151 = vmatpush.msra.mxu1 %v73_v9  ;;  %v46_v30 = vld [vmem:[%s546_s1] sm:$0xff]  ;;  %v31_v33 = vld [vmem:[%s548_s0 + $0x88] sm:$0xff]  ;;  %v32_v36 = vld [vmem:[%s548_s0 + $0x90] sm:$0xff] }
   0xc   :  { %237 = vmatpush.msra.mxu2 %v56_v10  ;;  %87 = vmatpush.msra.mxu0 %v56_v10  ;;  %v62_v31 = vld [vmem:[%s546_s1 + $0x80] sm:$0xff]  ;;  %v15_v35 = vld [vmem:[%s548_s0 + $0x8] sm:$0xff]  ;;  %v33_v37 = vld [vmem:[%s548_s0 + $0x98] sm:$0xff] }
   0xd   :  { %253 = vmatpush.msra.mxu3 %v72_v11  ;;  %152 = vmatpush.msra.mxu1 %v72_v11  ;;  %v30_v32 = vld [vmem:[%s548_s0 + $0x80] sm:$0xff]  ;;  %v16_v38 = vld [vmem:[%s548_s0 + $0x10] sm:$0xff]  ;;  %v17_v39 = vld [vmem:[%s548_s0 + $0x18] sm:$0xff] }
   0xe   :  { %238 = vmatpush.msra.mxu2 %v55_v12  ;;  %88 = vmatpush.msra.mxu0 %v55_v12  ;;  %v14_v34 = vld [vmem:[%s548_s0] sm:$0xff]  ;;  %v35_v41 = vld [vmem:[%s548_s0 + $0xa8] sm:$0xff]  ;;  %v36_v44 = vld [vmem:[%s548_s0 + $0xb0] sm:$0xff] }
   0xf   :  { %254 = vmatpush.msra.mxu3 %v71_v13  ;;  %153 = vmatpush.msra.mxu1 %v71_v13  ;;  %v34_v40 = vld [vmem:[%s548_s0 + $0xa0] sm:$0xff]  ;;  %v19_v43 = vld [vmem:[%s548_s0 + $0x28] sm:$0xff]  ;;  %v37_v45 = vld [vmem:[%s548_s0 + $0xb8] sm:$0xff] }
  0x10   :  { %239 = vmatpush.msra.mxu2 %v54_v14  ;;  %89 = vmatpush.msra.mxu0 %v54_v14  ;;  %v18_v42 = vld [vmem:[%s548_s0 + $0x20] sm:$0xff]  ;;  %v20_v46 = vld [vmem:[%s548_s0 + $0x30] sm:$0xff]  ;;  %v21_v47 = vld [vmem:[%s548_s0 + $0x38] sm:$0xff] }
  0x11   :  { %255 = vmatpush.msra.mxu3 %v70_v15  ;;  %154 = vmatpush.msra.mxu1 %v70_v15  ;;  %v38_v48 = vld [vmem:[%s548_s0 + $0xc0] sm:$0xff]  ;;  %v39_v49 = vld [vmem:[%s548_s0 + $0xc8] sm:$0xff]  ;;  %v40_v52 = vld [vmem:[%s548_s0 + $0xd0] sm:$0xff] }
  0x12   :  { %240 = vmatpush.msra.mxu2 %v53_v16  ;;  %90 = vmatpush.msra.mxu0 %v53_v16  ;;  %v22_v50 = vld [vmem:[%s548_s0 + $0x40] sm:$0xff]  ;;  %v23_v51 = vld [vmem:[%s548_s0 + $0x48] sm:$0xff]  ;;  %v41_v53 = vld [vmem:[%s548_s0 + $0xd8] sm:$0xff] }
  0x13   :  { %256 = vmatpush.msra.mxu3 %v69_v17  ;;  %155 = vmatpush.msra.mxu1 %v69_v17  ;;  %v24_v54 = vld [vmem:[%s548_s0 + $0x50] sm:$0xff]  ;;  %v25_v55 = vld [vmem:[%s548_s0 + $0x58] sm:$0xff]  ;;  %v42_v56 = vld [vmem:[%s548_s0 + $0xe0] sm:$0xff] }
  0x14   :  { %241 = vmatpush.msra.mxu2 %v52_v18  ;;  %91 = vmatpush.msra.mxu0 %v52_v18  ;;  %v43_v57 = vld [vmem:[%s548_s0 + $0xe8] sm:$0xff]  ;;  %v26_v58 = vld [vmem:[%s548_s0 + $0x60] sm:$0xff]  ;;  %v44_v60 = vld [vmem:[%s548_s0 + $0xf0] sm:$0xff] }
  0x15   :  { %257 = vmatpush.msra.mxu3 %v68_v19  ;;  %156 = vmatpush.msra.mxu1 %v68_v19  ;;  %v27_v59 = vld [vmem:[%s548_s0 + $0x68] sm:$0xff]  ;;  %v45_v61 = vld [vmem:[%s548_s0 + $0xf8] sm:$0xff]  ;;  %v28_v62 = vld [vmem:[%s548_s0 + $0x70] sm:$0xff] }
  0x16   :  { %242 = vmatpush.msra.mxu2 %v51_v20  ;;  %92 = vmatpush.msra.mxu0 %v51_v20  ;;  %v29_v63 = vld [vmem:[%s548_s0 + $0x78] sm:$0xff]  ;;  %v480_v0 = vld [vmem:[%s547_s2] ss:$0 sm:$0xff] }
  0x17   :  { %258 = vmatpush.msra.mxu3 %v67_v21  ;;  %157 = vmatpush.msra.mxu1 %v67_v21 }
  0x18   :  { %243 = vmatpush.msra.mxu2 %v50_v22  ;;  %93 = vmatpush.msra.mxu0 %v50_v22 }
  0x19   :  { %259 = vmatpush.msra.mxu3 %v66_v23  ;;  %158 = vmatpush.msra.mxu1 %v66_v23 }
  0x1a   :  { %244 = vmatpush.msra.mxu2 %v49_v24  ;;  %94 = vmatpush.msra.mxu0 %v49_v24 }
  0x1b   :  { %260 = vmatpush.msra.mxu3 %v65_v25  ;;  %159 = vmatpush.msra.mxu1 %v65_v25 }
  0x1c   :  { %245 = vmatpush.msra.mxu2 %v48_v26  ;;  %95 = vmatpush.msra.mxu0 %v48_v26 }
  0x1d   :  { %261 = vmatpush.msra.mxu3 %v64_v27  ;;  %160 = vmatpush.msra.mxu1 %v64_v27 }
  0x1e   :  { %246 = vmatpush.msra.mxu2 %v47_v28  ;;  %96 = vmatpush.msra.mxu0 %v47_v28 }
  0x1f   :  { %262 = vmatpush.msra.mxu3 %v63_v29  ;;  %161 = vmatpush.msra.mxu1 %v63_v29 }
  0x20   :  { %247 = vmatpush.msra.mxu2 %v46_v30  ;;  %97 = vmatpush.msra.mxu0 %v46_v30 }
  0x21   :  { %263 = vmatpush.msra.mxu3 %v62_v31  ;;  %122 = vmatmul.f32.vlgmr.msra.gmra.mxu2 %v30_v32 }
  0x22   :  { %187 = vmatmul.f32.vlgmr.msra.gmra.mxu3 %v31_v33  ;;  %162 = vmatpush.msra.mxu1 %v62_v31 }
  0x23   :  { %98 = vmatmul.f32.vlgmr.msra.gmra.mxu0 %v14_v34  ;;  %163 = vmatmul.f32.vlgmr.msra.gmra.mxu1 %v15_v35 }
  0x29   :  { %125 = vmatmul.f32.gmra.mxu2 %v32_v36 }
  0x2a   :  { %190 = vmatmul.f32.gmra.mxu3 %v33_v37 }
  0x2b   :  { %101 = vmatmul.f32.gmra.mxu0 %v16_v38  ;;  %166 = vmatmul.f32.gmra.mxu1 %v17_v39 }
  0x31   :  { %128 = vmatmul.f32.gmra.mxu2 %v34_v40 }
  0x32   :  { %193 = vmatmul.f32.gmra.mxu3 %v35_v41 }
  0x33   :  { %104 = vmatmul.f32.gmra.mxu0 %v18_v42  ;;  %169 = vmatmul.f32.gmra.mxu1 %v19_v43 }
  0x39   :  { %131 = vmatmul.f32.gmra.mxu2 %v36_v44 }
  0x3a   :  { %196 = vmatmul.f32.gmra.mxu3 %v37_v45 }
  0x3b   :  { %107 = vmatmul.f32.gmra.mxu0 %v20_v46  ;;  %172 = vmatmul.f32.gmra.mxu1 %v21_v47 }
  0x41   :  { %134 = vmatmul.f32.gmra.mxu2 %v38_v48 }
  0x42   :  { %199 = vmatmul.f32.gmra.mxu3 %v39_v49 }
  0x43   :  { %110 = vmatmul.f32.gmra.mxu0 %v22_v50  ;;  %175 = vmatmul.f32.gmra.mxu1 %v23_v51 }
  0x49   :  { %137 = vmatmul.f32.gmra.mxu2 %v40_v52 }
  0x4a   :  { %202 = vmatmul.f32.gmra.mxu3 %v41_v53 }
  0x4b   :  { %113 = vmatmul.f32.gmra.mxu0 %v24_v54  ;;  %178 = vmatmul.f32.gmra.mxu1 %v25_v55 }
  0x51   :  { %140 = vmatmul.f32.gmra.mxu2 %v42_v56 }
  0x52   :  { %205 = vmatmul.f32.gmra.mxu3 %v43_v57 }
  0x53   :  { %116 = vmatmul.f32.gmra.mxu0 %v26_v58  ;;  %181 = vmatmul.f32.gmra.mxu1 %v27_v59 }
  0x59   :  { %143 = vmatmul.f32.gmra.mxu2 %v44_v60 }
  0x5a   :  { %208 = vmatmul.f32.gmra.mxu3 %v45_v61 }
  0x5b   :  { %119 = vmatmul.f32.gmra.mxu0 %v28_v62  ;;  %184 = vmatmul.f32.gmra.mxu1 %v29_v63 }
  0xa0   :  { %v99_v1 = vpop.f32.mrf.mxu0  ;;  %v164_v2 = vpop.f32.mrf.mxu1 }
  0xa1   :  { %v100_v3 = vadd.f32 %v480_v0, %v99_v1 }
  0xa3   :  { %v165_v4 = vadd.f32 %v164_v2, %v100_v3 }
  0xa4   :  { %v123_v5 = vpop.f32.mrf.mxu2 }
  0xa5   :  { %v188_v6 = vpop.f32.mrf.mxu3  ;;  %v124_v7 = vadd.f32 %v480_v0, %v123_v5  ;;  %212 = vst [vmem:[%s549_s3] sm:$0xff] %v165_v4 }
  0xa7   :  { %v189_v8 = vadd.f32 %v188_v6, %v124_v7 }
  0xa8   :  { %v102_v9 = vpop.f32.mrf.mxu0  ;;  %v167_v10 = vpop.f32.mrf.mxu1 }
  0xa9   :  { %220 = vst [vmem:[%s549_s3 + $0x40] sm:$0xff] %v189_v8  ;;  %v103_v11 = vadd.f32 %v480_v0, %v102_v9 }
  0xab   :  { %v168_v12 = vadd.f32 %v167_v10, %v103_v11 }
  0xac   :  { %v126_v13 = vpop.f32.mrf.mxu2 }
  0xad   :  { %v191_v14 = vpop.f32.mrf.mxu3  ;;  %v127_v15 = vadd.f32 %v480_v0, %v126_v13  ;;  %213 = vst [vmem:[%s549_s3 + $0x8] sm:$0xff] %v168_v12 }
  0xaf   :  { %v192_v16 = vadd.f32 %v191_v14, %v127_v15 }
  0xb0   :  { %v105_v17 = vpop.f32.mrf.mxu0  ;;  %v170_v18 = vpop.f32.mrf.mxu1 }
  0xb1   :  { %221 = vst [vmem:[%s549_s3 + $0x48] sm:$0xff] %v192_v16  ;;  %v106_v19 = vadd.f32 %v480_v0, %v105_v17 }
  0xb3   :  { %v171_v20 = vadd.f32 %v170_v18, %v106_v19 }
  0xb4   :  { %v129_v21 = vpop.f32.mrf.mxu2 }
  0xb5   :  { %v194_v22 = vpop.f32.mrf.mxu3  ;;  %v130_v23 = vadd.f32 %v480_v0, %v129_v21  ;;  %214 = vst [vmem:[%s549_s3 + $0x10] sm:$0xff] %v171_v20 }
  0xb7   :  { %v195_v24 = vadd.f32 %v194_v22, %v130_v23 }
  0xb8   :  { %v108_v25 = vpop.f32.mrf.mxu0  ;;  %v173_v26 = vpop.f32.mrf.mxu1 }
  0xb9   :  { %222 = vst [vmem:[%s549_s3 + $0x50] sm:$0xff] %v195_v24  ;;  %v109_v27 = vadd.f32 %v480_v0, %v108_v25 }
  0xbb   :  { %v174_v28 = vadd.f32 %v173_v26, %v109_v27 }
  0xbc   :  { %v132_v29 = vpop.f32.mrf.mxu2 }
  0xbd   :  { %v197_v30 = vpop.f32.mrf.mxu3  ;;  %v133_v31 = vadd.f32 %v480_v0, %v132_v29  ;;  %215 = vst [vmem:[%s549_s3 + $0x18] sm:$0xff] %v174_v28 }
  0xbf   :  { %v198_v32 = vadd.f32 %v197_v30, %v133_v31 }
  0xc0   :  { %v111_v33 = vpop.f32.mrf.mxu0  ;;  %v176_v34 = vpop.f32.mrf.mxu1 }
  0xc1   :  { %223 = vst [vmem:[%s549_s3 + $0x58] sm:$0xff] %v198_v32  ;;  %v112_v35 = vadd.f32 %v480_v0, %v111_v33 }
  0xc3   :  { %v177_v36 = vadd.f32 %v176_v34, %v112_v35 }
  0xc4   :  { %v135_v37 = vpop.f32.mrf.mxu2 }
  0xc5   :  { %v200_v38 = vpop.f32.mrf.mxu3  ;;  %v136_v39 = vadd.f32 %v480_v0, %v135_v37  ;;  %216 = vst [vmem:[%s549_s3 + $0x20] sm:$0xff] %v177_v36 }
  0xc7   :  { %v201_v40 = vadd.f32 %v200_v38, %v136_v39 }
  0xc8   :  { %v114_v41 = vpop.f32.mrf.mxu0  ;;  %v179_v42 = vpop.f32.mrf.mxu1 }
  0xc9   :  { %224 = vst [vmem:[%s549_s3 + $0x60] sm:$0xff] %v201_v40  ;;  %v115_v43 = vadd.f32 %v480_v0, %v114_v41 }
  0xcb   :  { %v180_v44 = vadd.f32 %v179_v42, %v115_v43 }
  0xcc   :  { %v138_v45 = vpop.f32.mrf.mxu2 }
  0xcd   :  { %v203_v46 = vpop.f32.mrf.mxu3  ;;  %v139_v47 = vadd.f32 %v480_v0, %v138_v45  ;;  %217 = vst [vmem:[%s549_s3 + $0x28] sm:$0xff] %v180_v44 }
  0xcf   :  { %v204_v48 = vadd.f32 %v203_v46, %v139_v47 }
  0xd0   :  { %v117_v49 = vpop.f32.mrf.mxu0  ;;  %v182_v50 = vpop.f32.mrf.mxu1 }
  0xd1   :  { %225 = vst [vmem:[%s549_s3 + $0x68] sm:$0xff] %v204_v48  ;;  %v118_v51 = vadd.f32 %v480_v0, %v117_v49 }
  0xd3   :  { %v183_v52 = vadd.f32 %v182_v50, %v118_v51 }
  0xd4   :  { %v141_v53 = vpop.f32.mrf.mxu2 }
  0xd5   :  { %v206_v54 = vpop.f32.mrf.mxu3  ;;  %v142_v55 = vadd.f32 %v480_v0, %v141_v53  ;;  %218 = vst [vmem:[%s549_s3 + $0x30] sm:$0xff] %v183_v52 }
  0xd7   :  { %v207_v56 = vadd.f32 %v206_v54, %v142_v55 }
  0xd8   :  { %v120_v57 = vpop.f32.mrf.mxu0  ;;  %v185_v58 = vpop.f32.mrf.mxu1 }
  0xd9   :  { %226 = vst [vmem:[%s549_s3 + $0x70] sm:$0xff] %v207_v56  ;;  %v121_v59 = vadd.f32 %v480_v0, %v120_v57 }
  0xdb   :  { %v186_v60 = vadd.f32 %v185_v58, %v121_v59 }
  0xdc   :  { %v144_v61 = vpop.f32.mrf.mxu2 }
  0xdd   :  { %v209_v62 = vpop.f32.mrf.mxu3  ;;  %v145_v63 = vadd.f32 %v480_v0, %v144_v61  ;;  %219 = vst [vmem:[%s549_s3 + $0x38] sm:$0xff] %v186_v60 }
  0xdf   :  { %v210_v1 = vadd.f32 %v209_v62, %v145_v63 }
  0xe1   :  { %227 = vst [vmem:[%s549_s3 + $0x78] sm:$0xff] %v210_v1 }

</bundles_post_ra>
